<compile_context>
chip_gen: v6e
topology: v6e:2x2x1
jax: 0.10.0
libtpu: 0.0.40
codegen_flags: <defaults>
</compile_context>

<pallas_src>
import functools

import jax
import jax.numpy as jnp
import numpy as np
from jax.experimental import pallas as pl
from jax.experimental.pallas import tpu as pltpu

# Architecture constants of distill_qnet's feature net (kernel == stride everywhere).
_CONV_KS = [4, 3, 2, 2, 2]          # conv kernel sizes
_C_OUT = [32, 64, 128, 256, 256]    # conv output channels
_S_OUT = [576, 64, 16, 4, 1]        # Ho*Wo after each conv for a 96x96 input
_NUM_HEADS = 2                      # q1 / q2


# ----------------------------------------------------------------------------
# Fused Pallas kernel: conv1..conv5 + lin1 + lin2 for one (batch tile, head).
# ----------------------------------------------------------------------------
def _fused_qnet_kernel(
    # inputs
    p1_ref, act_ref,
    w1_ref, b1_ref, w2_ref, b2_ref, w3_ref, b3_ref, w4_ref, b4_ref,
    w5_ref, b5_ref, wl1r_ref, wl1a_ref, bl1_ref, wl2_ref, bl2_ref,
    # output
    out_ref,
    # VMEM scratch (bf16 activations)
    a2_ref, a3_ref, a4_ref,
    *, tb,
):
    f32, bf16 = jnp.float32, jnp.bfloat16

    # ---- conv1 fused into conv2's implicit im2col -------------------------
    # p1 rows (within this batch tile) are ordered so that conv2's kernel
    # position j occupies the contiguous row block [j*64*tb, (j+1)*64*tb); within
    # a block rows are (conv2-output pixel in fused order, sample), sample
    # innermost.  conv2 therefore needs no patch matrix: it is 9 accumulated
    # matmuls over row slices, and conv1 is computed group-by-group on the fly
    # so its narrow 32-channel activation never hits VMEM scratch.
    w1 = w1_ref[...]            # hoisted: reused by all 9 groups
    b1 = b1_ref[...]
    rows2 = _S_OUT[1] * tb
    acc2 = jnp.zeros((rows2, _C_OUT[1]), f32)
    for j in range(9):
        p1j = p1_ref[pl.ds(j * rows2, rows2), :]
        a1j = jnp.maximum(jnp.dot(p1j, w1, preferred_element_type=f32) + b1, 0.0)
        acc2 = acc2 + jnp.dot(
            a1j.astype(bf16),
            w2_ref[pl.ds(j * _C_OUT[0], _C_OUT[0]), :],
            preferred_element_type=f32)
    a2_ref[...] = jnp.maximum(acc2 + b2_ref[...], 0.0).astype(bf16)

    def conv(src_ref, w_ref, b_ref, k, c_in, rows, relu):
        # Implicit im2col: acc += src[rows of kernel-position j] @ W[j*c_in:(j+1)*c_in].
        acc = jnp.zeros((rows, w_ref.shape[-1]), f32)
        for j in range(k * k):
            acc = acc + jnp.dot(
                src_ref[pl.ds(j * rows, rows), :],
                w_ref[pl.ds(j * c_in, c_in), :],
                preferred_element_type=f32)
        acc = acc + b_ref[...]
        return jnp.maximum(acc, 0.0) if relu else acc

    a3_ref[...] = conv(a2_ref, w3_ref, b3_ref, 2, _C_OUT[1], _S_OUT[2] * tb, True).astype(bf16)
    a4_ref[...] = conv(a3_ref, w4_ref, b4_ref, 2, _C_OUT[2], _S_OUT[3] * tb, True).astype(bf16)
    # conv5 has NO ReLU (matches the Sequential); spatial extent is now 1x1.
    rep = conv(a4_ref, w5_ref, b5_ref, 2, _C_OUT[3], _S_OUT[4] * tb, False)   # (tb, 256) f32

    # ---- MLP head without concat([rep, a]) ---------------------------------
    h = jnp.dot(rep.astype(bf16), wl1r_ref[...], preferred_element_type=f32)
    h = h + jnp.dot(act_ref[...], wl1a_ref[...], preferred_element_type=f32)
    h = jnp.maximum(h + bl1_ref[...], 0.0)
    # lin2 weight is zero-padded to 128 output lanes -> lane-dense final store.
    q = jnp.dot(h.astype(bf16), wl2_ref[...], preferred_element_type=f32)
    out_ref[...] = q + bl2_ref[...]


# ----------------------------------------------------------------------------
# Conv1 patch matrix (pre-kernel XLA glue): pure reshape/transpose, no gather.
# ----------------------------------------------------------------------------
def build_conv1_patches(s_nchw, tb):
    """(B, C, 96, 96) pixels -> (B//tb, tb*576, 16*C) bf16 conv1 patch tensor.

    Per batch tile the rows are ordered (fused conv1-output-pixel order, sample),
    sample innermost.  The fused pixel order interleaves the later layers' kernel
    positions so that every subsequent conv's implicit im2col becomes contiguous
    row blocks inside the kernel.  Note: pixels are cast to bf16 here; this is
    exact for uint8-valued pixels and ~0.2-0.4% relative error for arbitrary
    floats (well within the validation tolerance).
    """
    B, C, H, W = s_nchw.shape
    assert (H, W) == (96, 96), "distill_qnet requires 96x96 spatial input"
    assert B % tb == 0
    n_bt = B // tb
    x = jnp.transpose(s_nchw.astype(jnp.bfloat16), (0, 2, 3, 1))        # (B,96,96,C)
    # conv1 im2col (stride == kernel == 4): (B, 24, 24, 16*C), cols = (r, c, cin).
    x = x.reshape(B, 24, 4, 24, 4, C).transpose(0, 1, 3, 2, 4, 5)
    x = x.reshape(B, 24, 24, 16 * C)
    # 24 = 2*2*2*3: the digits of a conv1-output coordinate are exactly the later
    # layers' kernel positions: H1 = kh5*12 + kh4*6 + kh3*3 + kh2 (same for W).
    x = x.reshape(n_bt, tb, 2, 2, 2, 3, 2, 2, 2, 3, 16 * C)
    # axes: (n_bt, tb, kh5, kh4, kh3, kh2, kw5, kw4, kw3, kw2, K1)
    #  ->   (n_bt, kh2, kw2, kh3, kw3, kh4, kw4, kh5, kw5, tb, K1)
    x = jnp.transpose(x, (0, 5, 9, 4, 8, 3, 7, 2, 6, 1, 10))
    return x.reshape(n_bt, tb * 576, 16 * C)


# ----------------------------------------------------------------------------
# Parameter init (PyTorch-style) and packing into the kernel layout.
# ----------------------------------------------------------------------------
def _uniform(key, shape, bound):
    return jax.random.uniform(key, shape, jnp.float32, -bound, bound)


def init_conv(key, cin, cout, k):
    kw_key, kb_key = jax.random.split(key)
    bound = 1.0 / float(np.sqrt(cin * k * k))
    return _uniform(kw_key, (cout, cin, k, k), bound), _uniform(kb_key, (cout,), bound)


def init_linear(key, fin, fout):
    kw_key, kb_key = jax.random.split(key)
    bound = 1.0 / float(np.sqrt(fin))
    return _uniform(kw_key, (fout, fin), bound), _uniform(kb_key, (fout,), bound)


def init_params(key, inpt_chann, action_dim):
    """PyTorch-layout parameters (OIHW convs, (out, in) linears) for both heads."""
    conv_defs = list(zip([inpt_chann] + _C_OUT[:-1], _C_OUT, _CONV_KS))
    params = {}
    for q in ("q1", "q2"):
        convs = []
        for cin, cout, k in conv_defs:
            key, sub = jax.random.split(key)
            convs.append(init_conv(sub, cin, cout, k))
        key, k1 = jax.random.split(key)
        key, k2 = jax.random.split(key)
        params[q] = {
            "convs": convs,
            "lin1": init_linear(k1, 256 + action_dim, 256),
            "lin2": init_linear(k2, 256, 1),
        }
    return params


def conv_weight_to_matrix(w_oihw):
    """(Cout, Cin, kh, kw) -> (kh*kw*Cin, Cout), rows ordered (kh, kw, cin)."""
    cout, cin, kh, kw = w_oihw.shape
    return jnp.transpose(w_oihw, (2, 3, 1, 0)).reshape(kh * kw * cin, cout)


def pack_params(params):
    """Stack both heads' parameters into the fused kernel's layout."""
    packed = []
    for li in range(len(_CONV_KS)):
        ws, bs = [], []
        for q in ("q1", "q2"):
            w, b = params[q]["convs"][li]
            wm = conv_weight_to_matrix(w)
            if li == 0:
                wm = wm * (1.0 / 255.0)          # fold the /255 input scaling
            ws.append(wm)
            bs.append(b.reshape(1, -1))
        packed.append(jnp.stack(ws).astype(jnp.bfloat16))
        packed.append(jnp.stack(bs).astype(jnp.float32))
    wl1r, wl1a, bl1, wl2, bl2 = [], [], [], [], []
    for q in ("q1", "q2"):
        w1, b1 = params[q]["lin1"]               # (256, 256+A), (256,)
        w1t = w1.T                               # (256+A, 256)
        wl1r.append(w1t[:256, :])                # rep part of lin1
        wl1a.append(w1t[256:, :])                # action part of lin1
        bl1.append(b1.reshape(1, -1))
        w2, b2 = params[q]["lin2"]               # (1, 256), (1,)
        # Padding lanes 1..127 MUST stay zero; the wrapper slices them away.
        wl2.append(jnp.zeros((256, 128), jnp.float32).at[:, 0].set(w2[0]))
        bl2.append(jnp.zeros((1, 128), jnp.float32).at[0, 0].set(b2[0]))
    packed += [
        jnp.stack(wl1r).astype(jnp.bfloat16),
        jnp.stack(wl1a).astype(jnp.bfloat16),
        jnp.stack(bl1).astype(jnp.float32),
        jnp.stack(wl2).astype(jnp.bfloat16),
        jnp.stack(bl2).astype(jnp.float32),
    ]
    return tuple(packed)


# ----------------------------------------------------------------------------
# Forward pass: one fused pallas_call over (batch_tile, head).
# ----------------------------------------------------------------------------
def distill_qnet_forward(packed, s, a, batch_tile=None, vmem_limit_bytes=None):
    """Returns (q1, q2), each (B, 1) float32, matching distill_qnet.forward."""
    B = s.shape[0]
    A = a.shape[1]
    tb = B if batch_tile is None else batch_tile
    assert B % tb == 0 and (tb == B or tb % 8 == 0)
    n_bt = B // tb

    p1 = build_conv1_patches(s, tb)               # (n_bt, tb*576, 16*Cin) bf16
    a_b = a.astype(jnp.bfloat16)
    K1 = p1.shape[-1]

    in_specs = [
        # conv1 patches: block index depends only on the batch tile, so with the
        # head axis innermost the tile is DMA'd once and reused by both heads.
        pl.BlockSpec((None, tb * _S_OUT[0], K1), lambda m, h: (m, 0, 0)),
        pl.BlockSpec((tb, A), lambda m, h: (m, 0)),
    ]
    for arr in packed:                            # per-head parameters
        in_specs.append(
            pl.BlockSpec((None,) + tuple(arr.shape[1:]), lambda m, h: (h, 0, 0)))

    out_spec = pl.BlockSpec((None, tb, 128), lambda m, h: (h, m, 0))
    out_shape = jax.ShapeDtypeStruct((_NUM_HEADS, B, 128), jnp.float32)

    scratch = [
        pltpu.VMEM((_S_OUT[1] * tb, _C_OUT[1]), jnp.bfloat16),   # a2 (conv2 out)
        pltpu.VMEM((_S_OUT[2] * tb, _C_OUT[2]), jnp.bfloat16),   # a3 (conv3 out)
        pltpu.VMEM((_S_OUT[3] * tb, _C_OUT[3]), jnp.bfloat16),   # a4 (conv4 out)
    ]

    def nbytes(x):
        return x.size * x.dtype.itemsize

    flops_tile = 2 * sum(m * k * n for m, k, n in [
        (tb * 576, K1, 32), (tb * 64, 288, 64), (tb * 16, 256, 128),
        (tb * 4, 512, 256), (tb, 1024, 256), (tb, 256, 256),
        (tb, A, 256), (tb, 256, 128)])
    cost = pl.CostEstimate(
        flops=int(_NUM_HEADS * n_bt * flops_tile),
        transcendentals=0,
        bytes_accessed=int(nbytes(p1) + nbytes(a_b)                 # read once per tile
                           + n_bt * sum(nbytes(x) for x in packed)  # weights per step
                           + _NUM_HEADS * B * 128 * 4))

    out = pl.pallas_call(
        functools.partial(_fused_qnet_kernel, tb=tb),
        out_shape=out_shape,
        grid_spec=pltpu.PrefetchScalarGridSpec(
            num_scalar_prefetch=0,
            grid=(n_bt, _NUM_HEADS),      # head innermost -> p1 reuse across heads
            in_specs=in_specs,
            out_specs=out_spec,
            scratch_shapes=scratch,
        ),
        compiler_params=pltpu.CompilerParams(
            dimension_semantics=("parallel", "arbitrary"),
            vmem_limit_bytes=vmem_limit_bytes),
        cost_estimate=cost,
    )(p1, a_b, *packed)

    return out[0, :, :1], out[1, :, :1]


# ----------------------------------------------------------------------------
# Pure-JAX float32 reference of the PyTorch module (for validation only).
# ----------------------------------------------------------------------------
def reference_forward(params, s, a):
    x = s.astype(jnp.float32) / 255.0

    def feature(convs):
        h = x
        for idx, (w, b) in enumerate(convs):
            k = w.shape[-1]
            h = jax.lax.conv_general_dilated(
                h, w, window_strides=(k, k), padding="VALID",
                dimension_numbers=("NCHW", "OIHW", "NCHW"))
            h = h + b.reshape(1, -1, 1, 1)
            if idx < len(convs) - 1:
                h = jnp.maximum(h, 0.0)
        return h.reshape(h.shape[0], -1)

    outs = []
    for q in ("q1", "q2"):
        rep = feature(params[q]["convs"])
        w1, b1 = params[q]["lin1"]
        w2, b2 = params[q]["lin2"]
        z = jnp.concatenate([rep, a.astype(jnp.float32)], axis=1)
        hh = jnp.maximum(z @ w1.T + b1, 0.0)
        outs.append(hh @ w2.T + b2)
    return outs[0], outs[1]


# ----------------------------------------------------------------------------
# Main
# ----------------------------------------------------------------------------
if __name__ == "__main__":
    # lin1 is hard-coded to 1*1*256 + action_dim inputs, which forces 96x96
    # spatial input (96/4=24, 24/3=8, 8/2=4, 4/2=2, 2/2=1).
    batch, inpt_chann, spatial, action_dim = 2, 4, 96, 8

    key = jax.random.PRNGKey(0)
    pkey, skey, akey = jax.random.split(key, 3)

    params = init_params(pkey, inpt_chann, action_dim)
    packed = pack_params(params)

    s = jax.random.uniform(
        skey, (batch, inpt_chann, spatial, spatial), jnp.float32, 0.0, 255.0)
    a = jax.random.normal(akey, (batch, action_dim), jnp.float32)

    fwd = jax.jit(distill_qnet_forward)
    q1, q2 = fwd(packed, s, a)
    jax.block_until_ready((q1, q2))
    assert q1.shape == (batch, 1) and q2.shape == (batch, 1)

    # Validate the fused bf16 kernel against the f32 reference (loose tol: bf16
    # inputs/weights with f32 accumulation; reorderings are mathematically exact).
    r1, r2 = jax.jit(reference_forward)(params, s, a)
    np.testing.assert_allclose(np.asarray(q1), np.asarray(r1), rtol=2e-2, atol=2e-2)
    np.testing.assert_allclose(np.asarray(q2), np.asarray(r2), rtol=2e-2, atol=2e-2)

    print("KERNEL_OK")
</pallas_src>

<mosaic_0001>
module attributes {stable_mosaic.version = 11 : i64} {
  func.func @_fused_qnet_kernel(%arg0: i32, %arg1: i32, %arg2: memref<1x1152x64xbf16, #tpu.memory_space<vmem>>, %arg3: memref<2x8xbf16, #tpu.memory_space<vmem>>, %arg4: memref<1x64x32xbf16, #tpu.memory_space<vmem>>, %arg5: memref<1x1x32xf32, #tpu.memory_space<vmem>>, %arg6: memref<1x288x64xbf16, #tpu.memory_space<vmem>>, %arg7: memref<1x1x64xf32, #tpu.memory_space<vmem>>, %arg8: memref<1x256x128xbf16, #tpu.memory_space<vmem>>, %arg9: memref<1x1x128xf32, #tpu.memory_space<vmem>>, %arg10: memref<1x512x256xbf16, #tpu.memory_space<vmem>>, %arg11: memref<1x1x256xf32, #tpu.memory_space<vmem>>, %arg12: memref<1x1024x256xbf16, #tpu.memory_space<vmem>>, %arg13: memref<1x1x256xf32, #tpu.memory_space<vmem>>, %arg14: memref<1x256x256xbf16, #tpu.memory_space<vmem>>, %arg15: memref<1x8x256xbf16, #tpu.memory_space<vmem>>, %arg16: memref<1x1x256xf32, #tpu.memory_space<vmem>>, %arg17: memref<1x256x128xbf16, #tpu.memory_space<vmem>>, %arg18: memref<1x1x128xf32, #tpu.memory_space<vmem>>, %arg19: memref<1x2x128xf32, #tpu.memory_space<vmem>>, %arg20: memref<128x64xbf16, #tpu.memory_space<vmem>>, %arg21: memref<32x128xbf16, #tpu.memory_space<vmem>>, %arg22: memref<8x256xbf16, #tpu.memory_space<vmem>>) attributes {dimension_semantics = [#tpu.dimension_semantics<parallel>, #tpu.dimension_semantics<arbitrary>], iteration_bounds = array<i64: 1, 2>, scalar_prefetch = 0 : i64, scratch_operands = 3 : i64, tpu.core_type = #tpu.core_type<tc>, window_params = [{transform_indices = @transform_0, window_bounds = array<i64: 1, 1152, 64>}, {transform_indices = @transform_1, window_bounds = array<i64: 2, 8>}, {transform_indices = @transform_2, window_bounds = array<i64: 1, 64, 32>}, {transform_indices = @transform_3, window_bounds = array<i64: 1, 1, 32>}, {transform_indices = @transform_4, window_bounds = array<i64: 1, 288, 64>}, {transform_indices = @transform_5, window_bounds = array<i64: 1, 1, 64>}, {transform_indices = @transform_6, window_bounds = array<i64: 1, 256, 128>}, {transform_indices = @transform_7, window_bounds = array<i64: 1, 1, 128>}, {transform_indices = @transform_8, window_bounds = array<i64: 1, 512, 256>}, {transform_indices = @transform_9, window_bounds = array<i64: 1, 1, 256>}, {transform_indices = @transform_10, window_bounds = array<i64: 1, 1024, 256>}, {transform_indices = @transform_11, window_bounds = array<i64: 1, 1, 256>}, {transform_indices = @transform_12, window_bounds = array<i64: 1, 256, 256>}, {transform_indices = @transform_13, window_bounds = array<i64: 1, 8, 256>}, {transform_indices = @transform_14, window_bounds = array<i64: 1, 1, 256>}, {transform_indices = @transform_15, window_bounds = array<i64: 1, 256, 128>}, {transform_indices = @transform_16, window_bounds = array<i64: 1, 1, 128>}, {transform_indices = @transform_17, window_bounds = array<i64: 1, 2, 128>}]} {
    %c0 = arith.constant 0 : index
    %c0_0 = arith.constant 0 : index
    %c0_1 = arith.constant 0 : index
    %0 = vector.load %arg4[%c0, %c0_0, %c0_1] : memref<1x64x32xbf16, #tpu.memory_space<vmem>>, vector<1x64x32xbf16>
    %1 = vector.shape_cast %0 : vector<1x64x32xbf16> to vector<64x32xbf16>
    %c0_2 = arith.constant 0 : index
    %c0_3 = arith.constant 0 : index
    %c0_4 = arith.constant 0 : index
    %2 = vector.load %arg5[%c0_2, %c0_3, %c0_4] : memref<1x1x32xf32, #tpu.memory_space<vmem>>, vector<1x1x32xf32>
    %3 = vector.shape_cast %2 : vector<1x1x32xf32> to vector<1x32xf32>
    %cst = arith.constant 0.000000e+00 : f32
    %4 = vector.broadcast %cst : f32 to vector<128x64xf32>
    %c0_5 = arith.constant 0 : index
    %c0_6 = arith.constant 0 : index
    %c0_7 = arith.constant 0 : index
    %5 = vector.load %arg2[%c0_5, %c0_6, %c0_7] : memref<1x1152x64xbf16, #tpu.memory_space<vmem>>, vector<1x128x64xbf16>
    %6 = vector.shape_cast %5 : vector<1x128x64xbf16> to vector<128x64xbf16>
    %cst_8 = arith.constant dense<0.000000e+00> : vector<128x32xf32>
    %7 = tpu.matmul %6, %1, %cst_8 {dimension_numbers = #tpu.dot_dimension_numbers<[1], [0], [0], [1], [0, 0, 1, 1], [], []>} : vector<128x64xbf16>, vector<64x32xbf16>, vector<128x32xf32> -> vector<128x32xf32>
    %8 = vector.broadcast %3 : vector<1x32xf32> to vector<128x32xf32>
    %9 = arith.addf %7, %8 : vector<128x32xf32>
    %cst_9 = arith.constant 0.000000e+00 : f32
    %10 = vector.broadcast %cst_9 : f32 to vector<128x32xf32>
    %11 = arith.maximumf %9, %10 : vector<128x32xf32>
    %12 = arith.truncf %11 : vector<128x32xf32> to vector<128x32xbf16>
    %c0_10 = arith.constant 0 : index
    %c0_11 = arith.constant 0 : index
    %c0_12 = arith.constant 0 : index
    %13 = vector.load %arg6[%c0_10, %c0_11, %c0_12] : memref<1x288x64xbf16, #tpu.memory_space<vmem>>, vector<1x32x64xbf16>
    %14 = vector.shape_cast %13 : vector<1x32x64xbf16> to vector<32x64xbf16>
    %cst_13 = arith.constant dense<0.000000e+00> : vector<128x64xf32>
    %15 = tpu.matmul %12, %14, %cst_13 {dimension_numbers = #tpu.dot_dimension_numbers<[1], [0], [0], [1], [0, 0, 1, 1], [], []>} : vector<128x32xbf16>, vector<32x64xbf16>, vector<128x64xf32> -> vector<128x64xf32>
    %16 = arith.addf %4, %15 : vector<128x64xf32>
    %c0_14 = arith.constant 0 : index
    %c128 = arith.constant 128 : index
    %c0_15 = arith.constant 0 : index
    %17 = vector.load %arg2[%c0_14, %c128, %c0_15] : memref<1x1152x64xbf16, #tpu.memory_space<vmem>>, vector<1x128x64xbf16>
    %18 = vector.shape_cast %17 : vector<1x128x64xbf16> to vector<128x64xbf16>
    %cst_16 = arith.constant dense<0.000000e+00> : vector<128x32xf32>
    %19 = tpu.matmul %18, %1, %cst_16 {dimension_numbers = #tpu.dot_dimension_numbers<[1], [0], [0], [1], [0, 0, 1, 1], [], []>} : vector<128x64xbf16>, vector<64x32xbf16>, vector<128x32xf32> -> vector<128x32xf32>
    %20 = vector.broadcast %3 : vector<1x32xf32> to vector<128x32xf32>
    %21 = arith.addf %19, %20 : vector<128x32xf32>
    %cst_17 = arith.constant 0.000000e+00 : f32
    %22 = vector.broadcast %cst_17 : f32 to vector<128x32xf32>
    %23 = arith.maximumf %21, %22 : vector<128x32xf32>
    %24 = arith.truncf %23 : vector<128x32xf32> to vector<128x32xbf16>
    %c0_18 = arith.constant 0 : index
    %c32 = arith.constant 32 : index
    %c0_19 = arith.constant 0 : index
    %25 = vector.load %arg6[%c0_18, %c32, %c0_19] : memref<1x288x64xbf16, #tpu.memory_space<vmem>>, vector<1x32x64xbf16>
    %26 = vector.shape_cast %25 : vector<1x32x64xbf16> to vector<32x64xbf16>
    %cst_20 = arith.constant dense<0.000000e+00> : vector<128x64xf32>
    %27 = tpu.matmul %24, %26, %cst_20 {dimension_numbers = #tpu.dot_dimension_numbers<[1], [0], [0], [1], [0, 0, 1, 1], [], []>} : vector<128x32xbf16>, vector<32x64xbf16>, vector<128x64xf32> -> vector<128x64xf32>
    %28 = arith.addf %16, %27 : vector<128x64xf32>
    %c0_21 = arith.constant 0 : index
    %c256 = arith.constant 256 : index
    %c0_22 = arith.constant 0 : index
    %29 = vector.load %arg2[%c0_21, %c256, %c0_22] : memref<1x1152x64xbf16, #tpu.memory_space<vmem>>, vector<1x128x64xbf16>
    %30 = vector.shape_cast %29 : vector<1x128x64xbf16> to vector<128x64xbf16>
    %cst_23 = arith.constant dense<0.000000e+00> : vector<128x32xf32>
    %31 = tpu.matmul %30, %1, %cst_23 {dimension_numbers = #tpu.dot_dimension_numbers<[1], [0], [0], [1], [0, 0, 1, 1], [], []>} : vector<128x64xbf16>, vector<64x32xbf16>, vector<128x32xf32> -> vector<128x32xf32>
    %32 = vector.broadcast %3 : vector<1x32xf32> to vector<128x32xf32>
    %33 = arith.addf %31, %32 : vector<128x32xf32>
    %cst_24 = arith.constant 0.000000e+00 : f32
    %34 = vector.broadcast %cst_24 : f32 to vector<128x32xf32>
    %35 = arith.maximumf %33, %34 : vector<128x32xf32>
    %36 = arith.truncf %35 : vector<128x32xf32> to vector<128x32xbf16>
    %c0_25 = arith.constant 0 : index
    %c64 = arith.constant 64 : index
    %c0_26 = arith.constant 0 : index
    %37 = vector.load %arg6[%c0_25, %c64, %c0_26] : memref<1x288x64xbf16, #tpu.memory_space<vmem>>, vector<1x32x64xbf16>
    %38 = vector.shape_cast %37 : vector<1x32x64xbf16> to vector<32x64xbf16>
    %cst_27 = arith.constant dense<0.000000e+00> : vector<128x64xf32>
    %39 = tpu.matmul %36, %38, %cst_27 {dimension_numbers = #tpu.dot_dimension_numbers<[1], [0], [0], [1], [0, 0, 1, 1], [], []>} : vector<128x32xbf16>, vector<32x64xbf16>, vector<128x64xf32> -> vector<128x64xf32>
    %40 = arith.addf %28, %39 : vector<128x64xf32>
    %c0_28 = arith.constant 0 : index
    %c384 = arith.constant 384 : index
    %c0_29 = arith.constant 0 : index
    %41 = vector.load %arg2[%c0_28, %c384, %c0_29] : memref<1x1152x64xbf16, #tpu.memory_space<vmem>>, vector<1x128x64xbf16>
    %42 = vector.shape_cast %41 : vector<1x128x64xbf16> to vector<128x64xbf16>
    %cst_30 = arith.constant dense<0.000000e+00> : vector<128x32xf32>
    %43 = tpu.matmul %42, %1, %cst_30 {dimension_numbers = #tpu.dot_dimension_numbers<[1], [0], [0], [1], [0, 0, 1, 1], [], []>} : vector<128x64xbf16>, vector<64x32xbf16>, vector<128x32xf32> -> vector<128x32xf32>
    %44 = vector.broadcast %3 : vector<1x32xf32> to vector<128x32xf32>
    %45 = arith.addf %43, %44 : vector<128x32xf32>
    %cst_31 = arith.constant 0.000000e+00 : f32
    %46 = vector.broadcast %cst_31 : f32 to vector<128x32xf32>
    %47 = arith.maximumf %45, %46 : vector<128x32xf32>
    %48 = arith.truncf %47 : vector<128x32xf32> to vector<128x32xbf16>
    %c0_32 = arith.constant 0 : index
    %c96 = arith.constant 96 : index
    %c0_33 = arith.constant 0 : index
    %49 = vector.load %arg6[%c0_32, %c96, %c0_33] : memref<1x288x64xbf16, #tpu.memory_space<vmem>>, vector<1x32x64xbf16>
    %50 = vector.shape_cast %49 : vector<1x32x64xbf16> to vector<32x64xbf16>
    %cst_34 = arith.constant dense<0.000000e+00> : vector<128x64xf32>
    %51 = tpu.matmul %48, %50, %cst_34 {dimension_numbers = #tpu.dot_dimension_numbers<[1], [0], [0], [1], [0, 0, 1, 1], [], []>} : vector<128x32xbf16>, vector<32x64xbf16>, vector<128x64xf32> -> vector<128x64xf32>
    %52 = arith.addf %40, %51 : vector<128x64xf32>
    %c0_35 = arith.constant 0 : index
    %c512 = arith.constant 512 : index
    %c0_36 = arith.constant 0 : index
    %53 = vector.load %arg2[%c0_35, %c512, %c0_36] : memref<1x1152x64xbf16, #tpu.memory_space<vmem>>, vector<1x128x64xbf16>
    %54 = vector.shape_cast %53 : vector<1x128x64xbf16> to vector<128x64xbf16>
    %cst_37 = arith.constant dense<0.000000e+00> : vector<128x32xf32>
    %55 = tpu.matmul %54, %1, %cst_37 {dimension_numbers = #tpu.dot_dimension_numbers<[1], [0], [0], [1], [0, 0, 1, 1], [], []>} : vector<128x64xbf16>, vector<64x32xbf16>, vector<128x32xf32> -> vector<128x32xf32>
    %56 = vector.broadcast %3 : vector<1x32xf32> to vector<128x32xf32>
    %57 = arith.addf %55, %56 : vector<128x32xf32>
    %cst_38 = arith.constant 0.000000e+00 : f32
    %58 = vector.broadcast %cst_38 : f32 to vector<128x32xf32>
    %59 = arith.maximumf %57, %58 : vector<128x32xf32>
    %60 = arith.truncf %59 : vector<128x32xf32> to vector<128x32xbf16>
    %c0_39 = arith.constant 0 : index
    %c128_40 = arith.constant 128 : index
    %c0_41 = arith.constant 0 : index
    %61 = vector.load %arg6[%c0_39, %c128_40, %c0_41] : memref<1x288x64xbf16, #tpu.memory_space<vmem>>, vector<1x32x64xbf16>
    %62 = vector.shape_cast %61 : vector<1x32x64xbf16> to vector<32x64xbf16>
    %cst_42 = arith.constant dense<0.000000e+00> : vector<128x64xf32>
    %63 = tpu.matmul %60, %62, %cst_42 {dimension_numbers = #tpu.dot_dimension_numbers<[1], [0], [0], [1], [0, 0, 1, 1], [], []>} : vector<128x32xbf16>, vector<32x64xbf16>, vector<128x64xf32> -> vector<128x64xf32>
    %64 = arith.addf %52, %63 : vector<128x64xf32>
    %c0_43 = arith.constant 0 : index
    %c640 = arith.constant 640 : index
    %c0_44 = arith.constant 0 : index
    %65 = vector.load %arg2[%c0_43, %c640, %c0_44] : memref<1x1152x64xbf16, #tpu.memory_space<vmem>>, vector<1x128x64xbf16>
    %66 = vector.shape_cast %65 : vector<1x128x64xbf16> to vector<128x64xbf16>
    %cst_45 = arith.constant dense<0.000000e+00> : vector<128x32xf32>
    %67 = tpu.matmul %66, %1, %cst_45 {dimension_numbers = #tpu.dot_dimension_numbers<[1], [0], [0], [1], [0, 0, 1, 1], [], []>} : vector<128x64xbf16>, vector<64x32xbf16>, vector<128x32xf32> -> vector<128x32xf32>
    %68 = vector.broadcast %3 : vector<1x32xf32> to vector<128x32xf32>
    %69 = arith.addf %67, %68 : vector<128x32xf32>
    %cst_46 = arith.constant 0.000000e+00 : f32
    %70 = vector.broadcast %cst_46 : f32 to vector<128x32xf32>
    %71 = arith.maximumf %69, %70 : vector<128x32xf32>
    %72 = arith.truncf %71 : vector<128x32xf32> to vector<128x32xbf16>
    %c0_47 = arith.constant 0 : index
    %c160 = arith.constant 160 : index
    %c0_48 = arith.constant 0 : index
    %73 = vector.load %arg6[%c0_47, %c160, %c0_48] : memref<1x288x64xbf16, #tpu.memory_space<vmem>>, vector<1x32x64xbf16>
    %74 = vector.shape_cast %73 : vector<1x32x64xbf16> to vector<32x64xbf16>
    %cst_49 = arith.constant dense<0.000000e+00> : vector<128x64xf32>
    %75 = tpu.matmul %72, %74, %cst_49 {dimension_numbers = #tpu.dot_dimension_numbers<[1], [0], [0], [1], [0, 0, 1, 1], [], []>} : vector<128x32xbf16>, vector<32x64xbf16>, vector<128x64xf32> -> vector<128x64xf32>
    %76 = arith.addf %64, %75 : vector<128x64xf32>
    %c0_50 = arith.constant 0 : index
    %c768 = arith.constant 768 : index
    %c0_51 = arith.constant 0 : index
    %77 = vector.load %arg2[%c0_50, %c768, %c0_51] : memref<1x1152x64xbf16, #tpu.memory_space<vmem>>, vector<1x128x64xbf16>
    %78 = vector.shape_cast %77 : vector<1x128x64xbf16> to vector<128x64xbf16>
    %cst_52 = arith.constant dense<0.000000e+00> : vector<128x32xf32>
    %79 = tpu.matmul %78, %1, %cst_52 {dimension_numbers = #tpu.dot_dimension_numbers<[1], [0], [0], [1], [0, 0, 1, 1], [], []>} : vector<128x64xbf16>, vector<64x32xbf16>, vector<128x32xf32> -> vector<128x32xf32>
    %80 = vector.broadcast %3 : vector<1x32xf32> to vector<128x32xf32>
    %81 = arith.addf %79, %80 : vector<128x32xf32>
    %cst_53 = arith.constant 0.000000e+00 : f32
    %82 = vector.broadcast %cst_53 : f32 to vector<128x32xf32>
    %83 = arith.maximumf %81, %82 : vector<128x32xf32>
    %84 = arith.truncf %83 : vector<128x32xf32> to vector<128x32xbf16>
    %c0_54 = arith.constant 0 : index
    %c192 = arith.constant 192 : index
    %c0_55 = arith.constant 0 : index
    %85 = vector.load %arg6[%c0_54, %c192, %c0_55] : memref<1x288x64xbf16, #tpu.memory_space<vmem>>, vector<1x32x64xbf16>
    %86 = vector.shape_cast %85 : vector<1x32x64xbf16> to vector<32x64xbf16>
    %cst_56 = arith.constant dense<0.000000e+00> : vector<128x64xf32>
    %87 = tpu.matmul %84, %86, %cst_56 {dimension_numbers = #tpu.dot_dimension_numbers<[1], [0], [0], [1], [0, 0, 1, 1], [], []>} : vector<128x32xbf16>, vector<32x64xbf16>, vector<128x64xf32> -> vector<128x64xf32>
    %88 = arith.addf %76, %87 : vector<128x64xf32>
    %c0_57 = arith.constant 0 : index
    %c896 = arith.constant 896 : index
    %c0_58 = arith.constant 0 : index
    %89 = vector.load %arg2[%c0_57, %c896, %c0_58] : memref<1x1152x64xbf16, #tpu.memory_space<vmem>>, vector<1x128x64xbf16>
    %90 = vector.shape_cast %89 : vector<1x128x64xbf16> to vector<128x64xbf16>
    %cst_59 = arith.constant dense<0.000000e+00> : vector<128x32xf32>
    %91 = tpu.matmul %90, %1, %cst_59 {dimension_numbers = #tpu.dot_dimension_numbers<[1], [0], [0], [1], [0, 0, 1, 1], [], []>} : vector<128x64xbf16>, vector<64x32xbf16>, vector<128x32xf32> -> vector<128x32xf32>
    %92 = vector.broadcast %3 : vector<1x32xf32> to vector<128x32xf32>
    %93 = arith.addf %91, %92 : vector<128x32xf32>
    %cst_60 = arith.constant 0.000000e+00 : f32
    %94 = vector.broadcast %cst_60 : f32 to vector<128x32xf32>
    %95 = arith.maximumf %93, %94 : vector<128x32xf32>
    %96 = arith.truncf %95 : vector<128x32xf32> to vector<128x32xbf16>
    %c0_61 = arith.constant 0 : index
    %c224 = arith.constant 224 : index
    %c0_62 = arith.constant 0 : index
    %97 = vector.load %arg6[%c0_61, %c224, %c0_62] : memref<1x288x64xbf16, #tpu.memory_space<vmem>>, vector<1x32x64xbf16>
    %98 = vector.shape_cast %97 : vector<1x32x64xbf16> to vector<32x64xbf16>
    %cst_63 = arith.constant dense<0.000000e+00> : vector<128x64xf32>
    %99 = tpu.matmul %96, %98, %cst_63 {dimension_numbers = #tpu.dot_dimension_numbers<[1], [0], [0], [1], [0, 0, 1, 1], [], []>} : vector<128x32xbf16>, vector<32x64xbf16>, vector<128x64xf32> -> vector<128x64xf32>
    %100 = arith.addf %88, %99 : vector<128x64xf32>
    %c0_64 = arith.constant 0 : index
    %c1024 = arith.constant 1024 : index
    %c0_65 = arith.constant 0 : index
    %101 = vector.load %arg2[%c0_64, %c1024, %c0_65] : memref<1x1152x64xbf16, #tpu.memory_space<vmem>>, vector<1x128x64xbf16>
    %102 = vector.shape_cast %101 : vector<1x128x64xbf16> to vector<128x64xbf16>
    %cst_66 = arith.constant dense<0.000000e+00> : vector<128x32xf32>
    %103 = tpu.matmul %102, %1, %cst_66 {dimension_numbers = #tpu.dot_dimension_numbers<[1], [0], [0], [1], [0, 0, 1, 1], [], []>} : vector<128x64xbf16>, vector<64x32xbf16>, vector<128x32xf32> -> vector<128x32xf32>
    %104 = vector.broadcast %3 : vector<1x32xf32> to vector<128x32xf32>
    %105 = arith.addf %103, %104 : vector<128x32xf32>
    %cst_67 = arith.constant 0.000000e+00 : f32
    %106 = vector.broadcast %cst_67 : f32 to vector<128x32xf32>
    %107 = arith.maximumf %105, %106 : vector<128x32xf32>
    %108 = arith.truncf %107 : vector<128x32xf32> to vector<128x32xbf16>
    %c0_68 = arith.constant 0 : index
    %c256_69 = arith.constant 256 : index
    %c0_70 = arith.constant 0 : index
    %109 = vector.load %arg6[%c0_68, %c256_69, %c0_70] : memref<1x288x64xbf16, #tpu.memory_space<vmem>>, vector<1x32x64xbf16>
    %110 = vector.shape_cast %109 : vector<1x32x64xbf16> to vector<32x64xbf16>
    %cst_71 = arith.constant dense<0.000000e+00> : vector<128x64xf32>
    %111 = tpu.matmul %108, %110, %cst_71 {dimension_numbers = #tpu.dot_dimension_numbers<[1], [0], [0], [1], [0, 0, 1, 1], [], []>} : vector<128x32xbf16>, vector<32x64xbf16>, vector<128x64xf32> -> vector<128x64xf32>
    %112 = arith.addf %100, %111 : vector<128x64xf32>
    %c0_72 = arith.constant 0 : index
    %c0_73 = arith.constant 0 : index
    %c0_74 = arith.constant 0 : index
    %113 = vector.load %arg7[%c0_72, %c0_73, %c0_74] : memref<1x1x64xf32, #tpu.memory_space<vmem>>, vector<1x1x64xf32>
    %114 = vector.shape_cast %113 : vector<1x1x64xf32> to vector<1x64xf32>
    %115 = vector.broadcast %114 : vector<1x64xf32> to vector<128x64xf32>
    %116 = arith.addf %112, %115 : vector<128x64xf32>
    %cst_75 = arith.constant 0.000000e+00 : f32
    %117 = vector.broadcast %cst_75 : f32 to vector<128x64xf32>
    %118 = arith.maximumf %116, %117 : vector<128x64xf32>
    %119 = arith.truncf %118 : vector<128x64xf32> to vector<128x64xbf16>
    %c0_76 = arith.constant 0 : index
    %c0_77 = arith.constant 0 : index
    %120 = vector.load %arg20[%c0_76, %c0_77] : memref<128x64xbf16, #tpu.memory_space<vmem>>, vector<128x64xbf16>
    tpu.vector_store %arg20[%c0_76, %c0_77], %119 {strides = array<i32>} : memref<128x64xbf16, #tpu.memory_space<vmem>>, vector<128x64xbf16>,
    %cst_78 = arith.constant 0.000000e+00 : f32
    %121 = vector.broadcast %cst_78 : f32 to vector<32x128xf32>
    %c0_79 = arith.constant 0 : index
    %c0_80 = arith.constant 0 : index
    %122 = vector.load %arg20[%c0_79, %c0_80] : memref<128x64xbf16, #tpu.memory_space<vmem>>, vector<32x64xbf16>
    %c0_81 = arith.constant 0 : index
    %c0_82 = arith.constant 0 : index
    %c0_83 = arith.constant 0 : index
    %123 = vector.load %arg8[%c0_81, %c0_82, %c0_83] : memref<1x256x128xbf16, #tpu.memory_space<vmem>>, vector<1x64x128xbf16>
    %124 = vector.shape_cast %123 : vector<1x64x128xbf16> to vector<64x128xbf16>
    %cst_84 = arith.constant dense<0.000000e+00> : vector<32x128xf32>
    %125 = tpu.matmul %122, %124, %cst_84 {dimension_numbers = #tpu.dot_dimension_numbers<[1], [0], [0], [1], [0, 0, 1, 1], [], []>} : vector<32x64xbf16>, vector<64x128xbf16>, vector<32x128xf32> -> vector<32x128xf32>
    %126 = arith.addf %121, %125 : vector<32x128xf32>
    %c32_85 = arith.constant 32 : index
    %c0_86 = arith.constant 0 : index
    %127 = vector.load %arg20[%c32_85, %c0_86] : memref<128x64xbf16, #tpu.memory_space<vmem>>, vector<32x64xbf16>
    %c0_87 = arith.constant 0 : index
    %c64_88 = arith.constant 64 : index
    %c0_89 = arith.constant 0 : index
    %128 = vector.load %arg8[%c0_87, %c64_88, %c0_89] : memref<1x256x128xbf16, #tpu.memory_space<vmem>>, vector<1x64x128xbf16>
    %129 = vector.shape_cast %128 : vector<1x64x128xbf16> to vector<64x128xbf16>
    %cst_90 = arith.constant dense<0.000000e+00> : vector<32x128xf32>
    %130 = tpu.matmul %127, %129, %cst_90 {dimension_numbers = #tpu.dot_dimension_numbers<[1], [0], [0], [1], [0, 0, 1, 1], [], []>} : vector<32x64xbf16>, vector<64x128xbf16>, vector<32x128xf32> -> vector<32x128xf32>
    %131 = arith.addf %126, %130 : vector<32x128xf32>
    %c64_91 = arith.constant 64 : index
    %c0_92 = arith.constant 0 : index
    %132 = vector.load %arg20[%c64_91, %c0_92] : memref<128x64xbf16, #tpu.memory_space<vmem>>, vector<32x64xbf16>
    %c0_93 = arith.constant 0 : index
    %c128_94 = arith.constant 128 : index
    %c0_95 = arith.constant 0 : index
    %133 = vector.load %arg8[%c0_93, %c128_94, %c0_95] : memref<1x256x128xbf16, #tpu.memory_space<vmem>>, vector<1x64x128xbf16>
    %134 = vector.shape_cast %133 : vector<1x64x128xbf16> to vector<64x128xbf16>
    %cst_96 = arith.constant dense<0.000000e+00> : vector<32x128xf32>
    %135 = tpu.matmul %132, %134, %cst_96 {dimension_numbers = #tpu.dot_dimension_numbers<[1], [0], [0], [1], [0, 0, 1, 1], [], []>} : vector<32x64xbf16>, vector<64x128xbf16>, vector<32x128xf32> -> vector<32x128xf32>
    %136 = arith.addf %131, %135 : vector<32x128xf32>
    %c96_97 = arith.constant 96 : index
    %c0_98 = arith.constant 0 : index
    %137 = vector.load %arg20[%c96_97, %c0_98] : memref<128x64xbf16, #tpu.memory_space<vmem>>, vector<32x64xbf16>
    %c0_99 = arith.constant 0 : index
    %c192_100 = arith.constant 192 : index
    %c0_101 = arith.constant 0 : index
    %138 = vector.load %arg8[%c0_99, %c192_100, %c0_101] : memref<1x256x128xbf16, #tpu.memory_space<vmem>>, vector<1x64x128xbf16>
    %139 = vector.shape_cast %138 : vector<1x64x128xbf16> to vector<64x128xbf16>
    %cst_102 = arith.constant dense<0.000000e+00> : vector<32x128xf32>
    %140 = tpu.matmul %137, %139, %cst_102 {dimension_numbers = #tpu.dot_dimension_numbers<[1], [0], [0], [1], [0, 0, 1, 1], [], []>} : vector<32x64xbf16>, vector<64x128xbf16>, vector<32x128xf32> -> vector<32x128xf32>
    %141 = arith.addf %136, %140 : vector<32x128xf32>
    %c0_103 = arith.constant 0 : index
    %c0_104 = arith.constant 0 : index
    %c0_105 = arith.constant 0 : index
    %142 = vector.load %arg9[%c0_103, %c0_104, %c0_105] : memref<1x1x128xf32, #tpu.memory_space<vmem>>, vector<1x1x128xf32>
    %143 = vector.shape_cast %142 : vector<1x1x128xf32> to vector<1x128xf32>
    %144 = vector.broadcast %143 : vector<1x128xf32> to vector<32x128xf32>
    %145 = arith.addf %141, %144 : vector<32x128xf32>
    %cst_106 = arith.constant 0.000000e+00 : f32
    %146 = vector.broadcast %cst_106 : f32 to vector<32x128xf32>
    %147 = arith.maximumf %145, %146 : vector<32x128xf32>
    %148 = arith.truncf %147 : vector<32x128xf32> to vector<32x128xbf16>
    %c0_107 = arith.constant 0 : index
    %c0_108 = arith.constant 0 : index
    %149 = vector.load %arg21[%c0_107, %c0_108] : memref<32x128xbf16, #tpu.memory_space<vmem>>, vector<32x128xbf16>
    tpu.vector_store %arg21[%c0_107, %c0_108], %148 {strides = array<i32>} : memref<32x128xbf16, #tpu.memory_space<vmem>>, vector<32x128xbf16>,
    %cst_109 = arith.constant 0.000000e+00 : f32
    %150 = vector.broadcast %cst_109 : f32 to vector<8x256xf32>
    %c0_110 = arith.constant 0 : index
    %c0_111 = arith.constant 0 : index
    %151 = vector.load %arg21[%c0_110, %c0_111] : memref<32x128xbf16, #tpu.memory_space<vmem>>, vector<8x128xbf16>
    %c0_112 = arith.constant 0 : index
    %c0_113 = arith.constant 0 : index
    %c0_114 = arith.constant 0 : index
    %152 = vector.load %arg10[%c0_112, %c0_113, %c0_114] : memref<1x512x256xbf16, #tpu.memory_space<vmem>>, vector<1x128x256xbf16>
    %153 = vector.shape_cast %152 : vector<1x128x256xbf16> to vector<128x256xbf16>
    %cst_115 = arith.constant dense<0.000000e+00> : vector<8x256xf32>
    %154 = tpu.matmul %151, %153, %cst_115 {dimension_numbers = #tpu.dot_dimension_numbers<[1], [0], [0], [1], [0, 0, 1, 1], [], []>} : vector<8x128xbf16>, vector<128x256xbf16>, vector<8x256xf32> -> vector<8x256xf32>
    %155 = arith.addf %150, %154 : vector<8x256xf32>
    %c8 = arith.constant 8 : index
    %c0_116 = arith.constant 0 : index
    %156 = vector.load %arg21[%c8, %c0_116] : memref<32x128xbf16, #tpu.memory_space<vmem>>, vector<8x128xbf16>
    %c0_117 = arith.constant 0 : index
    %c128_118 = arith.constant 128 : index
    %c0_119 = arith.constant 0 : index
    %157 = vector.load %arg10[%c0_117, %c128_118, %c0_119] : memref<1x512x256xbf16, #tpu.memory_space<vmem>>, vector<1x128x256xbf16>
    %158 = vector.shape_cast %157 : vector<1x128x256xbf16> to vector<128x256xbf16>
    %cst_120 = arith.constant dense<0.000000e+00> : vector<8x256xf32>
    %159 = tpu.matmul %156, %158, %cst_120 {dimension_numbers = #tpu.dot_dimension_numbers<[1], [0], [0], [1], [0, 0, 1, 1], [], []>} : vector<8x128xbf16>, vector<128x256xbf16>, vector<8x256xf32> -> vector<8x256xf32>
    %160 = arith.addf %155, %159 : vector<8x256xf32>
    %c16 = arith.constant 16 : index
    %c0_121 = arith.constant 0 : index
    %161 = vector.load %arg21[%c16, %c0_121] : memref<32x128xbf16, #tpu.memory_space<vmem>>, vector<8x128xbf16>
    %c0_122 = arith.constant 0 : index
    %c256_123 = arith.constant 256 : index
    %c0_124 = arith.constant 0 : index
    %162 = vector.load %arg10[%c0_122, %c256_123, %c0_124] : memref<1x512x256xbf16, #tpu.memory_space<vmem>>, vector<1x128x256xbf16>
    %163 = vector.shape_cast %162 : vector<1x128x256xbf16> to vector<128x256xbf16>
    %cst_125 = arith.constant dense<0.000000e+00> : vector<8x256xf32>
    %164 = tpu.matmul %161, %163, %cst_125 {dimension_numbers = #tpu.dot_dimension_numbers<[1], [0], [0], [1], [0, 0, 1, 1], [], []>} : vector<8x128xbf16>, vector<128x256xbf16>, vector<8x256xf32> -> vector<8x256xf32>
    %165 = arith.addf %160, %164 : vector<8x256xf32>
    %c24 = arith.constant 24 : index
    %c0_126 = arith.constant 0 : index
    %166 = vector.load %arg21[%c24, %c0_126] : memref<32x128xbf16, #tpu.memory_space<vmem>>, vector<8x128xbf16>
    %c0_127 = arith.constant 0 : index
    %c384_128 = arith.constant 384 : index
    %c0_129 = arith.constant 0 : index
    %167 = vector.load %arg10[%c0_127, %c384_128, %c0_129] : memref<1x512x256xbf16, #tpu.memory_space<vmem>>, vector<1x128x256xbf16>
    %168 = vector.shape_cast %167 : vector<1x128x256xbf16> to vector<128x256xbf16>
    %cst_130 = arith.constant dense<0.000000e+00> : vector<8x256xf32>
    %169 = tpu.matmul %166, %168, %cst_130 {dimension_numbers = #tpu.dot_dimension_numbers<[1], [0], [0], [1], [0, 0, 1, 1], [], []>} : vector<8x128xbf16>, vector<128x256xbf16>, vector<8x256xf32> -> vector<8x256xf32>
    %170 = arith.addf %165, %169 : vector<8x256xf32>
    %c0_131 = arith.constant 0 : index
    %c0_132 = arith.constant 0 : index
    %c0_133 = arith.constant 0 : index
    %171 = vector.load %arg11[%c0_131, %c0_132, %c0_133] : memref<1x1x256xf32, #tpu.memory_space<vmem>>, vector<1x1x256xf32>
    %172 = vector.shape_cast %171 : vector<1x1x256xf32> to vector<1x256xf32>
    %173 = vector.broadcast %172 : vector<1x256xf32> to vector<8x256xf32>
    %174 = arith.addf %170, %173 : vector<8x256xf32>
    %cst_134 = arith.constant 0.000000e+00 : f32
    %175 = vector.broadcast %cst_134 : f32 to vector<8x256xf32>
    %176 = arith.maximumf %174, %175 : vector<8x256xf32>
    %177 = arith.truncf %176 : vector<8x256xf32> to vector<8x256xbf16>
    %c0_135 = arith.constant 0 : index
    %c0_136 = arith.constant 0 : index
    %178 = vector.load %arg22[%c0_135, %c0_136] : memref<8x256xbf16, #tpu.memory_space<vmem>>, vector<8x256xbf16>
    tpu.vector_store %arg22[%c0_135, %c0_136], %177 {strides = array<i32>} : memref<8x256xbf16, #tpu.memory_space<vmem>>, vector<8x256xbf16>,
    %cst_137 = arith.constant 0.000000e+00 : f32
    %179 = vector.broadcast %cst_137 : f32 to vector<2x256xf32>
    %c0_138 = arith.constant 0 : index
    %c0_139 = arith.constant 0 : index
    %180 = vector.load %arg22[%c0_138, %c0_139] : memref<8x256xbf16, #tpu.memory_space<vmem>>, vector<2x256xbf16>
    %c0_140 = arith.constant 0 : index
    %c0_141 = arith.constant 0 : index
    %c0_142 = arith.constant 0 : index
    %181 = vector.load %arg12[%c0_140, %c0_141, %c0_142] : memref<1x1024x256xbf16, #tpu.memory_space<vmem>>, vector<1x256x256xbf16>
    %182 = vector.shape_cast %181 : vector<1x256x256xbf16> to vector<256x256xbf16>
    %cst_143 = arith.constant dense<0.000000e+00> : vector<2x256xf32>
    %183 = tpu.matmul %180, %182, %cst_143 {dimension_numbers = #tpu.dot_dimension_numbers<[1], [0], [0], [1], [0, 0, 1, 1], [], []>} : vector<2x256xbf16>, vector<256x256xbf16>, vector<2x256xf32> -> vector<2x256xf32>
    %184 = arith.addf %179, %183 : vector<2x256xf32>
    %c2 = arith.constant 2 : index
    %c0_144 = arith.constant 0 : index
    %185 = vector.load %arg22[%c2, %c0_144] : memref<8x256xbf16, #tpu.memory_space<vmem>>, vector<2x256xbf16>
    %c0_145 = arith.constant 0 : index
    %c256_146 = arith.constant 256 : index
    %c0_147 = arith.constant 0 : index
    %186 = vector.load %arg12[%c0_145, %c256_146, %c0_147] : memref<1x1024x256xbf16, #tpu.memory_space<vmem>>, vector<1x256x256xbf16>
    %187 = vector.shape_cast %186 : vector<1x256x256xbf16> to vector<256x256xbf16>
    %cst_148 = arith.constant dense<0.000000e+00> : vector<2x256xf32>
    %188 = tpu.matmul %185, %187, %cst_148 {dimension_numbers = #tpu.dot_dimension_numbers<[1], [0], [0], [1], [0, 0, 1, 1], [], []>} : vector<2x256xbf16>, vector<256x256xbf16>, vector<2x256xf32> -> vector<2x256xf32>
    %189 = arith.addf %184, %188 : vector<2x256xf32>
    %c4 = arith.constant 4 : index
    %c0_149 = arith.constant 0 : index
    %190 = vector.load %arg22[%c4, %c0_149] : memref<8x256xbf16, #tpu.memory_space<vmem>>, vector<2x256xbf16>
    %c0_150 = arith.constant 0 : index
    %c512_151 = arith.constant 512 : index
    %c0_152 = arith.constant 0 : index
    %191 = vector.load %arg12[%c0_150, %c512_151, %c0_152] : memref<1x1024x256xbf16, #tpu.memory_space<vmem>>, vector<1x256x256xbf16>
    %192 = vector.shape_cast %191 : vector<1x256x256xbf16> to vector<256x256xbf16>
    %cst_153 = arith.constant dense<0.000000e+00> : vector<2x256xf32>
    %193 = tpu.matmul %190, %192, %cst_153 {dimension_numbers = #tpu.dot_dimension_numbers<[1], [0], [0], [1], [0, 0, 1, 1], [], []>} : vector<2x256xbf16>, vector<256x256xbf16>, vector<2x256xf32> -> vector<2x256xf32>
    %194 = arith.addf %189, %193 : vector<2x256xf32>
    %c6 = arith.constant 6 : index
    %c0_154 = arith.constant 0 : index
    %195 = vector.load %arg22[%c6, %c0_154] : memref<8x256xbf16, #tpu.memory_space<vmem>>, vector<2x256xbf16>
    %c0_155 = arith.constant 0 : index
    %c768_156 = arith.constant 768 : index
    %c0_157 = arith.constant 0 : index
    %196 = vector.load %arg12[%c0_155, %c768_156, %c0_157] : memref<1x1024x256xbf16, #tpu.memory_space<vmem>>, vector<1x256x256xbf16>
    %197 = vector.shape_cast %196 : vector<1x256x256xbf16> to vector<256x256xbf16>
    %cst_158 = arith.constant dense<0.000000e+00> : vector<2x256xf32>
    %198 = tpu.matmul %195, %197, %cst_158 {dimension_numbers = #tpu.dot_dimension_numbers<[1], [0], [0], [1], [0, 0, 1, 1], [], []>} : vector<2x256xbf16>, vector<256x256xbf16>, vector<2x256xf32> -> vector<2x256xf32>
    %199 = arith.addf %194, %198 : vector<2x256xf32>
    %c0_159 = arith.constant 0 : index
    %c0_160 = arith.constant 0 : index
    %c0_161 = arith.constant 0 : index
    %200 = vector.load %arg13[%c0_159, %c0_160, %c0_161] : memref<1x1x256xf32, #tpu.memory_space<vmem>>, vector<1x1x256xf32>
    %201 = vector.shape_cast %200 : vector<1x1x256xf32> to vector<1x256xf32>
    %202 = vector.broadcast %201 : vector<1x256xf32> to vector<2x256xf32>
    %203 = arith.addf %199, %202 : vector<2x256xf32>
    %204 = arith.truncf %203 : vector<2x256xf32> to vector<2x256xbf16>
    %c0_162 = arith.constant 0 : index
    %c0_163 = arith.constant 0 : index
    %c0_164 = arith.constant 0 : index
    %205 = vector.load %arg14[%c0_162, %c0_163, %c0_164] : memref<1x256x256xbf16, #tpu.memory_space<vmem>>, vector<1x256x256xbf16>
    %206 = vector.shape_cast %205 : vector<1x256x256xbf16> to vector<256x256xbf16>
    %cst_165 = arith.constant dense<0.000000e+00> : vector<2x256xf32>
    %207 = tpu.matmul %204, %206, %cst_165 {dimension_numbers = #tpu.dot_dimension_numbers<[1], [0], [0], [1], [0, 0, 1, 1], [], []>} : vector<2x256xbf16>, vector<256x256xbf16>, vector<2x256xf32> -> vector<2x256xf32>
    %c0_166 = arith.constant 0 : index
    %c0_167 = arith.constant 0 : index
    %208 = vector.load %arg3[%c0_166, %c0_167] : memref<2x8xbf16, #tpu.memory_space<vmem>>, vector<2x8xbf16>
    %c0_168 = arith.constant 0 : index
    %c0_169 = arith.constant 0 : index
    %c0_170 = arith.constant 0 : index
    %209 = vector.load %arg15[%c0_168, %c0_169, %c0_170] : memref<1x8x256xbf16, #tpu.memory_space<vmem>>, vector<1x8x256xbf16>
    %210 = vector.shape_cast %209 : vector<1x8x256xbf16> to vector<8x256xbf16>
    %cst_171 = arith.constant dense<0.000000e+00> : vector<2x256xf32>
    %211 = tpu.matmul %208, %210, %cst_171 {dimension_numbers = #tpu.dot_dimension_numbers<[1], [0], [0], [1], [0, 0, 1, 1], [], []>} : vector<2x8xbf16>, vector<8x256xbf16>, vector<2x256xf32> -> vector<2x256xf32>
    %212 = arith.addf %207, %211 : vector<2x256xf32>
    %c0_172 = arith.constant 0 : index
    %c0_173 = arith.constant 0 : index
    %c0_174 = arith.constant 0 : index
    %213 = vector.load %arg16[%c0_172, %c0_173, %c0_174] : memref<1x1x256xf32, #tpu.memory_space<vmem>>, vector<1x1x256xf32>
    %214 = vector.shape_cast %213 : vector<1x1x256xf32> to vector<1x256xf32>
    %215 = vector.broadcast %214 : vector<1x256xf32> to vector<2x256xf32>
    %216 = arith.addf %212, %215 : vector<2x256xf32>
    %cst_175 = arith.constant 0.000000e+00 : f32
    %217 = vector.broadcast %cst_175 : f32 to vector<2x256xf32>
    %218 = arith.maximumf %216, %217 : vector<2x256xf32>
    %219 = arith.truncf %218 : vector<2x256xf32> to vector<2x256xbf16>
    %c0_176 = arith.constant 0 : index
    %c0_177 = arith.constant 0 : index
    %c0_178 = arith.constant 0 : index
    %220 = vector.load %arg17[%c0_176, %c0_177, %c0_178] : memref<1x256x128xbf16, #tpu.memory_space<vmem>>, vector<1x256x128xbf16>
    %221 = vector.shape_cast %220 : vector<1x256x128xbf16> to vector<256x128xbf16>
    %cst_179 = arith.constant dense<0.000000e+00> : vector<2x128xf32>
    %222 = tpu.matmul %219, %221, %cst_179 {dimension_numbers = #tpu.dot_dimension_numbers<[1], [0], [0], [1], [0, 0, 1, 1], [], []>} : vector<2x256xbf16>, vector<256x128xbf16>, vector<2x128xf32> -> vector<2x128xf32>
    %c0_180 = arith.constant 0 : index
    %c0_181 = arith.constant 0 : index
    %c0_182 = arith.constant 0 : index
    %223 = vector.load %arg18[%c0_180, %c0_181, %c0_182] : memref<1x1x128xf32, #tpu.memory_space<vmem>>, vector<1x1x128xf32>
    %224 = vector.shape_cast %223 : vector<1x1x128xf32> to vector<1x128xf32>
    %225 = vector.broadcast %224 : vector<1x128xf32> to vector<2x128xf32>
    %226 = arith.addf %222, %225 : vector<2x128xf32>
    %c0_183 = arith.constant 0 : index
    %c0_184 = arith.constant 0 : index
    %c0_185 = arith.constant 0 : index
    %227 = vector.load %arg19[%c0_183, %c0_184, %c0_185] : memref<1x2x128xf32, #tpu.memory_space<vmem>>, vector<1x2x128xf32>
    %228 = vector.shape_cast %227 : vector<1x2x128xf32> to vector<2x128xf32>
    %229 = vector.shape_cast %226 : vector<2x128xf32> to vector<1x2x128xf32>
    tpu.vector_store %arg19[%c0_183, %c0_184, %c0_185], %229 {strides = array<i32>} : memref<1x2x128xf32, #tpu.memory_space<vmem>>, vector<1x2x128xf32>,
    return
  }
  func.func @transform_0(%arg0: i32, %arg1: i32) -> (i32, i32, i32) {
    %c0_i32 = arith.constant 0 : i32
    %c0_i32_0 = arith.constant 0 : i32
    %c0_i32_1 = arith.constant 0 : i32
    return %arg0, %c0_i32, %c0_i32_0 : i32, i32, i32
  }
  func.func @transform_1(%arg0: i32, %arg1: i32) -> (i32, i32) {
    %c0_i32 = arith.constant 0 : i32
    %c0_i32_0 = arith.constant 0 : i32
    return %arg0, %c0_i32 : i32, i32
  }
  func.func @transform_2(%arg0: i32, %arg1: i32) -> (i32, i32, i32) {
    %c0_i32 = arith.constant 0 : i32
    %c0_i32_0 = arith.constant 0 : i32
    %c0_i32_1 = arith.constant 0 : i32
    return %arg1, %c0_i32, %c0_i32_0 : i32, i32, i32
  }
  func.func @transform_3(%arg0: i32, %arg1: i32) -> (i32, i32, i32) {
    %c0_i32 = arith.constant 0 : i32
    %c0_i32_0 = arith.constant 0 : i32
    %c0_i32_1 = arith.constant 0 : i32
    return %arg1, %c0_i32, %c0_i32_0 : i32, i32, i32
  }
  func.func @transform_4(%arg0: i32, %arg1: i32) -> (i32, i32, i32) {
    %c0_i32 = arith.constant 0 : i32
    %c0_i32_0 = arith.constant 0 : i32
    %c0_i32_1 = arith.constant 0 : i32
    return %arg1, %c0_i32, %c0_i32_0 : i32, i32, i32
  }
  func.func @transform_5(%arg0: i32, %arg1: i32) -> (i32, i32, i32) {
    %c0_i32 = arith.constant 0 : i32
    %c0_i32_0 = arith.constant 0 : i32
    %c0_i32_1 = arith.constant 0 : i32
    return %arg1, %c0_i32, %c0_i32_0 : i32, i32, i32
  }
  func.func @transform_6(%arg0: i32, %arg1: i32) -> (i32, i32, i32) {
    %c0_i32 = arith.constant 0 : i32
    %c0_i32_0 = arith.constant 0 : i32
    %c0_i32_1 = arith.constant 0 : i32
    return %arg1, %c0_i32, %c0_i32_0 : i32, i32, i32
  }
  func.func @transform_7(%arg0: i32, %arg1: i32) -> (i32, i32, i32) {
    %c0_i32 = arith.constant 0 : i32
    %c0_i32_0 = arith.constant 0 : i32
    %c0_i32_1 = arith.constant 0 : i32
    return %arg1, %c0_i32, %c0_i32_0 : i32, i32, i32
  }
  func.func @transform_8(%arg0: i32, %arg1: i32) -> (i32, i32, i32) {
    %c0_i32 = arith.constant 0 : i32
    %c0_i32_0 = arith.constant 0 : i32
    %c0_i32_1 = arith.constant 0 : i32
    return %arg1, %c0_i32, %c0_i32_0 : i32, i32, i32
  }
  func.func @transform_9(%arg0: i32, %arg1: i32) -> (i32, i32, i32) {
    %c0_i32 = arith.constant 0 : i32
    %c0_i32_0 = arith.constant 0 : i32
    %c0_i32_1 = arith.constant 0 : i32
    return %arg1, %c0_i32, %c0_i32_0 : i32, i32, i32
  }
  func.func @transform_10(%arg0: i32, %arg1: i32) -> (i32, i32, i32) {
    %c0_i32 = arith.constant 0 : i32
    %c0_i32_0 = arith.constant 0 : i32
    %c0_i32_1 = arith.constant 0 : i32
    return %arg1, %c0_i32, %c0_i32_0 : i32, i32, i32
  }
  func.func @transform_11(%arg0: i32, %arg1: i32) -> (i32, i32, i32) {
    %c0_i32 = arith.constant 0 : i32
    %c0_i32_0 = arith.constant 0 : i32
    %c0_i32_1 = arith.constant 0 : i32
    return %arg1, %c0_i32, %c0_i32_0 : i32, i32, i32
  }
  func.func @transform_12(%arg0: i32, %arg1: i32) -> (i32, i32, i32) {
    %c0_i32 = arith.constant 0 : i32
    %c0_i32_0 = arith.constant 0 : i32
    %c0_i32_1 = arith.constant 0 : i32
    return %arg1, %c0_i32, %c0_i32_0 : i32, i32, i32
  }
  func.func @transform_13(%arg0: i32, %arg1: i32) -> (i32, i32, i32) {
    %c0_i32 = arith.constant 0 : i32
    %c0_i32_0 = arith.constant 0 : i32
    %c0_i32_1 = arith.constant 0 : i32
    return %arg1, %c0_i32, %c0_i32_0 : i32, i32, i32
  }
  func.func @transform_14(%arg0: i32, %arg1: i32) -> (i32, i32, i32) {
    %c0_i32 = arith.constant 0 : i32
    %c0_i32_0 = arith.constant 0 : i32
    %c0_i32_1 = arith.constant 0 : i32
    return %arg1, %c0_i32, %c0_i32_0 : i32, i32, i32
  }
  func.func @transform_15(%arg0: i32, %arg1: i32) -> (i32, i32, i32) {
    %c0_i32 = arith.constant 0 : i32
    %c0_i32_0 = arith.constant 0 : i32
    %c0_i32_1 = arith.constant 0 : i32
    return %arg1, %c0_i32, %c0_i32_0 : i32, i32, i32
  }
  func.func @transform_16(%arg0: i32, %arg1: i32) -> (i32, i32, i32) {
    %c0_i32 = arith.constant 0 : i32
    %c0_i32_0 = arith.constant 0 : i32
    %c0_i32_1 = arith.constant 0 : i32
    return %arg1, %c0_i32, %c0_i32_0 : i32, i32, i32
  }
  func.func @transform_17(%arg0: i32, %arg1: i32) -> (i32, i32, i32) {
    %c0_i32 = arith.constant 0 : i32
    %c0_i32_0 = arith.constant 0 : i32
    return %arg1, %arg0, %c0_i32 : i32, i32, i32
  }
}

</mosaic_0001>

<bundles_post_ra>
// kernel: distill_qnet_forward.1
= control target key start
LH: loop header
LB: loop body
LE: loop exit
PB: predicated region body
PF: predicated region fallthrough
CT: control target
= control target key end

     0   :  { %s8859_s24 = smov 0   ;;  %s8861_s25 = smov 0   ;;  %s10148_s0 = inlined_call_operand.vmem [shape: bf16[1,1152,64], index: 0, kind: input, shape index: {}]   ;;  %s10149_s1 = inlined_call_operand.vmem [shape: bf16[2,8], index: 1, kind: input, shape index: {}]   ;;  %s10150_s2 = inlined_call_operand.vmem [shape: bf16[2,64,32], index: 2, kind: input, shape index: {}]   ;;  %s10151_s3 = inlined_call_operand.vmem [shape: f32[2,1,32], index: 3, kind: input, shape index: {}]   ;;  %s10152_s4 = inlined_call_operand.vmem [shape: bf16[2,288,64], index: 4, kind: input, shape index: {}]   ;;  %s10153_s5 = inlined_call_operand.vmem [shape: f32[2,1,64], index: 5, kind: input, shape index: {}]   ;;  %s10154_s6 = inlined_call_operand.vmem [shape: bf16[2,256,128], index: 6, kind: input, shape index: {}]   ;;  %s10155_s7 = inlined_call_operand.vmem [shape: f32[2,1,128], index: 7, kind: input, shape index: {}]   ;;  %s10156_s8 = inlined_call_operand.vmem [shape: bf16[2,512,256], index: 8, kind: input, shape index: {}]   ;;  %s10157_s9 = inlined_call_operand.vmem [shape: f32[2,1,256], index: 9, kind: input, shape index: {}]   ;;  %s10158_s10 = inlined_call_operand.vmem [shape: bf16[2,1024,256], index: 10, kind: input, shape index: {}]   ;;  %s10159_s11 = inlined_call_operand.vmem [shape: f32[2,1,256], index: 11, kind: input, shape index: {}]   ;;  %s10160_s12 = inlined_call_operand.vmem [shape: bf16[2,256,256], index: 12, kind: input, shape index: {}]   ;;  %s10161_s13 = inlined_call_operand.vmem [shape: bf16[2,8,256], index: 13, kind: input, shape index: {}]   ;;  %s10162_s14 = inlined_call_operand.vmem [shape: f32[2,1,256], index: 14, kind: input, shape index: {}]   ;;  %s10163_s15 = inlined_call_operand.vmem [shape: bf16[2,256,128], index: 15, kind: input, shape index: {}]   ;;  %s10164_s16 = inlined_call_operand.vmem [shape: f32[2,1,128], index: 16, kind: input, shape index: {}]   ;;  %s10165_s17 = inlined_call_operand.vmem [shape: f32[2,2,128], index: 17, kind: output, shape index: {}]  }
   0x1   :  { %10169 = sst [smem:[#allocation8_spill]] %s10148_s0  ;;  %s8863_s26 = smov 0  }
   0x2   :  { %10170 = sst [smem:[#allocation9_spill]] %s10149_s1 }
   0x3   :  { %10171 = sst [smem:[#allocation10_spill]] %s10150_s2 }
   0x4 LB: > { %10172 = sst [smem:[#allocation5_spill]] %s8762_s25  ;;  %s36_s27 = sadd.s32 1, %s8762_s25  ;;  %s8766_s26 = sphi %s8863_s26, %s27_s26   ;;  %s8762_s25 = sphi %s8861_s25, %s10180_s25   ;;  %s8758_s24 = sphi %s8859_s24, %s10179_s24  }
   0x5   : > { %10173 = sst [smem:[#allocation6_spill]] %s8766_s26  ;;  %p6929_p0 = scmp.ge.s32.totalorder %s8766_s26, 1 }
   0x6   : > { %p37_p1 = scmp.ge.s32.totalorder %s36_s27, 2  ;;  %p648_p2 = scmp.lt.s32.totalorder %s8766_s26, 3 }
   0x8   : > { %s10182_s27 = smov (%p37_p1, %s36_s27), 0  ;;  %p649_p3 = pnand %p6929_p0, %p648_p2 }
   0x9   : > { %10174 = sst [smem:[#allocation7_spill]] %s10182_s27  ;;  %p777_p4 = scmp.lt.s32.totalorder (!%p649_p3), %s8758_s24, 1 }
   0xa   : > { %652 = sbr.rel (%p649_p3) target bundleno = 2082 (0x822), region = 88  ;;  %s10175_s0 = sld [smem:[#allocation8_spill]] (!%p649_p3) }
   0xb   : > { %s10176_s2 = sld [smem:[#allocation10_spill]] (!%p649_p3) }
   0xf   : > { %vm944_vm0 = vcmask 523264   ;;  %s10184_s24 = smov (!%p777_p4, %s8758_s24), 1  ;;  %vm1311_vm1 = vcmask 261120   ;;  %vm4147_vm2 = vcmask 519168   ;;  %vm6225_vm3 = vcmask 1043456  }
  0x10   : > { %v8263_v0 = vld [vmem:[%s10175_s0] sm:$0xff]   ;;  %s7498_s30 = sshll.u32 %s10184_s24, 5  ;;  %v8273_v5 = vld [vmem:[%s10175_s0 + $0x50] sm:$0xff]   ;;  %v8264_v6 = vld [vmem:[%s10175_s0 + $0x8] sm:$0xff]   ;;  %s7500_s19 = sshll.u32 %s10184_s24, 9  ;;  %vm6221_vm4 = vcmask 64512  }
  0x11   : > { %7789 = vmatprep.mubr.msk.bf16.mxu0 %vm944_vm0, %v8263_v0  ;;  %s8887_s1 = scalar_lea.vmem %s10176_s2, %s7498_s30  ;;  %v8265_v7 = vld [vmem:[%s10175_s0 + $0x10] sm:$0xff]   ;;  %7817 = vmatprep.mubr.msk.bf16.mxu1 %vm944_vm0, %v8273_v5  ;;  %v8274_v8 = vld [vmem:[%s10175_s0 + $0x58] sm:$0xff]   ;;  %v8275_v9 = vld [vmem:[%s10175_s0 + $0x60] sm:$0xff]   ;;  %s8966_s2 = scalar_lea.vmem %s10156_s8, %s7500_s19 }
  0x12   : > { %v8890_v1 = vld [vmem:[%s8887_s1 + $0x18] sm:$0xff]   ;;  %v8260_v2 = vld [vmem:[%s8887_s1 + $0x10] sm:$0xff]   ;;  %v8261_v3 = vld [vmem:[%s8887_s1 + $0x8] sm:$0xff]   ;;  %s7501_s20 = sshll.u32 %s10184_s24, 10  ;;  %s8233_s27 = smul.u32 144, %s10184_s24 }
  0x13   : > { %7781 = vmatprep.subr.bf16.mxu0 %v8890_v1  ;;  %8225 = vmatprep.subr.bf16.mxu1 %v8890_v1  ;;  %v8262_v4 = vld [vmem:[%s8887_s1] sm:$0xff]   ;;  %v8266_v10 = vld [vmem:[%s10175_s0 + $0x18] sm:$0xff]   ;;  %v8276_v11 = vld [vmem:[%s10175_s0 + $0x68] sm:$0xff]   ;;  %s8973_s23 = scalar_lea.vmem %s10158_s10, %s7501_s20  ;;  %s792_s21 = scalar_lea.vmem %s10153_s5, %s10184_s24 }
  0x14   : > { %7782 = vmatpush3.bf16.msra.mxu0 %v8890_v1  ;;  %8229 = vmatpush3.bf16.msra.mxu1 %v8890_v1  ;;  %v8267_v12 = vld [vmem:[%s10175_s0 + $0x20] sm:$0xff]   ;;  %v8277_v13 = vld [vmem:[%s10175_s0 + $0x70] sm:$0xff]   ;;  %v8268_v14 = vld [vmem:[%s10175_s0 + $0x28] sm:$0xff]   ;;  %s8979_s28 = scalar_lea.vmem %s10152_s4, %s8233_s27  ;;  %s8990_s27 = scalar_lea.vmem %s10151_s3, %s10184_s24 }
  0x15   : > { %7783 = vmatprep.subr.bf16.mxu0 %v8260_v2  ;;  %8226 = vmatprep.subr.bf16.mxu1 %v8260_v2  ;;  %v8278_v15 = vld [vmem:[%s10175_s0 + $0x78] sm:$0xff]   ;;  %v8269_v16 = vld [vmem:[%s10175_s0 + $0x30] sm:$0xff]   ;;  %v8271_v18 = vld [vmem:[%s10175_s0 + $0x40] sm:$0xff]   ;;  %s800_s26 = scalar_lea.vmem %s10155_s7, %s10184_s24  ;;  %s7502_s29 = sshll.u32 %s10184_s24, 8 }
  0x16   : > { %v8270_v17 = vld [vmem:[%s10175_s0 + $0x38] sm:$0xff]   ;;  %v8272_v19 = vld [vmem:[%s10175_s0 + $0x48] sm:$0xff]   ;;  %v8280_v21 = vld [vmem:[%s8979_s28] sm:$0xff]   ;;  %s10055_s20 = scalar_lea.vmem %s10160_s12, %s7502_s29  ;;  %s10177_s19 = sld [smem:[#allocation9_spill]] }
  0x17   : > { %v8279_v20 = vld [vmem:[%s8979_s28 + $0x8] sm:$0xff]   ;;  %v8281_v22 = vld [vmem:[%s8979_s28 + $0x18] sm:$0xff]   ;;  %v8282_v23 = vld [vmem:[%s8979_s28 + $0x10] sm:$0xff]  }
  0x18   : > { %7784 = vmatpush3.bf16.msra.mxu0 %v8260_v2  ;;  %8230 = vmatpush3.bf16.msra.mxu1 %v8260_v2  ;;  %v8993_v26 = vld [vmem:[%s8990_s27] ss:$0 sm:$0xff] }
  0x19   : > { %7785 = vmatprep.subr.bf16.mxu0 %v8261_v3  ;;  %8227 = vmatprep.subr.bf16.mxu1 %v8261_v3 }
  0x1c   : > { %7786 = vmatpush3.bf16.msra.mxu0 %v8261_v3  ;;  %8231 = vmatpush3.bf16.msra.mxu1 %v8261_v3 }
  0x1d   : > { %7787 = vmatprep.subr.bf16.mxu0 %v8262_v4  ;;  %8228 = vmatprep.subr.bf16.mxu1 %v8262_v4 }
  0x20   : > { %7788 = vmatpush3.bf16.msra.mxu0 %v8262_v4  ;;  %8232 = vmatpush3.bf16.msra.mxu1 %v8262_v4 }
  0x21   : > { %7805 = vmatprep.subr.bf16.mxu0 %v8890_v1  ;;  %7849 = vmatprep.subr.bf16.mxu1 %v8279_v20 }
  0x23   : > { %7790 = vmatmul.mubr.msk.bf16.vlgmr.msra.gmra.mxu0 %vm944_vm0, %v8264_v6  ;;  %7818 = vmatmul.mubr.msk.bf16.vlgmr.msra.gmra.mxu1 %vm944_vm0, %v8274_v8 }
  0x24   : > { %7806 = vmatpush3.bf16.msra.mxu0 %v8890_v1  ;;  %7793 = vmatprep.mubr.msk.bf16.mxu0 %vm944_vm0, %v8265_v7 }
  0x25   : > { %7807 = vmatprep.subr.bf16.mxu0 %v8260_v2  ;;  %7821 = vmatprep.mubr.msk.bf16.mxu1 %vm944_vm0, %v8275_v9 }
  0x26   : > { %7850 = vmatpush3.bf16.msra.mxu1 %v8279_v20 }
  0x27   : > { %7851 = vmatprep.subr.bf16.mxu1 %v8280_v21 }
  0x28   : > { %7808 = vmatpush3.bf16.msra.mxu0 %v8260_v2 }
  0x29   : > { %7809 = vmatprep.subr.bf16.mxu0 %v8261_v3 }
  0x2a   : > { %7852 = vmatpush3.bf16.msra.mxu1 %v8280_v21 }
  0x2b   : > { %7794 = vmatmul.mubr.msk.bf16.gmra.mxu0 %vm944_vm0, %v8266_v10  ;;  %7822 = vmatmul.mubr.msk.bf16.gmra.mxu1 %vm944_vm0, %v8276_v11 }
  0x2c   : > { %7797 = vmatprep.mubr.msk.bf16.mxu0 %vm944_vm0, %v8267_v12  ;;  %7810 = vmatpush3.bf16.msra.mxu0 %v8261_v3 }
  0x2d   : > { %7811 = vmatprep.subr.bf16.mxu0 %v8262_v4  ;;  %7825 = vmatprep.mubr.msk.bf16.mxu1 %vm944_vm0, %v8277_v13 }
  0x30   : > { %7812 = vmatpush3.bf16.msra.mxu0 %v8262_v4 }
  0x31   : > { %7829 = vmatprep.subr.bf16.mxu0 %v8281_v22 }
  0x33   : > { %7798 = vmatmul.mubr.msk.bf16.gmra.mxu0 %vm944_vm0, %v8268_v14  ;;  %7826 = vmatmul.mubr.msk.bf16.gmra.mxu1 %vm944_vm0, %v8278_v15 }
  0x34   : > { %7801 = vmatprep.mubr.msk.bf16.mxu0 %vm944_vm0, %v8269_v16 }
  0x3b   : > { %7802 = vmatmul.mubr.msk.bf16.gmra.mxu0 %vm944_vm0, %v8270_v17 }
  0x3c   : > { %7813 = vmatprep.mubr.msk.bf16.mxu0 %vm944_vm0, %v8271_v18 }
  0x43   : > { %7814 = vmatmul.mubr.msk.bf16.vlgmr.msra.gmra.mxu0 %vm944_vm0, %v8272_v19 }
  0x44   : > { %7830 = vmatpush3.bf16.msra.mxu0 %v8281_v22 }
  0x45   : > { %7831 = vmatprep.subr.bf16.mxu0 %v8282_v23 }
  0x48   : > { %7832 = vmatpush3.bf16.msra.mxu0 %v8282_v23 }
  0x49   : > { %7869 = vmatprep.subr.bf16.mxu0 %v8890_v1 }
  0xe3   : > { %v7791_v24 = vpop.f32.mrf.mxu0  ;;  %v8995_v28 = vpop.f32.mrf.mxu1 }
  0xe4   : > { %v1012_v31 = vadd.f32 %v7791_v24, %v8993_v26 }
  0xe5   : > { %v1003_v25 = vpop.f32.mrf.mxu0  ;;  %v1224_v36 = vpop.f32.mrf.mxu1 }
  0xe6   : > { %v1004_v29 = vadd.f32 %v8993_v26, %v1003_v25  ;;  %v1068_v39 = vmax.f32 %v1012_v31, 0.0 }
  0xe7   : > { %v7792_v27 = vpop.f32.mrf.mxu0  ;;  %v9001_v44 = vpop.f32.mrf.mxu1 }
  0xe8   : > { %v1015_v30 = vadd.f32 %v7792_v27, %v8993_v26  ;;  %v1066_v37 = vmax.f32 %v1004_v29, 0.0  ;;  %v1225_v27 = vadd.f32 %v8993_v26, %v1224_v36 }
  0xe9   : > { %v1006_v32 = vpop.f32.mrf.mxu0  ;;  %v1227_v52 = vpop.f32.mrf.mxu1 }
  0xea   : > { %v1007_v33 = vadd.f32 %v8993_v26, %v1006_v32  ;;  %v1069_v34 = vmax.f32 %v1015_v30, 0.0  ;;  %v1228_v29 = vadd.f32 %v8993_v26, %v1227_v52  ;;  %v1236_v52 = vadd.f32 %v9001_v44, %v8993_v26 }
  0xeb   : > { %v7795_v35 = vpop.f32.mrf.mxu0  ;;  %v9009_v60 = vpop.f32.mrf.mxu1 }
  0xec   : > { %v1067_v38 = vmax.f32 %v1007_v33, 0.0  ;;  %v1083_v42 = vpack.c.bf16 %v1069_v34, %v1068_v39  ;;  %v1028_v47 = vadd.f32 %v7795_v35, %v8993_v26  ;;  %v1276_v36 = vmax.f32 %v1228_v29, 0.0  ;;  %v8296_v29 = vld [vmem:[%s10175_s0 + $0xe8] sm:$0xff]  }
  0xed   : > { %v1019_v40 = vpop.f32.mrf.mxu0  ;;  %v1240_v4 = vpop.f32.mrf.mxu1 }
  0xee   : > { %v1082_v41 = vpack.c.bf16 %v1067_v38, %v1066_v37  ;;  %v1020_v45 = vadd.f32 %v8993_v26, %v1019_v40  ;;  %v1072_v55 = vmax.f32 %v1028_v47, 0.0  ;;  %v1275_v38 = vmax.f32 %v1225_v27, 0.0  ;;  %v8295_v27 = vld [vmem:[%s10175_s0 + $0xe0] sm:$0xff]  }
  0xef   : > { %v7796_v43 = vpop.f32.mrf.mxu0  ;;  %v7824_v12 = vpop.f32.mrf.mxu1 }
  0xf0   : > { %v1031_v46 = vadd.f32 %v7796_v43, %v8993_v26  ;;  %7853 = vmatprep.mubr.msk.bf16.mxu1 %vm1311_vm1, %v1082_v41  ;;  %v1070_v53 = vmax.f32 %v1020_v45, 0.0  ;;  %v1289_v47 = vpack.c.bf16 %v1276_v36, %v1275_v38  ;;  %v8302_v38 = vld [vmem:[%s10175_s0 + $0x118] sm:$0xff]   ;;  %v8304_v36 = vld [vmem:[%s10175_s0 + $0x128] sm:$0xff]  }
  0xf1   : > { %v1022_v48 = vpop.f32.mrf.mxu0  ;;  %7854 = vmatmul.mubr.msk.bf16.vlgmr.msra.gmra.mxu1 %vm1311_vm1, %v1083_v42  ;;  %v1243_v20 = vpop.f32.mrf.mxu1 }
  0xf2   : > { %v1023_v49 = vadd.f32 %v8993_v26, %v1022_v48  ;;  %v1073_v50 = vmax.f32 %v1031_v46, 0.0  ;;  %v1241_v48 = vadd.f32 %v8993_v26, %v1240_v4 }
  0xf3   : > { %v7799_v51 = vpop.f32.mrf.mxu0  ;;  %v7827_v32 = vpop.f32.mrf.mxu1 }
  0xf4   : > { %v1071_v54 = vmax.f32 %v1023_v49, 0.0  ;;  %v1085_v58 = vpack.c.bf16 %v1073_v50, %v1072_v55  ;;  %v1044_v63 = vadd.f32 %v7799_v51, %v8993_v26  ;;  %v1244_v49 = vadd.f32 %v8993_v26, %v1243_v20  ;;  %v9040_v55 = vld [vmem:[%s8887_s1 + $0x18] sm:$0xff]   ;;  %v8289_v20 = vld [vmem:[%s10175_s0 + $0xb0] sm:$0xff]  }
  0xf5   : > { %v1035_v56 = vpop.f32.mrf.mxu0  ;;  %v1256_v41 = vpop.f32.mrf.mxu1  ;;  %v1233_v50 = vadd.f32 %v8995_v28, %v8993_v26  ;;  %v1278_v28 = vmax.f32 %v1236_v52, 0.0  ;;  %v8315_v52 = vld [vmem:[%s10175_s0 + $0x180] sm:$0xff]  }
  0xf6   : > { %v1084_v57 = vpack.c.bf16 %v1071_v54, %v1070_v53  ;;  %v1036_v61 = vadd.f32 %v8993_v26, %v1035_v56  ;;  %v1076_v7 = vmax.f32 %v1044_v63, 0.0  ;;  %v1279_v54 = vmax.f32 %v1241_v48, 0.0  ;;  %v8311_v48 = vld [vmem:[%s10175_s0 + $0x160] sm:$0xff]  }
  0xf7   : > { %v7800_v59 = vpop.f32.mrf.mxu0  ;;  %v7828_v53 = vpop.f32.mrf.mxu1  ;;  %v1280_v56 = vmax.f32 %v1244_v49, 0.0  ;;  %v8312_v49 = vld [vmem:[%s10175_s0 + $0x168] sm:$0xff]  }
  0xf8   : > { %v1047_v62 = vadd.f32 %v7800_v59, %v8993_v26  ;;  %7857 = vmatprep.mubr.msk.bf16.mxu1 %vm1311_vm1, %v1084_v57  ;;  %v1074_v5 = vmax.f32 %v1036_v61, 0.0  ;;  %v1277_v57 = vmax.f32 %v1233_v50, 0.0  ;;  %v1257_v61 = vadd.f32 %v8993_v26, %v1256_v41  ;;  %v9191_v41 = vld [vmem:[%s8979_s28 + $0x38] sm:$0xff]   ;;  %v8313_v50 = vld [vmem:[%s10175_s0 + $0x170] sm:$0xff]  }
  0xf9   : > { %v1038_v0 = vpop.f32.mrf.mxu0  ;;  %7858 = vmatmul.mubr.msk.bf16.gmra.mxu1 %vm1311_vm1, %v1085_v58  ;;  %v9045_v58 = vld [vmem:[%s8887_s1 + $0x10] sm:$0xff]   ;;  %v1259_v44 = vpop.f32.mrf.mxu1  ;;  %v1291_v59 = vpack.c.bf16 %v1280_v56, %v1279_v54 }
  0xfa   : > { %v1039_v1 = vadd.f32 %v8993_v26, %v1038_v0  ;;  %v1077_v2 = vmax.f32 %v1047_v62, 0.0  ;;  %v1260_v62 = vadd.f32 %v8993_v26, %v1259_v44  ;;  %v1290_v63 = vpack.c.bf16 %v1278_v28, %v1277_v57  ;;  %v8317_v54 = vld [vmem:[%s10175_s0 + $0x190] sm:$0xff]   ;;  %v8318_v57 = vld [vmem:[%s10175_s0 + $0x198] sm:$0xff]   ;;  %v8319_v28 = vld [vmem:[%s10175_s0 + $0x1a0] sm:$0xff]  }
  0xfb   : > { %v7803_v3 = vpop.f32.mrf.mxu0  ;;  %v1249_v0 = vadd.f32 %v9009_v60, %v8993_v26 }
  0xfc   : > { %v1075_v6 = vmax.f32 %v1039_v1, 0.0  ;;  %v1087_v10 = vpack.c.bf16 %v1077_v2, %v1076_v7  ;;  %v1060_v15 = vadd.f32 %v7803_v3, %v8993_v26  ;;  %v1252_v1 = vadd.f32 %v7824_v12, %v8993_v26  ;;  %v9055_v2 = vld [vmem:[%s8887_s1 + $0x8] sm:$0xff]   ;;  %v9062_v7 = vld [vmem:[%s8887_s1] sm:$0xff]   ;;  %s840_s1 = scalar_lea.vmem %s10164_s16, %s10184_s24 }
  0xfd   : > { %v1051_v8 = vpop.f32.mrf.mxu0  ;;  %v1283_v3 = vmax.f32 %v1257_v61, 0.0  ;;  %v1284_v4 = vmax.f32 %v1260_v62, 0.0  ;;  %v8320_v61 = vld [vmem:[%s10175_s0 + $0x1a8] sm:$0xff]   ;;  %v8321_v62 = vld [vmem:[%s10175_s0 + $0x1b0] sm:$0xff]  }
  0xfe   : > { %v1086_v9 = vpack.c.bf16 %v1075_v6, %v1074_v5  ;;  %v1052_v13 = vadd.f32 %v8993_v26, %v1051_v8  ;;  %v1080_v23 = vmax.f32 %v1060_v15, 0.0  ;;  %v1281_v5 = vmax.f32 %v1249_v0, 0.0  ;;  %v8284_v15 = vld [vmem:[%s10175_s0 + $0x88] sm:$0xff]  }
  0xff   : > { %v7804_v11 = vpop.f32.mrf.mxu0  ;;  %v1282_v6 = vmax.f32 %v1252_v1, 0.0  ;;  %v1293_v60 = vpack.c.bf16 %v1284_v4, %v1283_v3  ;;  %v8322_v1 = vld [vmem:[%s10175_s0 + $0x1b8] sm:$0xff]   ;;  %v8323_v3 = vld [vmem:[%s10175_s0 + $0x1c0] sm:$0xff]  }
 0x100   : > { %v1063_v14 = vadd.f32 %v7804_v11, %v8993_v26  ;;  %7861 = vmatprep.mubr.msk.bf16.mxu1 %vm1311_vm1, %v1086_v9  ;;  %v1078_v21 = vmax.f32 %v1052_v13, 0.0  ;;  %v1265_v9 = vadd.f32 %v7827_v32, %v8993_v26  ;;  %v8283_v13 = vld [vmem:[%s10175_s0 + $0x80] sm:$0xff]   ;;  %v8298_v32 = vld [vmem:[%s10175_s0 + $0xf8] sm:$0xff]  }
 0x101   : > { %v1054_v16 = vpop.f32.mrf.mxu0  ;;  %7862 = vmatmul.mubr.msk.bf16.gmra.mxu1 %vm1311_vm1, %v1087_v10  ;;  %v1292_v8 = vpack.c.bf16 %v1282_v6, %v1281_v5  ;;  %v1268_v10 = vadd.f32 %v7828_v53, %v8993_v26  ;;  %v8316_v53 = vld [vmem:[%s10175_s0 + $0x188] sm:$0xff]  }
 0x102   : > { %v1055_v17 = vadd.f32 %v8993_v26, %v1054_v16  ;;  %v1081_v18 = vmax.f32 %v1063_v14, 0.0  ;;  %v1285_v11 = vmax.f32 %v1265_v9, 0.0  ;;  %v8285_v16 = vld [vmem:[%s10175_s0 + $0x90] sm:$0xff]   ;;  %v8324_v6 = vld [vmem:[%s10175_s0 + $0x1c8] sm:$0xff]  }
 0x103   : > { %v7815_v19 = vpop.f32.mrf.mxu0  ;;  %v1286_v12 = vmax.f32 %v1268_v10, 0.0 }
 0x104   : > { %v1079_v22 = vmax.f32 %v1055_v17, 0.0  ;;  %v1089_v30 = vpack.c.bf16 %v1081_v18, %v1080_v23  ;;  %v1217_v35 = vadd.f32 %v7815_v19, %v8993_v26  ;;  %v8286_v17 = vld [vmem:[%s10175_s0 + $0x98] sm:$0xff]   ;;  %v8287_v18 = vld [vmem:[%s10175_s0 + $0xa0] sm:$0xff]   ;;  %v8288_v19 = vld [vmem:[%s10175_s0 + $0xa8] sm:$0xff]  }
 0x105   : > { %v1208_v24 = vpop.f32.mrf.mxu0  ;;  %v1294_v14 = vpack.c.bf16 %v1286_v12, %v1285_v11  ;;  %v8292_v23 = vld [vmem:[%s10175_s0 + $0xc8] sm:$0xff]  }
 0x106   : > { %v1088_v25 = vpack.c.bf16 %v1079_v22, %v1078_v21  ;;  %v1209_v33 = vadd.f32 %v8993_v26, %v1208_v24  ;;  %v1273_v45 = vmax.f32 %v1217_v35, 0.0  ;;  %v8290_v21 = vld [vmem:[%s10175_s0 + $0xb8] sm:$0xff]   ;;  %v8291_v22 = vld [vmem:[%s10175_s0 + $0xc0] sm:$0xff]   ;;  %v8293_v24 = vld [vmem:[%s10175_s0 + $0xd0] sm:$0xff]  }
 0x107   : > { %v7816_v31 = vpop.f32.mrf.mxu0  ;;  %v8301_v35 = vld [vmem:[%s10175_s0 + $0x110] sm:$0xff]  }
 0x108   : > { %v1220_v34 = vadd.f32 %v7816_v31, %v8993_v26  ;;  %7865 = vmatprep.mubr.msk.bf16.mxu1 %vm1311_vm1, %v1088_v25  ;;  %v1271_v42 = vmax.f32 %v1209_v33, 0.0  ;;  %v8294_v25 = vld [vmem:[%s10175_s0 + $0xd8] sm:$0xff]   ;;  %v8327_v31 = vld [vmem:[%s8979_s28 + $0x28] sm:$0xff]   ;;  %v8299_v33 = vld [vmem:[%s10175_s0 + $0x100] sm:$0xff]  }
 0x109   : > { %v1211_v37 = vpop.f32.mrf.mxu0  ;;  %7866 = vmatmul.mubr.msk.bf16.gmra.mxu1 %vm1311_vm1, %v1089_v30  ;;  %v8297_v30 = vld [vmem:[%s10175_s0 + $0xf0] sm:$0xff]   ;;  %7893 = vmatprep.subr.bf16.mxu1 %v8327_v31 }
 0x10a   : > { %v1212_v39 = vadd.f32 %v8993_v26, %v1211_v37  ;;  %v1274_v40 = vmax.f32 %v1220_v34, 0.0  ;;  %7894 = vmatpush3.bf16.msra.mxu1 %v8327_v31  ;;  %v8300_v34 = vld [vmem:[%s10175_s0 + $0x108] sm:$0xff]   ;;  %v8332_v37 = vld [vmem:[%s8979_s28 + $0x20] sm:$0xff]  }
 0x10b   : > { %7895 = vmatprep.subr.bf16.mxu1 %v8332_v37 }
 0x10c   : > { %v1272_v43 = vmax.f32 %v1212_v39, 0.0  ;;  %v1288_v51 = vpack.c.bf16 %v1274_v40, %v1273_v45  ;;  %v8303_v39 = vld [vmem:[%s10175_s0 + $0x120] sm:$0xff]   ;;  %v8305_v40 = vld [vmem:[%s10175_s0 + $0x130] sm:$0xff]   ;;  %v8308_v45 = vld [vmem:[%s10175_s0 + $0x148] sm:$0xff]  }
 0x10e   : > { %v1287_v46 = vpack.c.bf16 %v1272_v43, %v1271_v42  ;;  %7896 = vmatpush3.bf16.msra.mxu1 %v8332_v37  ;;  %v8306_v42 = vld [vmem:[%s10175_s0 + $0x138] sm:$0xff]   ;;  %v8307_v43 = vld [vmem:[%s10175_s0 + $0x140] sm:$0xff]  }
 0x10f   : > { %7937 = vmatprep.subr.bf16.mxu1 %v9191_v41 }
 0x110   : > { %7833 = vmatprep.mubr.msk.bf16.mxu0 %vm1311_vm1, %v1287_v46  ;;  %v8309_v46 = vld [vmem:[%s10175_s0 + $0x150] sm:$0xff]  }
 0x111   : > { %7834 = vmatmul.mubr.msk.bf16.vlgmr.msra.gmra.mxu0 %vm1311_vm1, %v1288_v51  ;;  %v8314_v51 = vld [vmem:[%s10175_s0 + $0x178] sm:$0xff]  }
 0x112   : > { %7870 = vmatpush3.bf16.msra.mxu0 %v9040_v55  ;;  %7837 = vmatprep.mubr.msk.bf16.mxu0 %vm1311_vm1, %v1289_v47  ;;  %v8310_v47 = vld [vmem:[%s10175_s0 + $0x158] sm:$0xff]  }
 0x113   : > { %7871 = vmatprep.subr.bf16.mxu0 %v9045_v58 }
 0x116   : > { %7872 = vmatpush3.bf16.msra.mxu0 %v9045_v58 }
 0x117   : > { %7873 = vmatprep.subr.bf16.mxu0 %v9055_v2 }
 0x119   : > { %7838 = vmatmul.mubr.msk.bf16.gmra.mxu0 %vm1311_vm1, %v1290_v63 }
 0x11a   : > { %7841 = vmatprep.mubr.msk.bf16.mxu0 %vm1311_vm1, %v1291_v59  ;;  %7874 = vmatpush3.bf16.msra.mxu0 %v9055_v2 }
 0x11b   : > { %7875 = vmatprep.subr.bf16.mxu0 %v9062_v7 }
 0x11e   : > { %7876 = vmatpush3.bf16.msra.mxu0 %v9062_v7 }
 0x11f   : > { %7913 = vmatprep.subr.bf16.mxu0 %v9040_v55 }
 0x121   : > { %7842 = vmatmul.mubr.msk.bf16.gmra.mxu0 %vm1311_vm1, %v1292_v8 }
 0x122   : > { %7845 = vmatprep.mubr.msk.bf16.mxu0 %vm1311_vm1, %v1293_v60  ;;  %v8325_v60 = vld [vmem:[%s10175_s0 + $0x1d0] sm:$0xff]  }
 0x129   : > { %7846 = vmatmul.mubr.msk.bf16.gmra.mxu0 %vm1311_vm1, %v1294_v14 }
 0x12a   : > { %7877 = vmatprep.mubr.msk.bf16.mxu0 %vm944_vm0, %v8283_v13 }
 0x131   : > { %7878 = vmatmul.mubr.msk.bf16.vlgmr.msra.gmra.mxu0 %vm944_vm0, %v8284_v15  ;;  %v8326_v15 = vld [vmem:[%s10175_s0 + $0x1d8] sm:$0xff]  }
 0x132   : > { %7914 = vmatpush3.bf16.msra.mxu0 %v9040_v55  ;;  %7881 = vmatprep.mubr.msk.bf16.mxu0 %vm944_vm0, %v8285_v16 }
 0x133   : > { %7915 = vmatprep.subr.bf16.mxu0 %v9045_v58 }
 0x136   : > { %7916 = vmatpush3.bf16.msra.mxu0 %v9045_v58 }
 0x137   : > { %7917 = vmatprep.subr.bf16.mxu0 %v9055_v2 }
 0x139   : > { %7882 = vmatmul.mubr.msk.bf16.gmra.mxu0 %vm944_vm0, %v8286_v17 }
 0x13a   : > { %7885 = vmatprep.mubr.msk.bf16.mxu0 %vm944_vm0, %v8287_v18  ;;  %7918 = vmatpush3.bf16.msra.mxu0 %v9055_v2 }
 0x13b   : > { %7919 = vmatprep.subr.bf16.mxu0 %v9062_v7 }
 0x13e   : > { %7920 = vmatpush3.bf16.msra.mxu0 %v9062_v7 }
 0x13f   : > { %7957 = vmatprep.subr.bf16.mxu0 %v9040_v55 }
 0x141   : > { %7886 = vmatmul.mubr.msk.bf16.gmra.mxu0 %vm944_vm0, %v8288_v19 }
 0x142   : > { %7889 = vmatprep.mubr.msk.bf16.mxu0 %vm944_vm0, %v8289_v20 }
 0x149   : > { %7890 = vmatmul.mubr.msk.bf16.gmra.mxu0 %vm944_vm0, %v8290_v21 }
 0x14a   : > { %7921 = vmatprep.mubr.msk.bf16.mxu0 %vm944_vm0, %v8291_v22 }
 0x151   : > { %7922 = vmatmul.mubr.msk.bf16.vlgmr.msra.gmra.mxu0 %vm944_vm0, %v8292_v23 }
 0x152   : > { %7958 = vmatpush3.bf16.msra.mxu0 %v9040_v55  ;;  %7925 = vmatprep.mubr.msk.bf16.mxu0 %vm944_vm0, %v8293_v24  ;;  %v8329_v24 = vld [vmem:[%s10175_s0 + $0x1e8] sm:$0xff]  }
 0x153   : > { %7959 = vmatprep.subr.bf16.mxu0 %v9045_v58 }
 0x156   : > { %7960 = vmatpush3.bf16.msra.mxu0 %v9045_v58 }
 0x157   : > { %7961 = vmatprep.subr.bf16.mxu0 %v9055_v2 }
 0x159   : > { %7926 = vmatmul.mubr.msk.bf16.gmra.mxu0 %vm944_vm0, %v8294_v25 }
 0x15a   : > { %7929 = vmatprep.mubr.msk.bf16.mxu0 %vm944_vm0, %v8295_v27  ;;  %7962 = vmatpush3.bf16.msra.mxu0 %v9055_v2  ;;  %v8330_v27 = vld [vmem:[%s10175_s0 + $0x1f0] sm:$0xff]  }
 0x15b   : > { %7963 = vmatprep.subr.bf16.mxu0 %v9062_v7 }
 0x15e   : > { %7964 = vmatpush3.bf16.msra.mxu0 %v9062_v7 }
 0x15f   : > { %8001 = vmatprep.subr.bf16.mxu0 %v9040_v55 }
 0x161   : > { %7930 = vmatmul.mubr.msk.bf16.gmra.mxu0 %vm944_vm0, %v8296_v29 }
 0x162   : > { %7933 = vmatprep.mubr.msk.bf16.mxu0 %vm944_vm0, %v8297_v30 }
 0x169   : > { %7934 = vmatmul.mubr.msk.bf16.gmra.mxu0 %vm944_vm0, %v8298_v32 }
 0x16a   : > { %7965 = vmatprep.mubr.msk.bf16.mxu0 %vm944_vm0, %v8299_v33 }
 0x171   : > { %7966 = vmatmul.mubr.msk.bf16.vlgmr.msra.gmra.mxu0 %vm944_vm0, %v8300_v34 }
 0x172   : > { %8002 = vmatpush3.bf16.msra.mxu0 %v9040_v55  ;;  %7969 = vmatprep.mubr.msk.bf16.mxu0 %vm944_vm0, %v8301_v35 }
 0x173   : > { %8003 = vmatprep.subr.bf16.mxu0 %v9045_v58 }
 0x176   : > { %8004 = vmatpush3.bf16.msra.mxu0 %v9045_v58 }
 0x177   : > { %8005 = vmatprep.subr.bf16.mxu0 %v9055_v2 }
 0x179   : > { %7970 = vmatmul.mubr.msk.bf16.gmra.mxu0 %vm944_vm0, %v8302_v38  ;;  %v8333_v38 = vld [vmem:[%s10175_s0 + $0x200] sm:$0xff]  }
 0x17a   : > { %7973 = vmatprep.mubr.msk.bf16.mxu0 %vm944_vm0, %v8303_v39  ;;  %8006 = vmatpush3.bf16.msra.mxu0 %v9055_v2 }
 0x17b   : > { %8007 = vmatprep.subr.bf16.mxu0 %v9062_v7 }
 0x17e   : > { %8008 = vmatpush3.bf16.msra.mxu0 %v9062_v7 }
 0x17f   : > { %8045 = vmatprep.subr.bf16.mxu0 %v9040_v55 }
 0x181   : > { %7974 = vmatmul.mubr.msk.bf16.gmra.mxu0 %vm944_vm0, %v8304_v36 }
 0x182   : > { %7977 = vmatprep.mubr.msk.bf16.mxu0 %vm944_vm0, %v8305_v40 }
 0x189   : > { %7978 = vmatmul.mubr.msk.bf16.gmra.mxu0 %vm944_vm0, %v8306_v42 }
 0x18a   : > { %8009 = vmatprep.mubr.msk.bf16.mxu0 %vm944_vm0, %v8307_v43 }
 0x191   : > { %8010 = vmatmul.mubr.msk.bf16.vlgmr.msra.gmra.mxu0 %vm944_vm0, %v8308_v45 }
 0x192   : > { %8046 = vmatpush3.bf16.msra.mxu0 %v9040_v55  ;;  %8013 = vmatprep.mubr.msk.bf16.mxu0 %vm944_vm0, %v8309_v46 }
 0x193   : > { %8047 = vmatprep.subr.bf16.mxu0 %v9045_v58 }
 0x196   : > { %8048 = vmatpush3.bf16.msra.mxu0 %v9045_v58 }
 0x197   : > { %8049 = vmatprep.subr.bf16.mxu0 %v9055_v2 }
 0x199   : > { %8014 = vmatmul.mubr.msk.bf16.gmra.mxu0 %vm944_vm0, %v8310_v47 }
 0x19a   : > { %8017 = vmatprep.mubr.msk.bf16.mxu0 %vm944_vm0, %v8311_v48  ;;  %8050 = vmatpush3.bf16.msra.mxu0 %v9055_v2  ;;  %v8334_v48 = vld [vmem:[%s10175_s0 + $0x208] sm:$0xff]  }
 0x19b   : > { %8051 = vmatprep.subr.bf16.mxu0 %v9062_v7 }
 0x19e   : > { %8052 = vmatpush3.bf16.msra.mxu0 %v9062_v7 }
 0x19f   : > { %8089 = vmatprep.subr.bf16.mxu0 %v9040_v55 }
 0x1a1   : > { %8018 = vmatmul.mubr.msk.bf16.gmra.mxu0 %vm944_vm0, %v8312_v49 }
 0x1a2   : > { %8021 = vmatprep.mubr.msk.bf16.mxu0 %vm944_vm0, %v8313_v50  ;;  %v8335_v50 = vld [vmem:[%s10175_s0 + $0x210] sm:$0xff]  }
 0x1a9   : > { %8022 = vmatmul.mubr.msk.bf16.gmra.mxu0 %vm944_vm0, %v8314_v51 }
 0x1aa   : > { %8053 = vmatprep.mubr.msk.bf16.mxu0 %vm944_vm0, %v8315_v52 }
 0x1b1   : > { %8054 = vmatmul.mubr.msk.bf16.vlgmr.msra.gmra.mxu0 %vm944_vm0, %v8316_v53  ;;  %v7855_v56 = vpop.f32.mrf.mxu1 }
 0x1b2   : > { %8090 = vmatpush3.bf16.msra.mxu0 %v9040_v55  ;;  %8057 = vmatprep.mubr.msk.bf16.mxu0 %vm944_vm0, %v8317_v54 }
 0x1b3   : > { %8091 = vmatprep.subr.bf16.mxu0 %v9045_v58  ;;  %v1503_v44 = vpop.f32.mrf.mxu1 }
 0x1b5   : > { %v7856_v59 = vpop.f32.mrf.mxu1 }
 0x1b6   : > { %8092 = vmatpush3.bf16.msra.mxu0 %v9045_v58 }
 0x1b7   : > { %8093 = vmatprep.subr.bf16.mxu0 %v9055_v2  ;;  %v9272_v63 = vpop.f32.mrf.mxu1 }
 0x1b9   : > { %8058 = vmatmul.mubr.msk.bf16.gmra.mxu0 %vm944_vm0, %v8318_v57  ;;  %v7859_v0 = vpop.f32.mrf.mxu1 }
 0x1ba   : > { %8061 = vmatprep.mubr.msk.bf16.mxu0 %vm944_vm0, %v8319_v28  ;;  %8094 = vmatpush3.bf16.msra.mxu0 %v9055_v2 }
 0x1bb   : > { %8095 = vmatprep.subr.bf16.mxu0 %v9062_v7  ;;  %v1519_v4 = vpop.f32.mrf.mxu1 }
 0x1bd   : > { %v7860_v5 = vpop.f32.mrf.mxu1 }
 0x1be   : > { %8096 = vmatpush3.bf16.msra.mxu0 %v9062_v7 }
 0x1bf   : > { %8133 = vmatprep.subr.bf16.mxu0 %v9040_v55  ;;  %v9290_v8 = vpop.f32.mrf.mxu1 }
 0x1c1   : > { %8062 = vmatmul.mubr.msk.bf16.gmra.mxu0 %vm944_vm0, %v8320_v61  ;;  %v7863_v13 = vpop.f32.mrf.mxu1 }
 0x1c2   : > { %8065 = vmatprep.mubr.msk.bf16.mxu0 %vm944_vm0, %v8321_v62 }
 0x1c3   : > { %v1535_v18 = vpop.f32.mrf.mxu1 }
 0x1c5   : > { %v7864_v22 = vpop.f32.mrf.mxu1 }
 0x1c7   : > { %v9331_v29 = vpop.f32.mrf.mxu1 }
 0x1c9   : > { %8066 = vmatmul.mubr.msk.bf16.gmra.mxu0 %vm944_vm0, %v8322_v1  ;;  %v7867_v34 = vpop.f32.mrf.mxu1 }
 0x1ca   : > { %8097 = vmatprep.mubr.msk.bf16.mxu0 %vm944_vm0, %v8323_v3 }
 0x1cb   : > { %v1551_v36 = vpop.f32.mrf.mxu1 }
 0x1cd   : > { %v7868_v46 = vpop.f32.mrf.mxu1 }
 0x1d1   : > { %v7835_v9 = vpop.f32.mrf.mxu0  ;;  %8098 = vmatmul.mubr.msk.bf16.vlgmr.msra.gmra.mxu0 %vm944_vm0, %v8324_v6 }
 0x1d2   : > { %v9293_v10 = vadd.f32 %v7855_v56, %v7835_v9  ;;  %8134 = vmatpush3.bf16.msra.mxu0 %v9040_v55  ;;  %8101 = vmatprep.mubr.msk.bf16.mxu0 %vm944_vm0, %v8325_v60  ;;  %v8328_v55 = vld [vmem:[%s10175_s0 + $0x1e0] sm:$0xff]   ;;  %v8336_v56 = vld [vmem:[%s10175_s0 + $0x218] sm:$0xff]  }
 0x1d3   : > { %v1370_v11 = vpop.f32.mrf.mxu0  ;;  %8135 = vmatprep.subr.bf16.mxu0 %v9045_v58 }
 0x1d4   : > { %v9298_v12 = vadd.f32 %v1503_v44, %v1370_v11  ;;  %v8338_v44 = vld [vmem:[%s10175_s0 + $0x220] sm:$0xff]  }
 0x1d5   : > { %v7836_v14 = vpop.f32.mrf.mxu0 }
 0x1d6   : > { %v9303_v16 = vadd.f32 %v7856_v59, %v7836_v14  ;;  %8136 = vmatpush3.bf16.msra.mxu0 %v9045_v58  ;;  %v8342_v14 = vld [vmem:[%s8979_s28 + $0x30] sm:$0xff]  }
 0x1d7   : > { %v9309_v17 = vpop.f32.mrf.mxu0  ;;  %8137 = vmatprep.subr.bf16.mxu0 %v9055_v2 }
 0x1d9   : > { %v7839_v19 = vpop.f32.mrf.mxu0  ;;  %8102 = vmatmul.mubr.msk.bf16.gmra.mxu0 %vm944_vm0, %v8326_v15 }
 0x1da   : > { %v9313_v20 = vadd.f32 %v7859_v0, %v7839_v19  ;;  %8105 = vmatprep.mubr.msk.bf16.mxu0 %vm944_vm0, %v8328_v55  ;;  %8138 = vmatpush3.bf16.msra.mxu0 %v9055_v2 }
 0x1db   : > { %v1386_v21 = vpop.f32.mrf.mxu0  ;;  %8139 = vmatprep.subr.bf16.mxu0 %v9062_v7 }
 0x1dc   : > { %v9318_v58 = vadd.f32 %v1519_v4, %v1386_v21 }
 0x1dd   : > { %v7840_v23 = vpop.f32.mrf.mxu0 }
 0x1de   : > { %v9323_v25 = vadd.f32 %v7860_v5, %v7840_v23  ;;  %8140 = vmatpush3.bf16.msra.mxu0 %v9062_v7  ;;  %v8331_v7 = vld [vmem:[%s10175_s0 + $0x1f8] sm:$0xff]  }
 0x1df   : > { %v9329_v2 = vpop.f32.mrf.mxu0 }
 0x1e1   : > { %v7843_v30 = vpop.f32.mrf.mxu0  ;;  %8106 = vmatmul.mubr.msk.bf16.gmra.mxu0 %vm944_vm0, %v8329_v24 }
 0x1e2   : > { %v9334_v31 = vadd.f32 %v7863_v13, %v7843_v30  ;;  %8109 = vmatprep.mubr.msk.bf16.mxu0 %vm944_vm0, %v8330_v27  ;;  %v8339_v13 = vld [vmem:[%s10175_s0 + $0x228] sm:$0xff]  }
 0x1e3   : > { %v1402_v32 = vpop.f32.mrf.mxu0  ;;  %v9395_v27 = vld [vmem:[%s8979_s28 + $0x48] sm:$0xff]  }
 0x1e4   : > { %v9337_v33 = vadd.f32 %v1535_v18, %v1402_v32  ;;  %v8340_v18 = vld [vmem:[%s10175_s0 + $0x230] sm:$0xff]  }
 0x1e5   : > { %v7844_v35 = vpop.f32.mrf.mxu0 }
 0x1e6   : > { %v9342_v37 = vadd.f32 %v7864_v22, %v7844_v35 }
 0x1e7   : > { %v9347_v39 = vpop.f32.mrf.mxu0 }
 0x1e9   : > { %v7847_v40 = vpop.f32.mrf.mxu0  ;;  %8110 = vmatmul.mubr.msk.bf16.gmra.mxu0 %vm944_vm0, %v8331_v7 }
 0x1ea   : > { %v9350_v42 = vadd.f32 %v7867_v34, %v7847_v40  ;;  %8141 = vmatprep.mubr.msk.bf16.mxu0 %vm944_vm0, %v8333_v38 }
 0x1eb   : > { %v1418_v43 = vpop.f32.mrf.mxu0 }
 0x1ec   : > { %v9353_v45 = vadd.f32 %v1551_v36, %v1418_v43 }
 0x1ed   : > { %v7848_v47 = vpop.f32.mrf.mxu0 }
 0x1ee   : > { %v9358_v49 = vadd.f32 %v7868_v46, %v7848_v47 }
 0x1ef   : > { %v9363_v51 = vpop.f32.mrf.mxu0 }
 0x1f1   : > { %v7879_v52 = vpop.f32.mrf.mxu0  ;;  %8142 = vmatmul.mubr.msk.bf16.vlgmr.msra.gmra.mxu0 %vm944_vm0, %v8334_v48 }
 0x1f2   : > { %8145 = vmatprep.mubr.msk.bf16.mxu0 %vm944_vm0, %v8335_v50  ;;  %v1689_v59 = vadd.f32 %v7879_v52, %v8993_v26 }
 0x1f3   : > { %v1680_v53 = vpop.f32.mrf.mxu0 }
 0x1f4   : > { %v1681_v57 = vadd.f32 %v8993_v26, %v1680_v53  ;;  %v1745_v5 = vmax.f32 %v1689_v59, 0.0 }
 0x1f5   : > { %v7880_v54 = vpop.f32.mrf.mxu0 }
 0x1f6   : > { %v1692_v28 = vadd.f32 %v7880_v54, %v8993_v26  ;;  %v1743_v3 = vmax.f32 %v1681_v57, 0.0 }
 0x1f7   : > { %v1683_v61 = vpop.f32.mrf.mxu0 }
 0x1f8   : > { %v1684_v62 = vadd.f32 %v8993_v26, %v1683_v61  ;;  %v1746_v0 = vmax.f32 %v1692_v28, 0.0 }
 0x1f9   : > { %v7883_v1 = vpop.f32.mrf.mxu0  ;;  %8146 = vmatmul.mubr.msk.bf16.gmra.mxu0 %vm944_vm0, %v8336_v56 }
 0x1fa   : > { %v1744_v4 = vmax.f32 %v1684_v62, 0.0  ;;  %8149 = vmatprep.mubr.msk.bf16.mxu0 %vm944_vm0, %v8338_v44  ;;  %v1760_v9 = vpack.c.bf16 %v1746_v0, %v1745_v5  ;;  %v1705_v19 = vadd.f32 %v7883_v1, %v8993_v26 }
 0x1fb   : > { %v1696_v6 = vpop.f32.mrf.mxu0 }
 0x1fc   : > { %v1759_v60 = vpack.c.bf16 %v1744_v4, %v1743_v3  ;;  %v1697_v15 = vadd.f32 %v8993_v26, %v1696_v6  ;;  %v1749_v34 = vmax.f32 %v1705_v19, 0.0 }
 0x1fd   : > { %v7884_v11 = vpop.f32.mrf.mxu0 }
 0x1fe   : > { %v1708_v55 = vadd.f32 %v7884_v11, %v8993_v26  ;;  %7897 = vmatprep.mubr.msk.bf16.mxu1 %vm1311_vm1, %v1759_v60  ;;  %v1747_v30 = vmax.f32 %v1697_v15, 0.0 }
 0x1ff   : > { %v1699_v21 = vpop.f32.mrf.mxu0  ;;  %7898 = vmatmul.mubr.msk.bf16.vlgmr.msra.gmra.mxu1 %vm1311_vm1, %v1760_v9 }
 0x200   : > { %v1700_v22 = vadd.f32 %v8993_v26, %v1699_v21  ;;  %7938 = vmatpush3.bf16.msra.mxu1 %v9191_v41  ;;  %v1750_v23 = vmax.f32 %v1708_v55, 0.0  ;;  %v8341_v41 = vld [vmem:[%s10175_s0 + $0x238] sm:$0xff]  }
 0x201   : > { %v7887_v24 = vpop.f32.mrf.mxu0  ;;  %8150 = vmatmul.mubr.msk.bf16.gmra.mxu0 %vm944_vm0, %v8339_v13  ;;  %7939 = vmatprep.subr.bf16.mxu1 %v8342_v14 }
 0x202   : > { %v1748_v32 = vmax.f32 %v1700_v22, 0.0  ;;  %8153 = vmatprep.mubr.msk.bf16.mxu0 %vm944_vm0, %v8340_v18  ;;  %v1762_v38 = vpack.c.bf16 %v1750_v23, %v1749_v34  ;;  %v1721_v46 = vadd.f32 %v7887_v24, %v8993_v26 }
 0x203   : > { %v1712_v35 = vpop.f32.mrf.mxu0 }
 0x204   : > { %v1761_v7 = vpack.c.bf16 %v1748_v32, %v1747_v30  ;;  %7940 = vmatpush3.bf16.msra.mxu1 %v8342_v14  ;;  %v1713_v40 = vadd.f32 %v8993_v26, %v1712_v35  ;;  %v1753_v56 = vmax.f32 %v1721_v46, 0.0 }
 0x205   : > { %v7888_v36 = vpop.f32.mrf.mxu0  ;;  %7981 = vmatprep.subr.bf16.mxu1 %v9395_v27 }
 0x206   : > { %v1724_v43 = vadd.f32 %v7888_v36, %v8993_v26  ;;  %7901 = vmatprep.mubr.msk.bf16.mxu1 %vm1311_vm1, %v1761_v7  ;;  %v1751_v53 = vmax.f32 %v1713_v40, 0.0 }
 0x207   : > { %v1715_v47 = vpop.f32.mrf.mxu0  ;;  %7902 = vmatmul.mubr.msk.bf16.gmra.mxu1 %vm1311_vm1, %v1762_v38 }
 0x208   : > { %v1716_v48 = vadd.f32 %v8993_v26, %v1715_v47  ;;  %v1754_v50 = vmax.f32 %v1724_v43, 0.0 }
 0x209   : > { %v7891_v52 = vpop.f32.mrf.mxu0  ;;  %8154 = vmatmul.mubr.msk.bf16.gmra.mxu0 %vm944_vm0, %v8341_v41  ;;  %v8344_v41 = vld [vmem:[%s8979_s28 + $0x40] sm:$0xff]  }
 0x20a   : > { %v1752_v54 = vmax.f32 %v1716_v48, 0.0  ;;  %v1764_v44 = vpack.c.bf16 %v1754_v50, %v1753_v56  ;;  %v1737_v0 = vadd.f32 %v7891_v52, %v8993_v26 }
 0x20b   : > { %v1728_v57 = vpop.f32.mrf.mxu0 }
 0x20c   : > { %v1763_v28 = vpack.c.bf16 %v1752_v54, %v1751_v53  ;;  %v1729_v61 = vadd.f32 %v8993_v26, %v1728_v57  ;;  %v1757_v9 = vmax.f32 %v1737_v0, 0.0  ;;  %v9430_v53 = vld [vmem:[%s8979_s28 + $0x58] sm:$0xff]  }
 0x20d   : > { %v7892_v59 = vpop.f32.mrf.mxu0 }
 0x20e   : > { %v1740_v62 = vadd.f32 %v7892_v59, %v8993_v26  ;;  %7905 = vmatprep.mubr.msk.bf16.mxu1 %vm1311_vm1, %v1763_v28  ;;  %v1755_v6 = vmax.f32 %v1729_v61, 0.0 }
 0x20f   : > { %v1731_v1 = vpop.f32.mrf.mxu0  ;;  %7906 = vmatmul.mubr.msk.bf16.gmra.mxu1 %vm1311_vm1, %v1764_v44 }
 0x210   : > { %v1732_v3 = vadd.f32 %v8993_v26, %v1731_v1  ;;  %v1758_v4 = vmax.f32 %v1740_v62, 0.0 }
 0x211   : > { %v7923_v5 = vpop.f32.mrf.mxu0 }
 0x212   : > { %v1756_v60 = vmax.f32 %v1732_v3, 0.0  ;;  %v1766_v14 = vpack.c.bf16 %v1758_v4, %v1757_v9  ;;  %v2043_v19 = vadd.f32 %v7923_v5, %v8993_v26 }
 0x213   : > { %v2034_v11 = vpop.f32.mrf.mxu0 }
 0x214   : > { %v1765_v13 = vpack.c.bf16 %v1756_v60, %v1755_v6  ;;  %v2035_v55 = vadd.f32 %v8993_v26, %v2034_v11  ;;  %v2099_v34 = vmax.f32 %v2043_v19, 0.0 }
 0x215   : > { %v7924_v15 = vpop.f32.mrf.mxu0 }
 0x216   : > { %v2046_v18 = vadd.f32 %v7924_v15, %v8993_v26  ;;  %7909 = vmatprep.mubr.msk.bf16.mxu1 %vm1311_vm1, %v1765_v13  ;;  %v2097_v30 = vmax.f32 %v2035_v55, 0.0 }
 0x217   : > { %7910 = vmatmul.mubr.msk.bf16.gmra.mxu1 %vm1311_vm1, %v1766_v14  ;;  %v2037_v21 = vpop.f32.mrf.mxu0 }
 0x218   : > { %v2038_v22 = vadd.f32 %v8993_v26, %v2037_v21  ;;  %v2100_v23 = vmax.f32 %v2046_v18, 0.0 }
 0x219   : > { %v7927_v24 = vpop.f32.mrf.mxu0 }
 0x21a   : > { %v2098_v32 = vmax.f32 %v2038_v22, 0.0  ;;  %v2114_v38 = vpack.c.bf16 %v2100_v23, %v2099_v34  ;;  %v2059_v46 = vadd.f32 %v7927_v24, %v8993_v26 }
 0x21b   : > { %v2050_v35 = vpop.f32.mrf.mxu0 }
 0x21c   : > { %v2113_v7 = vpack.c.bf16 %v2098_v32, %v2097_v30  ;;  %v2051_v40 = vadd.f32 %v8993_v26, %v2050_v35  ;;  %v2103_v57 = vmax.f32 %v2059_v46, 0.0 }
 0x21d   : > { %v7928_v36 = vpop.f32.mrf.mxu0 }
 0x21e   : > { %v2062_v43 = vadd.f32 %v7928_v36, %v8993_v26  ;;  %7941 = vmatprep.mubr.msk.bf16.mxu1 %vm1311_vm1, %v2113_v7  ;;  %v2101_v54 = vmax.f32 %v2051_v40, 0.0 }
 0x21f   : > { %v2053_v47 = vpop.f32.mrf.mxu0  ;;  %7942 = vmatmul.mubr.msk.bf16.vlgmr.msra.gmra.mxu1 %vm1311_vm1, %v2114_v38 }
 0x220   : > { %v2054_v48 = vadd.f32 %v8993_v26, %v2053_v47  ;;  %7982 = vmatpush3.bf16.msra.mxu1 %v9395_v27  ;;  %v2104_v50 = vmax.f32 %v2062_v43, 0.0 }
 0x221   : > { %v7931_v52 = vpop.f32.mrf.mxu0  ;;  %7983 = vmatprep.subr.bf16.mxu1 %v8344_v41 }
 0x222   : > { %v2102_v56 = vmax.f32 %v2054_v48, 0.0  ;;  %v2116_v59 = vpack.c.bf16 %v2104_v50, %v2103_v57  ;;  %v2075_v27 = vadd.f32 %v7931_v52, %v8993_v26 }
 0x223   : > { %v2066_v28 = vpop.f32.mrf.mxu0 }
 0x224   : > { %v2115_v44 = vpack.c.bf16 %v2102_v56, %v2101_v54  ;;  %7984 = vmatpush3.bf16.msra.mxu1 %v8344_v41  ;;  %v2067_v62 = vadd.f32 %v8993_v26, %v2066_v28  ;;  %v2107_v9 = vmax.f32 %v2075_v27, 0.0 }
 0x225   : > { %v7932_v61 = vpop.f32.mrf.mxu0  ;;  %8025 = vmatprep.subr.bf16.mxu1 %v9430_v53 }
 0x226   : > { %v2078_v0 = vadd.f32 %v7932_v61, %v8993_v26  ;;  %7945 = vmatprep.mubr.msk.bf16.mxu1 %vm1311_vm1, %v2115_v44  ;;  %v2105_v6 = vmax.f32 %v2067_v62, 0.0  ;;  %v8346_v61 = vld [vmem:[%s8979_s28 + $0x50] sm:$0xff]  }
 0x227   : > { %v2069_v1 = vpop.f32.mrf.mxu0  ;;  %7946 = vmatmul.mubr.msk.bf16.gmra.mxu1 %vm1311_vm1, %v2116_v59 }
 0x228   : > { %v2070_v3 = vadd.f32 %v8993_v26, %v2069_v1  ;;  %v2108_v4 = vmax.f32 %v2078_v0, 0.0 }
 0x229   : > { %v7935_v5 = vpop.f32.mrf.mxu0 }
 0x22a   : > { %v2106_v60 = vmax.f32 %v2070_v3, 0.0  ;;  %v2118_v14 = vpack.c.bf16 %v2108_v4, %v2107_v9  ;;  %v2091_v19 = vadd.f32 %v7935_v5, %v8993_v26 }
 0x22b   : > { %v2082_v11 = vpop.f32.mrf.mxu0 }
 0x22c   : > { %v2117_v13 = vpack.c.bf16 %v2106_v60, %v2105_v6  ;;  %v2083_v55 = vadd.f32 %v8993_v26, %v2082_v11  ;;  %v2111_v34 = vmax.f32 %v2091_v19, 0.0  ;;  %v9460_v6 = vld [vmem:[%s8979_s28 + $0x68] sm:$0xff]  }
 0x22d   : > { %v7936_v15 = vpop.f32.mrf.mxu0 }
 0x22e   : > { %v2094_v18 = vadd.f32 %v7936_v15, %v8993_v26  ;;  %7949 = vmatprep.mubr.msk.bf16.mxu1 %vm1311_vm1, %v2117_v13  ;;  %v2109_v30 = vmax.f32 %v2083_v55, 0.0 }
 0x22f   : > { %v2085_v21 = vpop.f32.mrf.mxu0  ;;  %7950 = vmatmul.mubr.msk.bf16.gmra.mxu1 %vm1311_vm1, %v2118_v14 }
 0x230   : > { %v2086_v22 = vadd.f32 %v8993_v26, %v2085_v21  ;;  %v2112_v23 = vmax.f32 %v2094_v18, 0.0  ;;  %v9464_v18 = vld [vmem:[%s8990_s27] ss:$0 sm:$0xff] }
 0x231   : > { %v7967_v24 = vpop.f32.mrf.mxu0 }
 0x232   : > { %v2110_v32 = vmax.f32 %v2086_v22, 0.0  ;;  %v2120_v38 = vpack.c.bf16 %v2112_v23, %v2111_v34  ;;  %v2397_v43 = vadd.f32 %v7967_v24, %v8993_v26 }
 0x233   : > { %v2388_v35 = vpop.f32.mrf.mxu0 }
 0x234   : > { %v2119_v7 = vpack.c.bf16 %v2110_v32, %v2109_v30  ;;  %v2389_v41 = vadd.f32 %v8993_v26, %v2388_v35  ;;  %v2453_v56 = vmax.f32 %v2397_v43, 0.0 }
 0x235   : > { %v7968_v36 = vpop.f32.mrf.mxu0 }
 0x236   : > { %v2400_v40 = vadd.f32 %v7968_v36, %v8993_v26  ;;  %7953 = vmatprep.mubr.msk.bf16.mxu1 %vm1311_vm1, %v2119_v7  ;;  %v2451_v52 = vmax.f32 %v2389_v41, 0.0 }
 0x237   : > { %7954 = vmatmul.mubr.msk.bf16.gmra.mxu1 %vm1311_vm1, %v2120_v38  ;;  %v2391_v46 = vpop.f32.mrf.mxu0 }
 0x238   : > { %v2392_v47 = vadd.f32 %v8993_v26, %v2391_v46  ;;  %v2454_v48 = vmax.f32 %v2400_v40, 0.0 }
 0x239   : > { %v7971_v50 = vpop.f32.mrf.mxu0 }
 0x23a   : > { %v2452_v54 = vmax.f32 %v2392_v47, 0.0  ;;  %v2468_v44 = vpack.c.bf16 %v2454_v48, %v2453_v56  ;;  %v2413_v27 = vadd.f32 %v7971_v50, %v8993_v26 }
 0x23b   : > { %v2404_v57 = vpop.f32.mrf.mxu0 }
 0x23c   : > { %v2467_v28 = vpack.c.bf16 %v2452_v54, %v2451_v52  ;;  %v2405_v62 = vadd.f32 %v8993_v26, %v2404_v57  ;;  %v2457_v11 = vmax.f32 %v2413_v27, 0.0 }
 0x23d   : > { %v7972_v59 = vpop.f32.mrf.mxu0 }
 0x23e   : > { %v2416_v0 = vadd.f32 %v7972_v59, %v8993_v26  ;;  %7985 = vmatprep.mubr.msk.bf16.mxu1 %vm1311_vm1, %v2467_v28  ;;  %v2455_v60 = vmax.f32 %v2405_v62, 0.0 }
 0x23f   : > { %v2407_v1 = vpop.f32.mrf.mxu0  ;;  %7986 = vmatmul.mubr.msk.bf16.vlgmr.msra.gmra.mxu1 %vm1311_vm1, %v2468_v44 }
 0x240   : > { %v2408_v3 = vadd.f32 %v8993_v26, %v2407_v1  ;;  %8026 = vmatpush3.bf16.msra.mxu1 %v9430_v53  ;;  %v2458_v4 = vmax.f32 %v2416_v0, 0.0 }
 0x241   : > { %v7975_v5 = vpop.f32.mrf.mxu0  ;;  %8027 = vmatprep.subr.bf16.mxu1 %v8346_v61 }
 0x242   : > { %v2456_v9 = vmax.f32 %v2408_v3, 0.0  ;;  %v2470_v15 = vpack.c.bf16 %v2458_v4, %v2457_v11  ;;  %v2429_v19 = vadd.f32 %v9464_v18, %v7975_v5 }
 0x243   : > { %v2420_v13 = vpop.f32.mrf.mxu0 }
 0x244   : > { %v2469_v14 = vpack.c.bf16 %v2456_v9, %v2455_v60  ;;  %8028 = vmatpush3.bf16.msra.mxu1 %v8346_v61  ;;  %v2421_v26 = vadd.f32 %v9464_v18, %v2420_v13  ;;  %v2461_v34 = vmax.f32 %v2429_v19, 0.0 }
 0x245   : > { %v7976_v55 = vpop.f32.mrf.mxu0  ;;  %8069 = vmatprep.subr.bf16.mxu1 %v9460_v6 }
 0x246   : > { %v2432_v53 = vadd.f32 %v9464_v18, %v7976_v55  ;;  %7989 = vmatprep.mubr.msk.bf16.mxu1 %vm1311_vm1, %v2469_v14  ;;  %v2459_v30 = vmax.f32 %v2421_v26, 0.0  ;;  %v8348_v55 = vld [vmem:[%s8979_s28 + $0x60] sm:$0xff]  }
 0x247   : > { %v2423_v21 = vpop.f32.mrf.mxu0  ;;  %7990 = vmatmul.mubr.msk.bf16.gmra.mxu1 %vm1311_vm1, %v2470_v15 }
 0x248   : > { %v2424_v22 = vadd.f32 %v9464_v18, %v2423_v21  ;;  %v2462_v23 = vmax.f32 %v2432_v53, 0.0 }
 0x249   : > { %v7979_v24 = vpop.f32.mrf.mxu0 }
 0x24a   : > { %v2460_v32 = vmax.f32 %v2424_v22, 0.0  ;;  %v2472_v38 = vpack.c.bf16 %v2462_v23, %v2461_v34  ;;  %v2445_v43 = vadd.f32 %v9464_v18, %v7979_v24 }
 0x24b   : > { %v2436_v35 = vpop.f32.mrf.mxu0 }
 0x24c   : > { %v2471_v7 = vpack.c.bf16 %v2460_v32, %v2459_v30  ;;  %v2437_v41 = vadd.f32 %v9464_v18, %v2436_v35  ;;  %v2465_v56 = vmax.f32 %v2445_v43, 0.0  ;;  %v9493_v30 = vld [vmem:[%s8979_s28 + $0x78] sm:$0xff]  }
 0x24d   : > { %v7980_v36 = vpop.f32.mrf.mxu0 }
 0x24e   : > { %v2448_v40 = vadd.f32 %v9464_v18, %v7980_v36  ;;  %7993 = vmatprep.mubr.msk.bf16.mxu1 %vm1311_vm1, %v2471_v7  ;;  %v2463_v52 = vmax.f32 %v2437_v41, 0.0 }
 0x24f   : > { %v2439_v46 = vpop.f32.mrf.mxu0  ;;  %7994 = vmatmul.mubr.msk.bf16.gmra.mxu1 %vm1311_vm1, %v2472_v38 }
 0x250   : > { %v2440_v47 = vadd.f32 %v9464_v18, %v2439_v46  ;;  %v2466_v48 = vmax.f32 %v2448_v40, 0.0 }
 0x251   : > { %v8011_v50 = vpop.f32.mrf.mxu0 }
 0x252   : > { %v2464_v54 = vmax.f32 %v2440_v47, 0.0  ;;  %v2474_v44 = vpack.c.bf16 %v2466_v48, %v2465_v56  ;;  %v2751_v0 = vadd.f32 %v9464_v18, %v8011_v50 }
 0x253   : > { %v2742_v57 = vpop.f32.mrf.mxu0 }
 0x254   : > { %v2473_v28 = vpack.c.bf16 %v2464_v54, %v2463_v52  ;;  %v2743_v61 = vadd.f32 %v9464_v18, %v2742_v57  ;;  %v2807_v9 = vmax.f32 %v2751_v0, 0.0 }
 0x255   : > { %v8012_v59 = vpop.f32.mrf.mxu0 }
 0x256   : > { %v2754_v62 = vadd.f32 %v9464_v18, %v8012_v59  ;;  %7997 = vmatprep.mubr.msk.bf16.mxu1 %vm1311_vm1, %v2473_v28  ;;  %v2805_v5 = vmax.f32 %v2743_v61, 0.0 }
 0x257   : > { %7998 = vmatmul.mubr.msk.bf16.gmra.mxu1 %vm1311_vm1, %v2474_v44  ;;  %v2745_v27 = vpop.f32.mrf.mxu0 }
 0x258   : > { %v2746_v1 = vadd.f32 %v9464_v18, %v2745_v27  ;;  %v2808_v3 = vmax.f32 %v2754_v62, 0.0 }
 0x259   : > { %v8015_v4 = vpop.f32.mrf.mxu0 }
 0x25a   : > { %v2806_v60 = vmax.f32 %v2746_v1, 0.0  ;;  %v2822_v14 = vpack.c.bf16 %v2808_v3, %v2807_v9  ;;  %v2767_v19 = vadd.f32 %v9464_v18, %v8015_v4 }
 0x25b   : > { %v2758_v11 = vpop.f32.mrf.mxu0 }
 0x25c   : > { %v2821_v13 = vpack.c.bf16 %v2806_v60, %v2805_v5  ;;  %v2759_v26 = vadd.f32 %v9464_v18, %v2758_v11  ;;  %v2811_v35 = vmax.f32 %v2767_v19, 0.0 }
 0x25d   : > { %v8016_v15 = vpop.f32.mrf.mxu0 }
 0x25e   : > { %v2770_v53 = vadd.f32 %v9464_v18, %v8016_v15  ;;  %8029 = vmatprep.mubr.msk.bf16.mxu1 %vm1311_vm1, %v2821_v13  ;;  %v2809_v32 = vmax.f32 %v2759_v26, 0.0 }
 0x25f   : > { %v2761_v21 = vpop.f32.mrf.mxu0  ;;  %8030 = vmatmul.mubr.msk.bf16.vlgmr.msra.gmra.mxu1 %vm1311_vm1, %v2822_v14 }
 0x260   : > { %v2762_v22 = vadd.f32 %v9464_v18, %v2761_v21  ;;  %8070 = vmatpush3.bf16.msra.mxu1 %v9460_v6  ;;  %v2812_v23 = vmax.f32 %v2770_v53, 0.0 }
 0x261   : > { %v8019_v24 = vpop.f32.mrf.mxu0  ;;  %8071 = vmatprep.subr.bf16.mxu1 %v8348_v55 }
 0x262   : > { %v2810_v34 = vmax.f32 %v2762_v22, 0.0  ;;  %v2824_v36 = vpack.c.bf16 %v2812_v23, %v2811_v35  ;;  %v2783_v6 = vadd.f32 %v9464_v18, %v8019_v24 }
 0x263   : > { %v2774_v7 = vpop.f32.mrf.mxu0 }
 0x264   : > { %v2823_v38 = vpack.c.bf16 %v2810_v34, %v2809_v32  ;;  %8072 = vmatpush3.bf16.msra.mxu1 %v8348_v55  ;;  %v2775_v40 = vadd.f32 %v9464_v18, %v2774_v7  ;;  %v2815_v56 = vmax.f32 %v2783_v6, 0.0 }
 0x265   : > { %v8020_v41 = vpop.f32.mrf.mxu0  ;;  %8113 = vmatprep.subr.bf16.mxu1 %v9493_v30 }
 0x266   : > { %v2786_v43 = vadd.f32 %v9464_v18, %v8020_v41  ;;  %8033 = vmatprep.mubr.msk.bf16.mxu1 %vm1311_vm1, %v2823_v38  ;;  %v2813_v52 = vmax.f32 %v2775_v40, 0.0  ;;  %v8350_v41 = vld [vmem:[%s8979_s28 + $0x70] sm:$0xff]  }
 0x267   : > { %v2777_v46 = vpop.f32.mrf.mxu0  ;;  %8034 = vmatmul.mubr.msk.bf16.gmra.mxu1 %vm1311_vm1, %v2824_v36 }
 0x268   : > { %v2778_v47 = vadd.f32 %v9464_v18, %v2777_v46  ;;  %v2816_v48 = vmax.f32 %v2786_v43, 0.0 }
 0x269   : > { %v8023_v50 = vpop.f32.mrf.mxu0 }
 0x26a   : > { %v2814_v54 = vmax.f32 %v2778_v47, 0.0  ;;  %v2826_v44 = vpack.c.bf16 %v2816_v48, %v2815_v56  ;;  %v2799_v0 = vadd.f32 %v9464_v18, %v8023_v50 }
 0x26b   : > { %v2790_v57 = vpop.f32.mrf.mxu0 }
 0x26c   : > { %v2825_v28 = vpack.c.bf16 %v2814_v54, %v2813_v52  ;;  %v2791_v61 = vadd.f32 %v9464_v18, %v2790_v57  ;;  %v2819_v9 = vmax.f32 %v2799_v0, 0.0  ;;  %v9523_v52 = vld [vmem:[%s8979_s28 + $0x88] sm:$0xff]  }
 0x26d   : > { %v8024_v59 = vpop.f32.mrf.mxu0 }
 0x26e   : > { %v2802_v62 = vadd.f32 %v9464_v18, %v8024_v59  ;;  %8037 = vmatprep.mubr.msk.bf16.mxu1 %vm1311_vm1, %v2825_v28  ;;  %v2817_v5 = vmax.f32 %v2791_v61, 0.0 }
 0x26f   : > { %v2793_v27 = vpop.f32.mrf.mxu0  ;;  %8038 = vmatmul.mubr.msk.bf16.gmra.mxu1 %vm1311_vm1, %v2826_v44 }
 0x270   : > { %v2794_v1 = vadd.f32 %v9464_v18, %v2793_v27  ;;  %v2820_v3 = vmax.f32 %v2802_v62, 0.0 }
 0x271   : > { %v8055_v4 = vpop.f32.mrf.mxu0 }
 0x272   : > { %v2818_v60 = vmax.f32 %v2794_v1, 0.0  ;;  %v2828_v14 = vpack.c.bf16 %v2820_v3, %v2819_v9  ;;  %v3105_v53 = vadd.f32 %v9464_v18, %v8055_v4 }
 0x273   : > { %v3096_v11 = vpop.f32.mrf.mxu0 }
 0x274   : > { %v2827_v13 = vpack.c.bf16 %v2818_v60, %v2817_v5  ;;  %v3097_v55 = vadd.f32 %v9464_v18, %v3096_v11  ;;  %v3161_v34 = vmax.f32 %v3105_v53, 0.0 }
 0x275   : > { %v8056_v15 = vpop.f32.mrf.mxu0 }
 0x276   : > { %v3108_v26 = vadd.f32 %v9464_v18, %v8056_v15  ;;  %8041 = vmatprep.mubr.msk.bf16.mxu1 %vm1311_vm1, %v2827_v13  ;;  %v3159_v24 = vmax.f32 %v3097_v55, 0.0 }
 0x277   : > { %8042 = vmatmul.mubr.msk.bf16.gmra.mxu1 %vm1311_vm1, %v2828_v14  ;;  %v3099_v19 = vpop.f32.mrf.mxu0 }
 0x278   : > { %v3100_v21 = vadd.f32 %v9464_v18, %v3099_v19  ;;  %v3162_v22 = vmax.f32 %v3108_v26, 0.0 }
 0x279   : > { %v8059_v23 = vpop.f32.mrf.mxu0 }
 0x27a   : > { %v3160_v32 = vmax.f32 %v3100_v21, 0.0  ;;  %v3176_v38 = vpack.c.bf16 %v3162_v22, %v3161_v34  ;;  %v3121_v6 = vadd.f32 %v9464_v18, %v8059_v23 }
 0x27b   : > { %v3112_v35 = vpop.f32.mrf.mxu0 }
 0x27c   : > { %v3175_v7 = vpack.c.bf16 %v3160_v32, %v3159_v24  ;;  %v3113_v40 = vadd.f32 %v9464_v18, %v3112_v35  ;;  %v3165_v57 = vmax.f32 %v3121_v6, 0.0 }
 0x27d   : > { %v8060_v36 = vpop.f32.mrf.mxu0 }
 0x27e   : > { %v3124_v43 = vadd.f32 %v9464_v18, %v8060_v36  ;;  %8073 = vmatprep.mubr.msk.bf16.mxu1 %vm1311_vm1, %v3175_v7  ;;  %v3163_v54 = vmax.f32 %v3113_v40, 0.0 }
 0x27f   : > { %v3115_v46 = vpop.f32.mrf.mxu0  ;;  %8074 = vmatmul.mubr.msk.bf16.vlgmr.msra.gmra.mxu1 %vm1311_vm1, %v3176_v38 }
 0x280   : > { %v3116_v47 = vadd.f32 %v9464_v18, %v3115_v46  ;;  %8114 = vmatpush3.bf16.msra.mxu1 %v9493_v30  ;;  %v3166_v48 = vmax.f32 %v3124_v43, 0.0 }
 0x281   : > { %v8063_v50 = vpop.f32.mrf.mxu0  ;;  %8115 = vmatprep.subr.bf16.mxu1 %v8350_v41 }
 0x282   : > { %v3164_v56 = vmax.f32 %v3116_v47, 0.0  ;;  %v3178_v59 = vpack.c.bf16 %v3166_v48, %v3165_v57  ;;  %v3137_v30 = vadd.f32 %v9464_v18, %v8063_v50 }
 0x283   : > { %v3128_v28 = vpop.f32.mrf.mxu0 }
 0x284   : > { %v3177_v44 = vpack.c.bf16 %v3164_v56, %v3163_v54  ;;  %8116 = vmatpush3.bf16.msra.mxu1 %v8350_v41  ;;  %v3129_v62 = vadd.f32 %v9464_v18, %v3128_v28  ;;  %v3169_v9 = vmax.f32 %v3137_v30, 0.0 }
 0x285   : > { %v8064_v61 = vpop.f32.mrf.mxu0  ;;  %8157 = vmatprep.subr.bf16.mxu1 %v9523_v52 }
 0x286   : > { %v3140_v0 = vadd.f32 %v9464_v18, %v8064_v61  ;;  %8077 = vmatprep.mubr.msk.bf16.mxu1 %vm1311_vm1, %v3177_v44  ;;  %v3167_v5 = vmax.f32 %v3129_v62, 0.0  ;;  %v8352_v61 = vld [vmem:[%s8979_s28 + $0x80] sm:$0xff]   ;;  %s7499_s28 = sshll.u32 %s10184_s24, 7 }
 0x287   : > { %v3131_v27 = vpop.f32.mrf.mxu0  ;;  %8078 = vmatmul.mubr.msk.bf16.gmra.mxu1 %vm1311_vm1, %v3178_v59  ;;  %s9641_s30 = scalar_lea.vmem %s10154_s6, %s7499_s28 }
 0x288   : > { %v3132_v1 = vadd.f32 %v9464_v18, %v3131_v27  ;;  %v3170_v3 = vmax.f32 %v3140_v0, 0.0 }
 0x289   : > { %v8067_v4 = vpop.f32.mrf.mxu0 }
 0x28a   : > { %v3168_v60 = vmax.f32 %v3132_v1, 0.0  ;;  %v3180_v14 = vpack.c.bf16 %v3170_v3, %v3169_v9  ;;  %v3153_v53 = vadd.f32 %v9464_v18, %v8067_v4 }
 0x28b   : > { %v3144_v11 = vpop.f32.mrf.mxu0 }
 0x28c   : > { %v3179_v13 = vpack.c.bf16 %v3168_v60, %v3167_v5  ;;  %v3145_v55 = vadd.f32 %v9464_v18, %v3144_v11  ;;  %v3173_v34 = vmax.f32 %v3153_v53, 0.0 }
 0x28d   : > { %v8068_v15 = vpop.f32.mrf.mxu0 }
 0x28e   : > { %v3156_v26 = vadd.f32 %v9464_v18, %v8068_v15  ;;  %8081 = vmatprep.mubr.msk.bf16.mxu1 %vm1311_vm1, %v3179_v13  ;;  %v3171_v24 = vmax.f32 %v3145_v55, 0.0 }
 0x28f   : > { %v3147_v19 = vpop.f32.mrf.mxu0  ;;  %8082 = vmatmul.mubr.msk.bf16.gmra.mxu1 %vm1311_vm1, %v3180_v14 }
 0x290   : > { %v3148_v21 = vadd.f32 %v9464_v18, %v3147_v19  ;;  %v3174_v22 = vmax.f32 %v3156_v26, 0.0 }
 0x291   : > { %v8099_v23 = vpop.f32.mrf.mxu0 }
 0x292   : > { %v3172_v32 = vmax.f32 %v3148_v21, 0.0  ;;  %v3182_v38 = vpack.c.bf16 %v3174_v22, %v3173_v34  ;;  %v3459_v43 = vadd.f32 %v9464_v18, %v8099_v23 }
 0x293   : > { %v3450_v35 = vpop.f32.mrf.mxu0 }
 0x294   : > { %v3181_v7 = vpack.c.bf16 %v3172_v32, %v3171_v24  ;;  %v3451_v41 = vadd.f32 %v9464_v18, %v3450_v35  ;;  %v3515_v56 = vmax.f32 %v3459_v43, 0.0 }
 0x295   : > { %v8100_v36 = vpop.f32.mrf.mxu0 }
 0x296   : > { %v3462_v40 = vadd.f32 %v9464_v18, %v8100_v36  ;;  %8085 = vmatprep.mubr.msk.bf16.mxu1 %vm1311_vm1, %v3181_v7  ;;  %v3513_v50 = vmax.f32 %v3451_v41, 0.0 }
 0x297   : > { %8086 = vmatmul.mubr.msk.bf16.gmra.mxu1 %vm1311_vm1, %v3182_v38  ;;  %v3453_v6 = vpop.f32.mrf.mxu0 }
 0x298   : > { %v3454_v46 = vadd.f32 %v9464_v18, %v3453_v6  ;;  %v3516_v47 = vmax.f32 %v3462_v40, 0.0 }
 0x299   : > { %v8103_v48 = vpop.f32.mrf.mxu0 }
 0x29a   : > { %v3514_v54 = vmax.f32 %v3454_v46, 0.0  ;;  %v3530_v44 = vpack.c.bf16 %v3516_v47, %v3515_v56  ;;  %v3475_v30 = vadd.f32 %v9464_v18, %v8103_v48 }
 0x29b   : > { %v3466_v57 = vpop.f32.mrf.mxu0 }
 0x29c   : > { %v3529_v28 = vpack.c.bf16 %v3514_v54, %v3513_v50  ;;  %v3467_v62 = vadd.f32 %v9464_v18, %v3466_v57  ;;  %v3519_v9 = vmax.f32 %v3475_v30, 0.0 }
 0x29d   : > { %v8104_v59 = vpop.f32.mrf.mxu0 }
 0x29e   : > { %v3478_v0 = vadd.f32 %v9464_v18, %v8104_v59  ;;  %8117 = vmatprep.mubr.msk.bf16.mxu1 %vm1311_vm1, %v3529_v28  ;;  %v3517_v5 = vmax.f32 %v3467_v62, 0.0 }
 0x29f   : > { %v3469_v27 = vpop.f32.mrf.mxu0  ;;  %8118 = vmatmul.mubr.msk.bf16.vlgmr.msra.gmra.mxu1 %vm1311_vm1, %v3530_v44 }
 0x2a0   : > { %v3470_v1 = vadd.f32 %v9464_v18, %v3469_v27  ;;  %8158 = vmatpush3.bf16.msra.mxu1 %v9523_v52  ;;  %v3520_v3 = vmax.f32 %v3478_v0, 0.0 }
 0x2a1   : > { %v8107_v4 = vpop.f32.mrf.mxu0  ;;  %8159 = vmatprep.subr.bf16.mxu1 %v8352_v61 }
 0x2a2   : > { %v3518_v60 = vmax.f32 %v3470_v1, 0.0  ;;  %v3532_v14 = vpack.c.bf16 %v3520_v3, %v3519_v9  ;;  %v3491_v53 = vadd.f32 %v9464_v18, %v8107_v4 }
 0x2a3   : > { %v3482_v11 = vpop.f32.mrf.mxu0 }
 0x2a4   : > { %v3531_v13 = vpack.c.bf16 %v3518_v60, %v3517_v5  ;;  %8160 = vmatpush3.bf16.msra.mxu1 %v8352_v61  ;;  %v3483_v55 = vadd.f32 %v9464_v18, %v3482_v11  ;;  %v3523_v32 = vmax.f32 %v3491_v53, 0.0  ;;  %v9570_v11 = vpop.f32.mrf.mxu1 }
 0x2a5   : > { %v8108_v15 = vpop.f32.mrf.mxu0 }
 0x2a6   : > { %v3494_v26 = vadd.f32 %v9464_v18, %v8108_v15  ;;  %8121 = vmatprep.mubr.msk.bf16.mxu1 %vm1311_vm1, %v3531_v13  ;;  %v3521_v23 = vmax.f32 %v3483_v55, 0.0 }
 0x2a7   : > { %v3485_v52 = vpop.f32.mrf.mxu0  ;;  %8122 = vmatmul.mubr.msk.bf16.gmra.mxu1 %vm1311_vm1, %v3532_v14 }
 0x2a8   : > { %v3486_v19 = vadd.f32 %v9464_v18, %v3485_v52  ;;  %v3524_v21 = vmax.f32 %v3494_v26, 0.0 }
 0x2a9   : > { %v8111_v22 = vpop.f32.mrf.mxu0 }
 0x2aa   : > { %v3522_v24 = vmax.f32 %v3486_v19, 0.0  ;;  %v3534_v7 = vpack.c.bf16 %v3524_v21, %v3523_v32  ;;  %v3507_v40 = vadd.f32 %v9464_v18, %v8111_v22 }
 0x2ab   : > { %v3498_v34 = vpop.f32.mrf.mxu0 }
 0x2ac   : > { %v3533_v35 = vpack.c.bf16 %v3522_v24, %v3521_v23  ;;  %v3499_v36 = vadd.f32 %v9464_v18, %v3498_v34  ;;  %v3527_v54 = vmax.f32 %v3507_v40, 0.0 }
 0x2ad   : > { %v8112_v38 = vpop.f32.mrf.mxu0 }
 0x2ae   : > { %v3510_v41 = vadd.f32 %v9464_v18, %v8112_v38  ;;  %8125 = vmatprep.mubr.msk.bf16.mxu1 %vm1311_vm1, %v3533_v35  ;;  %v3525_v48 = vmax.f32 %v3499_v36, 0.0 }
 0x2af   : > { %v3501_v43 = vpop.f32.mrf.mxu0  ;;  %8126 = vmatmul.mubr.msk.bf16.gmra.mxu1 %vm1311_vm1, %v3534_v7 }
 0x2b0   : > { %v3502_v6 = vadd.f32 %v9464_v18, %v3501_v43  ;;  %v3528_v46 = vmax.f32 %v3510_v41, 0.0 }
 0x2b1   : > { %v8143_v47 = vpop.f32.mrf.mxu0 }
 0x2b2   : > { %v3526_v50 = vmax.f32 %v3502_v6, 0.0  ;;  %v3536_v28 = vpack.c.bf16 %v3528_v46, %v3527_v54  ;;  %v3813_v62 = vadd.f32 %v9464_v18, %v8143_v47 }
 0x2b3   : > { %v3804_v56 = vpop.f32.mrf.mxu0 }
 0x2b4   : > { %v3535_v57 = vpack.c.bf16 %v3526_v50, %v3525_v48  ;;  %v3805_v59 = vadd.f32 %v9464_v18, %v3804_v56  ;;  %v3869_v5 = vmax.f32 %v3813_v62, 0.0 }
 0x2b5   : > { %v8144_v44 = vpop.f32.mrf.mxu0 }
 0x2b6   : > { %v3816_v61 = vadd.f32 %v9464_v18, %v8144_v44  ;;  %8129 = vmatprep.mubr.msk.bf16.mxu1 %vm1311_vm1, %v3535_v57  ;;  %v3867_v3 = vmax.f32 %v3805_v59, 0.0 }
 0x2b7   : > { %8130 = vmatmul.mubr.msk.bf16.gmra.mxu1 %vm1311_vm1, %v3536_v28  ;;  %v3807_v0 = vpop.f32.mrf.mxu0 }
 0x2b8   : > { %v3808_v30 = vadd.f32 %v9464_v18, %v3807_v0  ;;  %v3870_v27 = vmax.f32 %v3816_v61, 0.0 }
 0x2b9   : > { %v8147_v1 = vpop.f32.mrf.mxu0 }
 0x2ba   : > { %v3868_v4 = vmax.f32 %v3808_v30, 0.0  ;;  %v3884_v13 = vpack.c.bf16 %v3870_v27, %v3869_v5  ;;  %v3829_v26 = vadd.f32 %v9464_v18, %v8147_v1 }
 0x2bb   : > { %v3820_v60 = vpop.f32.mrf.mxu0 }
 0x2bc   : > { %v3883_v9 = vpack.c.bf16 %v3868_v4, %v3867_v3  ;;  %v3821_v15 = vadd.f32 %v9464_v18, %v3820_v60  ;;  %v3873_v7 = vmax.f32 %v3829_v26, 0.0 }
 0x2bd   : > { %v8148_v14 = vpop.f32.mrf.mxu0 }
 0x2be   : > { %v3832_v55 = vadd.f32 %v9464_v18, %v8148_v14  ;;  %8161 = vmatprep.mubr.msk.bf16.mxu1 %vm1311_vm1, %v3883_v9  ;;  %v3871_v32 = vmax.f32 %v3821_v15, 0.0 }
 0x2bf   : > { %v7899_v53 = vpop.f32.mrf.mxu1  ;;  %v3823_v52 = vpop.f32.mrf.mxu0  ;;  %8162 = vmatmul.mubr.msk.bf16.vlgmr.msra.gmra.mxu1 %vm1311_vm1, %v3884_v13 }
 0x2c0   : > { %v9578_v19 = vadd.f32 %v7899_v53, %v9293_v10  ;;  %v3824_v21 = vadd.f32 %v9464_v18, %v3823_v52  ;;  %v3874_v22 = vmax.f32 %v3832_v55, 0.0 }
 0x2c1   : > { %v1841_v23 = vpop.f32.mrf.mxu1  ;;  %v8151_v24 = vpop.f32.mrf.mxu0 }
 0x2c2   : > { %v3872_v34 = vmax.f32 %v3824_v21, 0.0  ;;  %v9582_v35 = vadd.f32 %v1841_v23, %v9298_v12  ;;  %v3886_v43 = vpack.c.bf16 %v3874_v22, %v3873_v7  ;;  %v3845_v48 = vadd.f32 %v9464_v18, %v8151_v24 }
 0x2c3   : > { %v7900_v38 = vpop.f32.mrf.mxu1  ;;  %v3836_v36 = vpop.f32.mrf.mxu0 }
 0x2c4   : > { %v3885_v41 = vpack.c.bf16 %v3872_v34, %v3871_v32  ;;  %v1907_v40 = vadd.f32 %v7900_v38, %v9303_v16  ;;  %v3837_v46 = vadd.f32 %v9464_v18, %v3836_v36  ;;  %v3877_v62 = vmax.f32 %v3845_v48, 0.0 }
 0x2c5   : > { %v9585_v6 = vpop.f32.mrf.mxu1  ;;  %v8152_v10 = vpop.f32.mrf.mxu0 }
 0x2c6   : > { %v3848_v47 = vadd.f32 %v9464_v18, %v8152_v10  ;;  %8165 = vmatprep.mubr.msk.bf16.mxu1 %vm1311_vm1, %v3885_v41  ;;  %v3875_v44 = vmax.f32 %v3837_v46, 0.0 }
 0x2c7   : > { %v7903_v12 = vpop.f32.mrf.mxu1  ;;  %v3839_v50 = vpop.f32.mrf.mxu0  ;;  %8166 = vmatmul.mubr.msk.bf16.gmra.mxu1 %vm1311_vm1, %v3886_v43 }
 0x2c8   : > { %v1910_v54 = vadd.f32 %v7903_v12, %v9313_v20  ;;  %v3840_v16 = vadd.f32 %v9464_v18, %v3839_v50  ;;  %v3878_v56 = vmax.f32 %v3848_v47, 0.0 }
 0x2c9   : > { %v1857_v57 = vpop.f32.mrf.mxu1  ;;  %v8155_v28 = vpop.f32.mrf.mxu0 }
 0x2ca   : > { %v3876_v59 = vmax.f32 %v3840_v16, 0.0  ;;  %v1908_v61 = vadd.f32 %v1857_v57, %v9318_v58  ;;  %v3888_v3 = vpack.c.bf16 %v3878_v56, %v3877_v62  ;;  %v3861_v9 = vadd.f32 %v9464_v18, %v8155_v28 }
 0x2cb   : > { %v7904_v0 = vpop.f32.mrf.mxu1  ;;  %v3852_v30 = vpop.f32.mrf.mxu0 }
 0x2cc   : > { %v3887_v27 = vpack.c.bf16 %v3876_v59, %v3875_v44  ;;  %v1911_v1 = vadd.f32 %v7904_v0, %v9323_v25  ;;  %v3853_v20 = vadd.f32 %v9464_v18, %v3852_v30  ;;  %v3881_v21 = vmax.f32 %v3861_v9, 0.0 }
 0x2cd   : > { %v9596_v4 = vpop.f32.mrf.mxu1  ;;  %v8156_v5 = vpop.f32.mrf.mxu0 }
 0x2ce   : > { %v3864_v60 = vadd.f32 %v9464_v18, %v8156_v5  ;;  %8169 = vmatprep.mubr.msk.bf16.mxu1 %vm1311_vm1, %v3887_v27  ;;  %v3879_v26 = vmax.f32 %v3853_v20, 0.0 }
 0x2cf   : > { %v7907_v13 = vpop.f32.mrf.mxu1  ;;  %v3855_v58 = vpop.f32.mrf.mxu0  ;;  %8170 = vmatmul.mubr.msk.bf16.gmra.mxu1 %vm1311_vm1, %v3888_v3 }
 0x2d0   : > { %v1914_v14 = vadd.f32 %v7907_v13, %v9334_v31  ;;  %v3856_v25 = vadd.f32 %v9464_v18, %v3855_v58  ;;  %v3882_v15 = vmax.f32 %v3864_v60, 0.0  ;;  %v1507_v13 = vadd.f32 %v9272_v63, %v9309_v17  ;;  %v8354_v17 = vld [vmem:[%s9641_s30 + $0x18] sm:$0xff]  }
 0x2d1   : > { %v1873_v55 = vpop.f32.mrf.mxu1  ;;  %8189 = vmatprep.subr.bf16.mxu1 %v8354_v17 }
 0x2d2   : > { %v3880_v53 = vmax.f32 %v3856_v25, 0.0  ;;  %v1912_v52 = vadd.f32 %v1873_v55, %v9337_v33  ;;  %v3890_v32 = vpack.c.bf16 %v3882_v15, %v3881_v21  ;;  %8190 = vmatpush3.bf16.msra.mxu1 %v8354_v17 }
 0x2d3   : > { %v7908_v22 = vpop.f32.mrf.mxu1 }
 0x2d4   : > { %v3889_v23 = vpack.c.bf16 %v3880_v53, %v3879_v26  ;;  %v1915_v24 = vadd.f32 %v7908_v22, %v9342_v37  ;;  %v1523_v53 = vadd.f32 %v9290_v8, %v9329_v2  ;;  %v8358_v2 = vld [vmem:[%s9641_s30 + $0x8] sm:$0xff]  }
 0x2d5   : > { %v9607_v34 = vpop.f32.mrf.mxu1 }
 0x2d6   : > { %8173 = vmatprep.mubr.msk.bf16.mxu1 %vm1311_vm1, %v3889_v23  ;;  %v1909_v22 = vadd.f32 %v9596_v4, %v1523_v53 }
 0x2d7   : > { %v7911_v7 = vpop.f32.mrf.mxu1  ;;  %8174 = vmatmul.mubr.msk.bf16.gmra.mxu1 %vm1311_vm1, %v3890_v32  ;;  %v8356_v32 = vld [vmem:[%s9641_s30 + $0x10] sm:$0xff]  }
 0x2d8   : > { %v1918_v31 = vadd.f32 %v7911_v7, %v9350_v42  ;;  %8191 = vmatprep.subr.bf16.mxu1 %v8356_v32 }
 0x2d9   : > { %v1889_v18 = vpop.f32.mrf.mxu1  ;;  %8192 = vmatpush3.bf16.msra.mxu1 %v8356_v32 }
 0x2da   : > { %v1916_v38 = vadd.f32 %v1889_v18, %v9353_v45  ;;  %8193 = vmatprep.subr.bf16.mxu1 %v8358_v2 }
 0x2db   : > { %v7912_v36 = vpop.f32.mrf.mxu1 }
 0x2dc   : > { %v1919_v33 = vadd.f32 %v7912_v36, %v9358_v49 }
 0x2dd   : > { %v1892_v41 = vpop.f32.mrf.mxu1  ;;  %8194 = vmatpush3.bf16.msra.mxu1 %v8358_v2 }
 0x2df   : > { %v7943_v43 = vpop.f32.mrf.mxu1 }
 0x2e0   : > { %v2260_v37 = vadd.f32 %v7943_v43, %v9578_v19  ;;  %v8355_v43 = vld [vmem:[%s9641_s30 + $0x30] sm:$0xff]  }
 0x2e1   : > { %v2195_v10 = vpop.f32.mrf.mxu1 }
 0x2e2   : > { %v2258_v46 = vadd.f32 %v2195_v10, %v9582_v35 }
 0x2e3   : > { %v7944_v47 = vpop.f32.mrf.mxu1 }
 0x2e4   : > { %v2261_v48 = vadd.f32 %v7944_v47, %v1907_v40  ;;  %v1555_v40 = vadd.f32 %v9570_v11, %v9363_v51  ;;  %v1905_v51 = vadd.f32 %v9585_v6, %v1507_v13 }
 0x2e5   : > { %v2198_v12 = vpop.f32.mrf.mxu1 }
 0x2e6   : > { %v2259_v15 = vadd.f32 %v2198_v12, %v1905_v51 }
 0x2e7   : > { %v7947_v50 = vpop.f32.mrf.mxu1 }
 0x2e8   : > { %v2264_v16 = vadd.f32 %v7947_v50, %v1910_v54 }
 0x2e9   : > { %v2211_v56 = vpop.f32.mrf.mxu1 }
 0x2ea   : > { %v2262_v42 = vadd.f32 %v2211_v56, %v1908_v61 }
 0x2eb   : > { %v7948_v57 = vpop.f32.mrf.mxu1 }
 0x2ec   : > { %v2265_v28 = vadd.f32 %v7948_v57, %v1911_v1  ;;  %v1917_v1 = vadd.f32 %v1892_v41, %v1555_v40 }
 0x2ed   : > { %v2214_v45 = vpop.f32.mrf.mxu1 }
 0x2ef   : > { %v7951_v44 = vpop.f32.mrf.mxu1 }
 0x2f0   : > { %v2268_v59 = vadd.f32 %v7951_v44, %v1914_v14 }
 0x2f1   : > { %v2227_v49 = vpop.f32.mrf.mxu1 }
 0x2f2   : > { %v2266_v62 = vadd.f32 %v2227_v49, %v1912_v52 }
 0x2f3   : > { %v7952_v0 = vpop.f32.mrf.mxu1 }
 0x2f4   : > { %v2269_v30 = vadd.f32 %v7952_v0, %v1915_v24  ;;  %v8353_v24 = vld [vmem:[%s9641_s30 + $0x38] sm:$0xff]  }
 0x2f5   : > { %v2230_v19 = vpop.f32.mrf.mxu1  ;;  %8177 = vmatprep.subr.bf16.mxu0 %v8353_v24  ;;  %v9670_v0 = vld [vmem:[%s9641_s30 + $0x78] sm:$0xff]  }
 0x2f6   : > { %8178 = vmatpush3.bf16.msra.mxu0 %v8353_v24 }
 0x2f7   : > { %v7955_v27 = vpop.f32.mrf.mxu1  ;;  %8179 = vmatprep.subr.bf16.mxu0 %v8355_v43 }
 0x2f8   : > { %v9616_v3 = vadd.f32 %v7955_v27, %v1918_v31  ;;  %v2263_v31 = vadd.f32 %v2214_v45, %v1909_v22 }
 0x2f9   : > { %v2243_v35 = vpop.f32.mrf.mxu1 }
 0x2fa   : > { %v9620_v54 = vadd.f32 %v2243_v35, %v1916_v38  ;;  %8180 = vmatpush3.bf16.msra.mxu0 %v8355_v43 }
 0x2fb   : > { %v7956_v61 = vpop.f32.mrf.mxu1 }
 0x2fc   : > { %v9622_v5 = vadd.f32 %v7956_v61, %v1919_v33  ;;  %v1539_v33 = vadd.f32 %v9331_v29, %v9347_v39  ;;  %v8357_v29 = vld [vmem:[%s9641_s30 + $0x28] sm:$0xff]  }
 0x2fd   : > { %v2246_v20 = vpop.f32.mrf.mxu1  ;;  %8181 = vmatprep.subr.bf16.mxu0 %v8357_v29 }
 0x2fe   : > { %v9624_v60 = vadd.f32 %v2246_v20, %v1917_v1  ;;  %8182 = vmatpush3.bf16.msra.mxu0 %v8357_v29 }
 0x2ff   : > { %v7987_v9 = vpop.f32.mrf.mxu1 }
 0x300   : > { %v9628_v58 = vadd.f32 %v7987_v9, %v2260_v37  ;;  %v1913_v37 = vadd.f32 %v9607_v34, %v1539_v33 }
 0x301   : > { %v2549_v14 = vpop.f32.mrf.mxu1 }
 0x302   : > { %v9631_v11 = vadd.f32 %v2549_v14, %v2258_v46  ;;  %v8359_v46 = vld [vmem:[%s9641_s30] sm:$0xff]  }
 0x303   : > { %v7988_v25 = vpop.f32.mrf.mxu1  ;;  %8195 = vmatprep.subr.bf16.mxu1 %v8359_v46 }
 0x304   : > { %v9633_v55 = vadd.f32 %v7988_v25, %v2261_v48  ;;  %v2267_v48 = vadd.f32 %v2230_v19, %v1913_v37  ;;  %8196 = vmatpush3.bf16.msra.mxu1 %v8359_v46 }
 0x305   : > { %v2552_v26 = vpop.f32.mrf.mxu1  ;;  %8213 = vmatprep.subr.bf16.mxu1 %v9670_v0 }
 0x306   : > { %v9643_v63 = vadd.f32 %v2552_v26, %v2259_v15 }
 0x307   : > { %v7991_v6 = vpop.f32.mrf.mxu1 }
 0x308   : > { %v9648_v52 = vadd.f32 %v7991_v6, %v2264_v16 }
 0x309   : > { %v2565_v21 = vpop.f32.mrf.mxu1 }
 0x30a   : > { %v2616_v23 = vadd.f32 %v2565_v21, %v2262_v42  ;;  %v8361_v42 = vld [vmem:[%s9641_s30 + $0x20] sm:$0xff]  }
 0x30b   : > { %v7992_v7 = vpop.f32.mrf.mxu1  ;;  %8183 = vmatprep.subr.bf16.mxu0 %v8361_v42 }
 0x30c   : > { %v2619_v18 = vadd.f32 %v7992_v7, %v2265_v28  ;;  %8184 = vmatpush3.bf16.msra.mxu0 %v8361_v42 }
 0x30d   : > { %v2568_v38 = vpop.f32.mrf.mxu1 }
 0x30e   : > { %v2617_v8 = vadd.f32 %v2568_v38, %v2263_v31 }
 0x30f   : > { %v7995_v36 = vpop.f32.mrf.mxu1 }
 0x310   : > { %v2622_v4 = vadd.f32 %v7995_v36, %v2268_v59  ;;  %v9665_v59 = vld [vmem:[%s9641_s30 + $0x58] sm:$0xff]  }
 0x311   : > { %v2581_v41 = vpop.f32.mrf.mxu1  ;;  %8201 = vmatprep.subr.bf16.mxu0 %v9665_v59 }
 0x312   : > { %v2620_v10 = vadd.f32 %v2581_v41, %v2266_v62 }
 0x313   : > { %v7996_v47 = vpop.f32.mrf.mxu1 }
 0x314   : > { %v2623_v12 = vadd.f32 %v7996_v47, %v2269_v30 }
 0x315   : > { %v2584_v50 = vpop.f32.mrf.mxu1 }
 0x316   : > { %v2621_v39 = vadd.f32 %v2584_v50, %v2267_v48 }
 0x317   : > { %v7999_v16 = vpop.f32.mrf.mxu1 }
 0x318   : > { %v2626_v56 = vadd.f32 %v7999_v16, %v9616_v3 }
 0x319   : > { %v2597_v34 = vpop.f32.mrf.mxu1 }
 0x31a   : > { %v2624_v57 = vadd.f32 %v2597_v34, %v9620_v54 }
 0x31b   : > { %v8000_v28 = vpop.f32.mrf.mxu1 }
 0x31c   : > { %v2627_v45 = vadd.f32 %v8000_v28, %v9622_v5 }
 0x31d   : > { %v2600_v44 = vpop.f32.mrf.mxu1 }
 0x31e   : > { %v2625_v49 = vadd.f32 %v2600_v44, %v9624_v60 }
 0x31f   : > { %v8031_v62 = vpop.f32.mrf.mxu1 }
 0x320   : > { %v9673_v30 = vadd.f32 %v8031_v62, %v9628_v58 }
 0x321   : > { %v2903_v19 = vpop.f32.mrf.mxu1 }
 0x322   : > { %v9677_v27 = vadd.f32 %v2903_v19, %v9631_v11 }
 0x323   : > { %v8032_v3 = vpop.f32.mrf.mxu1 }
 0x324   : > { %v9680_v35 = vadd.f32 %v8032_v3, %v9633_v55 }
 0x325   : > { %v2906_v40 = vpop.f32.mrf.mxu1 }
 0x326   : > { %v9683_v54 = vadd.f32 %v2906_v40, %v9643_v63 }
 0x327   : > { %v8035_v61 = vpop.f32.mrf.mxu1 }
 0x328   : > { %v9686_v1 = vadd.f32 %v8035_v61, %v9648_v52 }
 0x329   : > { %v2919_v5 = vpop.f32.mrf.mxu1 }
 0x32a   : > { %v9688_v20 = vadd.f32 %v2919_v5, %v2616_v23 }
 0x32b   : > { %v8036_v60 = vpop.f32.mrf.mxu1 }
 0x32c   : > { %v9690_v9 = vadd.f32 %v8036_v60, %v2619_v18  ;;  %v9746_v60 = vld [vmem:[%s792_s21] ss:$0 sm:$0xff] }
 0x32d   : > { %v2922_v13 = vpop.f32.mrf.mxu1 }
 0x32e   : > { %v9692_v58 = vadd.f32 %v2922_v13, %v2617_v8 }
 0x32f   : > { %v8039_v14 = vpop.f32.mrf.mxu1 }
 0x330   : > { %v9694_v51 = vadd.f32 %v8039_v14, %v2622_v4 }
 0x331   : > { %v2935_v11 = vpop.f32.mrf.mxu1 }
 0x332   : > { %v9696_v25 = vadd.f32 %v2935_v11, %v2620_v10 }
 0x333   : > { %v8040_v15 = vpop.f32.mrf.mxu1 }
 0x334   : > { %v9698_v55 = vadd.f32 %v8040_v15, %v2623_v12 }
 0x335   : > { %v2938_v26 = vpop.f32.mrf.mxu1 }
 0x336   : > { %v9700_v63 = vadd.f32 %v2938_v26, %v2621_v39 }
 0x337   : > { %v8043_v17 = vpop.f32.mrf.mxu1 }
 0x338   : > { %v9702_v6 = vadd.f32 %v8043_v17, %v2626_v56 }
 0x339   : > { %v2951_v53 = vpop.f32.mrf.mxu1 }
 0x33a   : > { %v9704_v52 = vadd.f32 %v2951_v53, %v2624_v57 }
 0x33b   : > { %v8044_v21 = vpop.f32.mrf.mxu1 }
 0x33c   : > { %v9706_v22 = vadd.f32 %v8044_v21, %v2627_v45 }
 0x33d   : > { %v2954_v23 = vpop.f32.mrf.mxu1 }
 0x33e   : > { %v9708_v24 = vadd.f32 %v2954_v23, %v2625_v49 }
 0x33f   : > { %v8075_v32 = vpop.f32.mrf.mxu1 }
 0x340   : > { %v3322_v19 = vadd.f32 %v8075_v32, %v9673_v30 }
 0x341   : > { %v3257_v7 = vpop.f32.mrf.mxu1 }
 0x342   : > { %v3320_v40 = vadd.f32 %v3257_v7, %v9677_v27 }
 0x343   : > { %v8076_v31 = vpop.f32.mrf.mxu1 }
 0x344   : > { %v3323_v13 = vadd.f32 %v8076_v31, %v9680_v35 }
 0x345   : > { %v3260_v18 = vpop.f32.mrf.mxu1 }
 0x346   : > { %v3321_v26 = vadd.f32 %v3260_v18, %v9683_v54 }
 0x347   : > { %v8079_v38 = vpop.f32.mrf.mxu1 }
 0x348   : > { %v3326_v21 = vadd.f32 %v8079_v38, %v9686_v1 }
 0x349   : > { %v3273_v8 = vpop.f32.mrf.mxu1 }
 0x34b   : > { %v8080_v2 = vpop.f32.mrf.mxu1 }
 0x34d   : > { %v3276_v36 = vpop.f32.mrf.mxu1 }
 0x34f   : > { %v9710_v33 = vpop.f32.mrf.mxu1 }
 0x351   : > { %v9712_v4 = vpop.f32.mrf.mxu1 }
 0x353   : > { %v9714_v41 = vpop.f32.mrf.mxu1 }
 0x355   : > { %v9716_v43 = vpop.f32.mrf.mxu1 }
 0x357   : > { %v9718_v37 = vpop.f32.mrf.mxu1 }
 0x359   : > { %v9720_v10 = vpop.f32.mrf.mxu1 }
 0x35b   : > { %v9722_v46 = vpop.f32.mrf.mxu1 }
 0x35d   : > { %v9724_v47 = vpop.f32.mrf.mxu1 }
 0x35f   : > { %v8119_v48 = vpop.f32.mrf.mxu1 }
 0x360   : > { %v3676_v61 = vadd.f32 %v8119_v48, %v3322_v19  ;;  %v3324_v19 = vadd.f32 %v3273_v8, %v9688_v20  ;;  %v3325_v20 = vadd.f32 %v3276_v36, %v9692_v58 }
 0x361   : > { %v3611_v12 = vpop.f32.mrf.mxu1 }
 0x362   : > { %v3674_v14 = vadd.f32 %v3611_v12, %v3320_v40 }
 0x363   : > { %v8120_v50 = vpop.f32.mrf.mxu1 }
 0x364   : > { %v3677_v30 = vadd.f32 %v8120_v50, %v3323_v13  ;;  %v3327_v50 = vadd.f32 %v8080_v2, %v9690_v9  ;;  %v3330_v2 = vadd.f32 %v9710_v33, %v9694_v51 }
 0x365   : > { %v3614_v29 = vpop.f32.mrf.mxu1 }
 0x366   : > { %v3675_v32 = vadd.f32 %v3614_v29, %v3321_v26 }
 0x367   : > { %v8123_v39 = vpop.f32.mrf.mxu1 }
 0x368   : > { %v3680_v35 = vadd.f32 %v8123_v39, %v3326_v21 }
 0x369   : > { %v3627_v16 = vpop.f32.mrf.mxu1 }
 0x36b   : > { %v8124_v56 = vpop.f32.mrf.mxu1 }
 0x36c   : > { %v3681_v8 = vadd.f32 %v8124_v56, %v3327_v50  ;;  %v3328_v56 = vadd.f32 %v9712_v4, %v9696_v25 }
 0x36d   : > { %v3630_v34 = vpop.f32.mrf.mxu1 }
 0x36f   : > { %v8127_v42 = vpop.f32.mrf.mxu1 }
 0x371   : > { %v9726_v57 = vpop.f32.mrf.mxu1 }
 0x373   : > { %v9728_v28 = vpop.f32.mrf.mxu1 }
 0x375   : > { %v9730_v45 = vpop.f32.mrf.mxu1 }
 0x377   : > { %v9732_v44 = vpop.f32.mrf.mxu1 }
 0x379   : > { %v9734_v49 = vpop.f32.mrf.mxu1 }
 0x37b   : > { %v9736_v62 = vpop.f32.mrf.mxu1 }
 0x37d   : > { %v9743_v3 = vpop.f32.mrf.mxu1 }
 0x37f   : > { %v8163_v5 = vpop.f32.mrf.mxu1 }
 0x380   : > { %v4030_v11 = vadd.f32 %v8163_v5, %v3676_v61  ;;  %v3678_v61 = vadd.f32 %v3627_v16, %v3324_v19  ;;  %v3679_v16 = vadd.f32 %v3630_v34, %v3325_v20  ;;  %v3331_v34 = vadd.f32 %v9714_v41, %v9698_v55  ;;  %v8368_v20 = vld [vmem:[%s9641_s30 + $0x70] sm:$0xff]  }
 0x381   : > { %v3965_v15 = vpop.f32.mrf.mxu1 }
 0x382   : > { %v4053_v17 = vadd.f32 %v9746_v60, %v4030_v11  ;;  %v4028_v53 = vadd.f32 %v3965_v15, %v3674_v14 }
 0x383   : > { %v8164_v23 = vpop.f32.mrf.mxu1 }
 0x384   : > { %v4069_v27 = vmax.f32 %v4053_v17, 0.0  ;;  %v4051_v7 = vadd.f32 %v9746_v60, %v4028_v53  ;;  %v4031_v48 = vadd.f32 %v8164_v23, %v3677_v30  ;;  %v3684_v53 = vadd.f32 %v8127_v42, %v3330_v2 }
 0x385   : > { %v3968_v31 = vpop.f32.mrf.mxu1  ;;  %v3329_v42 = vadd.f32 %v9716_v43, %v9700_v63 }
 0x386   : > { %v7507_v12 = vpack.c.bf16 %v4069_v27, %v4069_v27  ;;  %v4067_v40 = vmax.f32 %v4051_v7, 0.0  ;;  %v4054_v54 = vadd.f32 %v9746_v60, %v4031_v48  ;;  %v4029_v18 = vadd.f32 %v3968_v31, %v3675_v32 }
 0x387   : > { %v8167_v1 = vpop.f32.mrf.mxu1  ;;  %v3682_v27 = vadd.f32 %v9726_v57, %v3328_v56 }
 0x388   : > { %4150 = vst.msk [vmem:[#allocation2 + $0x8] sm:$0xf] %vm4147_vm2, %v7507_v12  ;;  %v7505_v38 = vpack.c.bf16 %v4067_v40, %v4067_v40  ;;  %v4070_v29 = vmax.f32 %v4054_v54, 0.0  ;;  %v4052_v5 = vadd.f32 %v9746_v60, %v4029_v18  ;;  %v4034_v13 = vadd.f32 %v8167_v1, %v3680_v35 }
 0x389   : > { %v3981_v39 = vpop.f32.mrf.mxu1  ;;  %v3685_v35 = vadd.f32 %v9728_v28, %v3331_v34  ;;  %v3334_v40 = vadd.f32 %v9718_v37, %v9702_v6  ;;  %v3683_v54 = vadd.f32 %v9730_v45, %v3329_v42 }
 0x38a   : > { %4148 = vst.msk [vmem:[#allocation2] sm:$0xf] %vm4147_vm2, %v7505_v38  ;;  %v7508_v14 = vpack.c.bf16 %v4070_v29, %v4070_v29  ;;  %v4068_v11 = vmax.f32 %v4052_v5, 0.0  ;;  %v4057_v15 = vadd.f32 %v9746_v60, %v4034_v13  ;;  %v4032_v9 = vadd.f32 %v3981_v39, %v3678_v61 }
 0x38b   : > { %v8168_v26 = vpop.f32.mrf.mxu1  ;;  %v3332_v61 = vadd.f32 %v9720_v10, %v9704_v52  ;;  %v3688_v1 = vadd.f32 %v9732_v44, %v3334_v40  ;;  %v8388_v40 = vld [vmem:[%s8966_s2 + $0x64] ss:$8 sps:$4 sm:$0xff]  }
 0x38c   : > { %4151 = vst.msk [vmem:[#allocation2 + $0xc] sm:$0xf] %vm4147_vm2, %v7508_v14  ;;  %v7506_v30 = vpack.c.bf16 %v4068_v11, %v4068_v11  ;;  %v4073_v17 = vmax.f32 %v4057_v15, 0.0  ;;  %v4055_v58 = vadd.f32 %v9746_v60, %v4032_v9  ;;  %v4035_v36 = vadd.f32 %v8168_v26, %v3681_v8  ;;  %v8371_v26 = vld [vmem:[%s9641_s30 + $0x68] sm:$0xff]  }
 0x38d   : > { %v3984_v21 = vpop.f32.mrf.mxu1  ;;  %v3335_v8 = vadd.f32 %v9722_v46, %v9706_v22  ;;  %v3686_v39 = vadd.f32 %v9734_v49, %v3332_v61  ;;  %v3333_v15 = vadd.f32 %v9724_v47, %v9708_v24  ;;  %v8397_v61 = vld [vmem:[%s8966_s2 + $0xc4] ss:$8 sps:$4 sm:$0xff]  }
 0x38e   : > { %4149 = vst.msk [vmem:[#allocation2 + $0x4] sm:$0xf] %vm4147_vm2, %v7506_v30  ;;  %v7511_v23 = vpack.c.bf16 %v4073_v17, %v4073_v17  ;;  %v4071_v32 = vmax.f32 %v4055_v58, 0.0  ;;  %v4058_v51 = vadd.f32 %v9746_v60, %v4035_v36  ;;  %v4033_v33 = vadd.f32 %v3984_v21, %v3679_v16 }
 0x38f   : > { %v8171_v7 = vpop.f32.mrf.mxu1  ;;  %v3689_v22 = vadd.f32 %v9736_v62, %v3335_v8  ;;  %v3687_v30 = vadd.f32 %v9743_v3, %v3333_v15  ;;  %v8407_v8 = vld [vmem:[%s8966_s2 + $0xa0] ss:$8 sps:$4 sm:$0xff]   ;;  %v8421_v15 = vld [vmem:[%s8966_s2 + $0x84] ss:$8 sps:$4 sm:$0xff]  }
 0x390   : > { %4154 = vst.msk [vmem:[#allocation2 + $0x18] sm:$0xf] %vm4147_vm2, %v7511_v23  ;;  %v7509_v48 = vpack.c.bf16 %v4071_v32, %v4071_v32  ;;  %v4074_v19 = vmax.f32 %v4058_v51, 0.0  ;;  %v4056_v25 = vadd.f32 %v9746_v60, %v4033_v33  ;;  %v4038_v4 = vadd.f32 %v8171_v7, %v3684_v53  ;;  %v8367_v32 = vld [vmem:[%s9641_s30 + $0x50] sm:$0xff]   ;;  %v8373_v51 = vld [vmem:[%s9641_s30 + $0x60] sm:$0xff]  }
 0x391   : > { %v3997_v31 = vpop.f32.mrf.mxu1 }
 0x392   : > { %4152 = vst.msk [vmem:[#allocation2 + $0x10] sm:$0xf] %vm4147_vm2, %v7509_v48  ;;  %v7512_v12 = vpack.c.bf16 %v4074_v19, %v4074_v19  ;;  %v4072_v55 = vmax.f32 %v4056_v25, 0.0  ;;  %v4061_v41 = vadd.f32 %v9746_v60, %v4038_v4  ;;  %v4036_v57 = vadd.f32 %v3997_v31, %v3682_v27  ;;  %v8369_v19 = vld [vmem:[%s9641_s30 + $0x48] sm:$0xff]   ;;  %v8379_v31 = vld [vmem:[%s8966_s2 + $0xf4] ss:$8 sps:$4 sm:$0xff]  }
 0x393   : > { %v8172_v18 = vpop.f32.mrf.mxu1  ;;  %v8362_v13 = vld [vmem:[#allocation2 + $0x8] sm:$0xff]  }
 0x394   : > { %4155 = vst.msk [vmem:[#allocation2 + $0x1c] sm:$0xf] %vm4147_vm2, %v7512_v12  ;;  %v7510_v63 = vpack.c.bf16 %v4072_v55, %v4072_v55  ;;  %v4077_v43 = vmax.f32 %v4061_v41, 0.0  ;;  %v4059_v28 = vadd.f32 %v9746_v60, %v4036_v57  ;;  %v4039_v50 = vadd.f32 %v8172_v18, %v3685_v35  ;;  %v8382_v12 = vld [vmem:[%s8966_s2 + $0x74] ss:$8 sps:$4 sm:$0xff]  }
 0x395   : > { %v4000_v38 = vpop.f32.mrf.mxu1  ;;  %v8360_v29 = vld [vmem:[#allocation2] sm:$0xff]   ;;  %v8377_v55 = vld [vmem:[%s8966_s2 + $0xf0] ss:$8 sps:$4 sm:$0xff]  }
 0x396   : > { %4153 = vst.msk [vmem:[#allocation2 + $0x14] sm:$0xf] %vm4147_vm2, %v7510_v63  ;;  %v7515_v6 = vpack.c.bf16 %v4077_v43, %v4077_v43  ;;  %v4075_v37 = vmax.f32 %v4059_v28, 0.0  ;;  %v4062_v45 = vadd.f32 %v9746_v60, %v4039_v50  ;;  %v4037_v5 = vadd.f32 %v4000_v38, %v3683_v54  ;;  %8197 = vmatprep.mubr.msk.bf16.mxu1 %vm944_vm0, %v8360_v29  ;;  %v8380_v41 = vld [vmem:[%s8966_s2 + $0x70] ss:$8 sps:$4 sm:$0xff]  }
 0x397   : > { %v8175_v14 = vpop.f32.mrf.mxu1  ;;  %8198 = vmatmul.mubr.msk.bf16.vlgmr.msra.gmra.mxu1 %vm944_vm0, %v8362_v13  ;;  %v8385_v57 = vld [vmem:[%s8966_s2 + $0xe4] ss:$8 sps:$4 sm:$0xff]   ;;  %v8383_v54 = vld [vmem:[%s8966_s2 + $0xe0] ss:$8 sps:$4 sm:$0xff]   ;;  %v8391_v63 = vld [vmem:[%s8966_s2 + $0xd4] ss:$8 sps:$4 sm:$0xff]  }
 0x398   : > { %4158 = vst.msk [vmem:[#allocation2 + $0x28] sm:$0xf] %vm4147_vm2, %v7515_v6  ;;  %v7513_v52 = vpack.c.bf16 %v4075_v37, %v4075_v37  ;;  %v4078_v10 = vmax.f32 %v4062_v45, 0.0  ;;  %v4060_v44 = vadd.f32 %v9746_v60, %v4037_v5  ;;  %v4042_v11 = vadd.f32 %v8175_v14, %v3688_v1  ;;  %8214 = vmatpush3.bf16.msra.mxu1 %v9670_v0  ;;  %v8386_v18 = vld [vmem:[%s8966_s2 + $0x60] ss:$8 sps:$4 sm:$0xff]  }
 0x399   : > { %v4013_v46 = vpop.f32.mrf.mxu1  ;;  %8215 = vmatprep.subr.bf16.mxu1 %v8368_v20  ;;  %v8394_v43 = vld [vmem:[%s8966_s2 + $0x54] ss:$8 sps:$4 sm:$0xff]   ;;  %v8389_v28 = vld [vmem:[%s8966_s2 + $0xd0] ss:$8 sps:$4 sm:$0xff]   ;;  %v8400_v1 = vld [vmem:[%s8966_s2 + $0x44] ss:$8 sps:$4 sm:$0xff]  }
 0x39a   : > { %4156 = vst.msk [vmem:[#allocation2 + $0x20] sm:$0xf] %vm4147_vm2, %v7513_v52  ;;  %v7516_v49 = vpack.c.bf16 %v4078_v10, %v4078_v10  ;;  %v4076_v9 = vmax.f32 %v4060_v44, 0.0  ;;  %v4065_v2 = vadd.f32 %v9746_v60, %v4042_v11  ;;  %v4040_v16 = vadd.f32 %v4013_v46, %v3686_v39  ;;  %v8392_v50 = vld [vmem:[%s8966_s2 + $0x50] ss:$8 sps:$4 sm:$0xff]  }
 0x39b   : > { %v8176_v17 = vpop.f32.mrf.mxu1  ;;  %v8365_v23 = vld [vmem:[#allocation2 + $0x18] sm:$0xff]   ;;  %v8395_v38 = vld [vmem:[%s8966_s2 + $0xc0] ss:$8 sps:$4 sm:$0xff]   ;;  %v8409_v13 = vld [vmem:[%s8966_s2 + $0xa4] ss:$8 sps:$4 sm:$0xff]  }
 0x39c   : > { %4159 = vst.msk [vmem:[#allocation2 + $0x2c] sm:$0xf] %vm4147_vm2, %v7516_v49  ;;  %v7514_v24 = vpack.c.bf16 %v4076_v9, %v4076_v9  ;;  %v4081_v47 = vmax.f32 %v4065_v2, 0.0  ;;  %v4063_v0 = vadd.f32 %v9746_v60, %v4040_v16  ;;  %v4043_v62 = vadd.f32 %v8176_v17, %v3689_v22  ;;  %8216 = vmatpush3.bf16.msra.mxu1 %v8368_v20  ;;  %v8398_v29 = vld [vmem:[%s8966_s2 + $0x40] ss:$8 sps:$4 sm:$0xff]  }
 0x39d   : > { %v4016_v58 = vpop.f32.mrf.mxu1  ;;  %v8363_v36 = vld [vmem:[#allocation2 + $0x10] sm:$0xff]   ;;  %8217 = vmatprep.subr.bf16.mxu1 %v8371_v26  ;;  %v8412_v20 = vld [vmem:[%s8966_s2 + $0x24] ss:$8 sps:$4 sm:$0xff]   ;;  %v8410_v39 = vld [vmem:[%s8966_s2 + $0x20] ss:$8 sps:$4 sm:$0xff]   ;;  %v8768_v49 = vmov 0  }
 0x39e   : > { %4157 = vst.msk [vmem:[#allocation2 + $0x24] sm:$0xf] %vm4147_vm2, %v7514_v24  ;;  %v7519_v56 = vpack.c.bf16 %v4081_v47, %v4081_v47  ;;  %v4079_v53 = vmax.f32 %v4063_v0, 0.0  ;;  %v4066_v21 = vadd.f32 %v9746_v60, %v4043_v62  ;;  %v4041_v3 = vadd.f32 %v4016_v58, %v3687_v30  ;;  %8185 = vmatprep.mubr.msk.bf16.mxu0 %vm944_vm0, %v8363_v36  ;;  %v8403_v6 = vld [vmem:[%s8966_s2 + $0xb4] ss:$8 sps:$4 sm:$0xff]  }
 0x39f   : > { %8186 = vmatmul.mubr.msk.bf16.vlgmr.msra.gmra.mxu0 %vm944_vm0, %v8365_v23  ;;  %v8406_v37 = vld [vmem:[%s8966_s2 + $0x34] ss:$8 sps:$4 sm:$0xff]   ;;  %v8401_v45 = vld [vmem:[%s8966_s2 + $0xb0] ss:$8 sps:$4 sm:$0xff]   ;;  %v8419_v11 = vld [vmem:[%s8966_s2 + $0x80] ss:$8 sps:$4 sm:$0xff]  }
 0x3a0   : > { %4162 = vst.msk [vmem:[#allocation2 + $0x38] sm:$0xf] %vm4147_vm2, %v7519_v56  ;;  %v7517_v33 = vpack.c.bf16 %v4079_v53, %v4079_v53  ;;  %v4082_v34 = vmax.f32 %v4066_v21, 0.0  ;;  %v4064_v27 = vadd.f32 %v9746_v60, %v4041_v3  ;;  %8202 = vmatpush3.bf16.msra.mxu0 %v9665_v59  ;;  %8218 = vmatpush3.bf16.msra.mxu1 %v8371_v26  ;;  %v8372_v59 = vld [vmem:[%s9641_s30 + $0x40] sm:$0xff]   ;;  %v8404_v5 = vld [vmem:[%s8966_s2 + $0x30] ss:$8 sps:$4 sm:$0xff]   ;;  %s10101_s30 = scalar_lea.vmem %s10163_s15, %s7499_s28 }
 0x3a1   : > { %8203 = vmatprep.subr.bf16.mxu0 %v8367_v32  ;;  %8219 = vmatprep.subr.bf16.mxu1 %v8373_v51  ;;  %v8415_v14 = vld [vmem:[%s8966_s2 + $0x94] ss:$8 sps:$4 sm:$0xff]   ;;  %v8413_v10 = vld [vmem:[%s8966_s2 + $0x90] ss:$8 sps:$4 sm:$0xff]   ;;  %v8422_v22 = vld [vmem:[%s8966_s2] ss:$8 sps:$4 sm:$0xff]  }
 0x3a2   : > { %4160 = vst.msk [vmem:[#allocation2 + $0x30] sm:$0xf] %vm4147_vm2, %v7517_v33  ;;  %v7520_v7 = vpack.c.bf16 %v4082_v34, %v4082_v34  ;;  %v4080_v48 = vmax.f32 %v4064_v27, 0.0  ;;  %v8418_v52 = vld [vmem:[%s8966_s2 + $0x14] ss:$8 sps:$4 sm:$0xff]  }
 0x3a3   : > { %v8374_v42 = vld [vmem:[#allocation2 + $0x28] sm:$0xff]   ;;  %v8416_v44 = vld [vmem:[%s8966_s2 + $0x10] ss:$8 sps:$4 sm:$0xff]   ;;  %v8427_v9 = vld [vmem:[%s8966_s2 + $0x174] ss:$8 sps:$4 sm:$0xff]  }
 0x3a4   : > { %4163 = vst.msk [vmem:[#allocation2 + $0x3c] sm:$0xf] %vm4147_vm2, %v7520_v7  ;;  %v7518_v25 = vpack.c.bf16 %v4080_v48, %v4080_v48  ;;  %8204 = vmatpush3.bf16.msra.mxu0 %v8367_v32  ;;  %8220 = vmatpush3.bf16.msra.mxu1 %v8373_v51  ;;  %v8424_v46 = vld [vmem:[%s8966_s2 + $0x4] ss:$8 sps:$4 sm:$0xff]   ;;  %v8430_v2 = vld [vmem:[%s8966_s2 + $0x1f4] ss:$8 sps:$4 sm:$0xff]  }
 0x3a5   : > { %v8370_v4 = vld [vmem:[#allocation2 + $0x20] sm:$0xff]   ;;  %8205 = vmatprep.subr.bf16.mxu0 %v8369_v19  ;;  %4846 = vmatprep.subr.bf16.mxu1 %v8382_v12 }
 0x3a6   : > { %4161 = vst.msk [vmem:[#allocation2 + $0x34] sm:$0xf] %vm4147_vm2, %v7518_v25  ;;  %8209 = vmatprep.mubr.msk.bf16.mxu0 %vm944_vm0, %v8370_v4  ;;  %v7237_v34 = vld [vmem:[%s800_s26] ss:$0 sm:$0xff] }
 0x3a8   : > { %8206 = vmatpush3.bf16.msra.mxu0 %v8369_v19 }
 0x3a9   : > { %8207 = vmatprep.subr.bf16.mxu0 %v8372_v59 }
 0x3ab   : > { %v8376_v35 = vld [vmem:[#allocation2 + $0x38] sm:$0xff]  }
 0x3ac   : > { %8208 = vmatpush3.bf16.msra.mxu0 %v8372_v59 }
 0x3ad   : > { %v8375_v60 = vld [vmem:[#allocation2 + $0x30] sm:$0xff]   ;;  %4725 = vmatprep.subr.bf16.mxu0 %v8379_v31 }
 0x3ae   : > { %8221 = vmatprep.mubr.msk.bf16.mxu1 %vm944_vm0, %v8375_v60 }
 0x3af   : > { %8210 = vmatmul.mubr.msk.bf16.vlgmr.msra.gmra.mxu0 %vm944_vm0, %v8374_v42  ;;  %8222 = vmatmul.mubr.msk.bf16.vlgmr.msra.gmra.mxu1 %vm944_vm0, %v8376_v35 }
 0x3b0   : > { %4726 = vmatpush1.bf16.msra.mxu0 %v8377_v55  ;;  %4847 = vmatpush1.bf16.msra.mxu1 %v8380_v41 }
 0x3b1   : > { %4727 = vmatprep.subr.bf16.mxu0 %v8385_v57  ;;  %4848 = vmatprep.subr.bf16.mxu1 %v8388_v40 }
 0x3b2   : > { %4757 = vmatprep.mubr.bf16.mxu0 %v8768_v49  ;;  %4878 = vmatprep.mubr.bf16.mxu1 %v8768_v49 }
 0x3b4   : > { %4728 = vmatpush1.bf16.msra.mxu0 %v8383_v54  ;;  %4849 = vmatpush1.bf16.msra.mxu1 %v8386_v18 }
 0x3b5   : > { %4729 = vmatprep.subr.bf16.mxu0 %v8391_v63  ;;  %4850 = vmatprep.subr.bf16.mxu1 %v8394_v43 }
 0x3b8   : > { %4730 = vmatpush1.bf16.msra.mxu0 %v8389_v28  ;;  %4851 = vmatpush1.bf16.msra.mxu1 %v8392_v50  ;;  %v8425_v28 = vld [vmem:[%s8966_s2 + $0x170] ss:$8 sps:$4 sm:$0xff]  }
 0x3b9   : > { %4731 = vmatprep.subr.bf16.mxu0 %v8397_v61  ;;  %4852 = vmatprep.subr.bf16.mxu1 %v8400_v1  ;;  %v8428_v50 = vld [vmem:[%s8966_s2 + $0x1f0] ss:$8 sps:$4 sm:$0xff]   ;;  %v8433_v61 = vld [vmem:[%s8966_s2 + $0x164] ss:$8 sps:$4 sm:$0xff]  }
 0x3ba   : > { %v8436_v1 = vld [vmem:[%s8966_s2 + $0x1e4] ss:$8 sps:$4 sm:$0xff]  }
 0x3bc   : > { %4732 = vmatpush1.bf16.msra.mxu0 %v8395_v38  ;;  %4853 = vmatpush1.bf16.msra.mxu1 %v8398_v29 }
 0x3bd   : > { %4733 = vmatprep.subr.bf16.mxu0 %v8403_v6  ;;  %4854 = vmatprep.subr.bf16.mxu1 %v8406_v37  ;;  %v8431_v6 = vld [vmem:[%s8966_s2 + $0x160] ss:$8 sps:$4 sm:$0xff]  }
 0x3be   : > { %v8434_v37 = vld [vmem:[%s8966_s2 + $0x1e0] ss:$8 sps:$4 sm:$0xff]  }
 0x3c0   : > { %4734 = vmatpush1.bf16.msra.mxu0 %v8401_v45  ;;  %4855 = vmatpush1.bf16.msra.mxu1 %v8404_v5  ;;  %v8439_v45 = vld [vmem:[%s8966_s2 + $0x154] ss:$8 sps:$4 sm:$0xff]  }
 0x3c1   : > { %4735 = vmatprep.subr.bf16.mxu0 %v8409_v13  ;;  %4856 = vmatprep.subr.bf16.mxu1 %v8412_v20  ;;  %v8442_v5 = vld [vmem:[%s8966_s2 + $0x1d4] ss:$8 sps:$4 sm:$0xff]   ;;  %v8437_v13 = vld [vmem:[%s8966_s2 + $0x150] ss:$8 sps:$4 sm:$0xff]  }
 0x3c2   : > { %v8440_v20 = vld [vmem:[%s8966_s2 + $0x1d0] ss:$8 sps:$4 sm:$0xff]  }
 0x3c4   : > { %4736 = vmatpush1.bf16.msra.mxu0 %v8407_v8  ;;  %4857 = vmatpush1.bf16.msra.mxu1 %v8410_v39  ;;  %v8445_v8 = vld [vmem:[%s8966_s2 + $0x144] ss:$8 sps:$4 sm:$0xff]  }
 0x3c5   : > { %4737 = vmatprep.subr.bf16.mxu0 %v8415_v14  ;;  %4858 = vmatprep.subr.bf16.mxu1 %v8418_v52  ;;  %v8448_v39 = vld [vmem:[%s8966_s2 + $0x1c4] ss:$8 sps:$4 sm:$0xff]   ;;  %v8443_v14 = vld [vmem:[%s8966_s2 + $0x140] ss:$8 sps:$4 sm:$0xff]  }
 0x3c6   : > { %v8446_v52 = vld [vmem:[%s8966_s2 + $0x1c0] ss:$8 sps:$4 sm:$0xff]  }
 0x3c8   : > { %4738 = vmatpush1.bf16.msra.mxu0 %v8413_v10  ;;  %4859 = vmatpush1.bf16.msra.mxu1 %v8416_v44  ;;  %v8451_v10 = vld [vmem:[%s8966_s2 + $0x134] ss:$8 sps:$4 sm:$0xff]  }
 0x3c9   : > { %4739 = vmatprep.subr.bf16.mxu0 %v8421_v15  ;;  %4860 = vmatprep.subr.bf16.mxu1 %v8424_v46  ;;  %v8454_v44 = vld [vmem:[%s8966_s2 + $0x1b4] ss:$8 sps:$4 sm:$0xff]   ;;  %v8452_v15 = vld [vmem:[%s8966_s2 + $0x1b0] ss:$8 sps:$4 sm:$0xff]   ;;  %v8460_v46 = vld [vmem:[%s8966_s2 + $0x1a4] ss:$8 sps:$4 sm:$0xff]  }
 0x3cc   : > { %4740 = vmatpush1.bf16.msra.mxu0 %v8419_v11  ;;  %4861 = vmatpush1.bf16.msra.mxu1 %v8422_v22  ;;  %v8449_v11 = vld [vmem:[%s8966_s2 + $0x130] ss:$8 sps:$4 sm:$0xff]   ;;  %v8457_v22 = vld [vmem:[%s8966_s2 + $0x124] ss:$8 sps:$4 sm:$0xff]  }
 0x3cd   : > { %4984 = vmatprep.subr.bf16.mxu0 %v8427_v9  ;;  %5124 = vmatprep.subr.bf16.mxu1 %v8430_v2  ;;  %v8455_v9 = vld [vmem:[%s8966_s2 + $0x120] ss:$8 sps:$4 sm:$0xff]  }
 0x3ce   : > { %v8458_v2 = vld [vmem:[%s8966_s2 + $0x1a0] ss:$8 sps:$4 sm:$0xff]  }
 0x457   : > { %v8199_v16 = vpop.f32.mrf.mxu1 }
 0x459   : > { %v4351_v30 = vpop.f32.mrf.mxu1 }
 0x45b   : > { %v8200_v24 = vpop.f32.mrf.mxu1 }
 0x45d   : > { %v4354_v0 = vpop.f32.mrf.mxu1 }
 0x45f   : > { %v8187_v26 = vpop.f32.mrf.mxu0 }
 0x460   : > { %v4360_v58 = vadd.f32 %v8199_v16, %v8187_v26  ;;  %v8463_v16 = vld [vmem:[%s8966_s2 + $0x114] ss:$8 sps:$4 sm:$0xff]  }
 0x461   : > { %v4262_v17 = vpop.f32.mrf.mxu0  ;;  %v8466_v26 = vld [vmem:[%s8966_s2 + $0x194] ss:$8 sps:$4 sm:$0xff]  }
 0x462   : > { %v4352_v53 = vadd.f32 %v4351_v30, %v4262_v17  ;;  %v8461_v30 = vld [vmem:[%s8966_s2 + $0x110] ss:$8 sps:$4 sm:$0xff]  }
 0x463   : > { %v8188_v47 = vpop.f32.mrf.mxu0  ;;  %v8464_v17 = vld [vmem:[%s8966_s2 + $0x190] ss:$8 sps:$4 sm:$0xff]  }
 0x464   : > { %v4363_v32 = vadd.f32 %v8200_v24, %v8188_v47  ;;  %v8469_v24 = vld [vmem:[%s8966_s2 + $0x104] ss:$8 sps:$4 sm:$0xff]  }
 0x465   : > { %v4265_v62 = vpop.f32.mrf.mxu0  ;;  %v8472_v47 = vld [vmem:[%s8966_s2 + $0x184] ss:$8 sps:$4 sm:$0xff]  }
 0x466   : > { %v4355_v48 = vadd.f32 %v4354_v0, %v4265_v62  ;;  %v8467_v0 = vld [vmem:[%s8966_s2 + $0x100] ss:$8 sps:$4 sm:$0xff]  }
 0x467   : > { %v8470_v62 = vld [vmem:[%s8966_s2 + $0x180] ss:$8 sps:$4 sm:$0xff]   ;;  %s9964_s2 = sshll.u32 %s10184_s24, 1 }
 0x468   : > { %s809_s27 = scalar_lea.vmem %s10157_s9, %s9964_s2  ;;  %s832_s22 = scalar_lea.vmem %s10162_s14, %s9964_s2 }
 0x469   : > { %s847_s29 = scalar_lea.vmem %s10165_s17, %s9964_s2 }
 0x46f   : > { %v8211_v36 = vpop.f32.mrf.mxu0  ;;  %v8223_v56 = vpop.f32.mrf.mxu1 }
 0x470   : > { %v4469_v21 = vadd.f32 %v8211_v36, %v4360_v58  ;;  %v8475_v58 = vld [vmem:[%s8973_s23 + $0x74] ss:$8 sps:$4 sm:$0xff]  }
 0x471   : > { %v4452_v3 = vpop.f32.mrf.mxu0  ;;  %v4557_v23 = vpop.f32.mrf.mxu1  ;;  %v8478_v36 = vld [vmem:[%s8973_s23 + $0x174] ss:$8 sps:$4 sm:$0xff]  }
 0x472   : > { %v4574_v51 = vadd.f32 %v8223_v56, %v4469_v21  ;;  %v4467_v33 = vadd.f32 %v4452_v3, %v4352_v53  ;;  %v8473_v56 = vld [vmem:[%s8973_s23 + $0x70] ss:$8 sps:$4 sm:$0xff]   ;;  %v8481_v21 = vld [vmem:[%s8973_s23 + $0x64] ss:$8 sps:$4 sm:$0xff]  }
 0x473   : > { %v8212_v27 = vpop.f32.mrf.mxu0  ;;  %v8224_v7 = vpop.f32.mrf.mxu1  ;;  %v8476_v53 = vld [vmem:[%s8973_s23 + $0x170] ss:$8 sps:$4 sm:$0xff]   ;;  %v8484_v3 = vld [vmem:[%s8973_s23 + $0x164] ss:$8 sps:$4 sm:$0xff]  }
 0x474   : > { %v4572_v19 = vadd.f32 %v4557_v23, %v4467_v33  ;;  %v4470_v25 = vadd.f32 %v8212_v27, %v4363_v32  ;;  %v4585_v60 = vadd.f32 %v7237_v34, %v4574_v51  ;;  %v8479_v51 = vld [vmem:[%s8973_s23 + $0x60] ss:$8 sps:$4 sm:$0xff]   ;;  %v8485_v27 = vld [vmem:[%s8973_s23 + $0x50] ss:$8 sps:$4 sm:$0xff]  }
 0x475   : > { %v4455_v4 = vpop.f32.mrf.mxu0  ;;  %v4560_v59 = vpop.f32.mrf.mxu1  ;;  %v8482_v33 = vld [vmem:[%s8973_s23 + $0x160] ss:$8 sps:$4 sm:$0xff]  }
 0x476   : > { %v4575_v42 = vadd.f32 %v8224_v7, %v4470_v25  ;;  %v4468_v35 = vadd.f32 %v4455_v4, %v4355_v48  ;;  %v4583_v31 = vadd.f32 %v7237_v34, %v4572_v19  ;;  %v4589_v41 = vmax.f32 %v4585_v60, 0.0  ;;  %v8490_v7 = vld [vmem:[%s8973_s23 + $0x154] ss:$8 sps:$4 sm:$0xff]   ;;  %v8488_v48 = vld [vmem:[%s8973_s23 + $0x150] ss:$8 sps:$4 sm:$0xff]  }
 0x477   : > { %v8493_v19 = vld [vmem:[%s8973_s23 + $0x44] ss:$8 sps:$4 sm:$0xff]   ;;  %v8491_v25 = vld [vmem:[%s8973_s23 + $0x40] ss:$8 sps:$4 sm:$0xff]   ;;  %v8499_v60 = vld [vmem:[%s8973_s23 + $0x34] ss:$8 sps:$4 sm:$0xff]  }
 0x478   : > { %v4586_v12 = vadd.f32 %v7237_v34, %v4575_v42  ;;  %v4573_v55 = vadd.f32 %v4560_v59, %v4468_v35  ;;  %v4587_v54 = vmax.f32 %v4583_v31, 0.0  ;;  %v8496_v4 = vld [vmem:[%s8973_s23 + $0x144] ss:$8 sps:$4 sm:$0xff]   ;;  %v8494_v59 = vld [vmem:[%s8973_s23 + $0x140] ss:$8 sps:$4 sm:$0xff]  }
 0x479   : > { %v8497_v42 = vld [vmem:[%s8973_s23 + $0x30] ss:$8 sps:$4 sm:$0xff]   ;;  %v8502_v31 = vld [vmem:[%s8973_s23 + $0x134] ss:$8 sps:$4 sm:$0xff]  }
 0x47a   : > { %v4590_v57 = vmax.f32 %v4586_v12, 0.0  ;;  %v4584_v40 = vadd.f32 %v7237_v34, %v4573_v55  ;;  %v8487_v34 = vld [vmem:[%s8973_s23 + $0x54] ss:$8 sps:$4 sm:$0xff]   ;;  %v8500_v35 = vld [vmem:[%s8973_s23 + $0x130] ss:$8 sps:$4 sm:$0xff]  }
 0x47b   : > { %v8505_v12 = vld [vmem:[%s8973_s23 + $0x24] ss:$8 sps:$4 sm:$0xff]   ;;  %v8503_v55 = vld [vmem:[%s8973_s23 + $0x20] ss:$8 sps:$4 sm:$0xff]  }
 0x47c   : > { %v7534_v18 = vpack.c.bf16 %v4590_v57, %v4589_v41  ;;  %v4588_v63 = vmax.f32 %v4584_v40, 0.0  ;;  %v8508_v41 = vld [vmem:[%s8973_s23 + $0x124] ss:$8 sps:$4 sm:$0xff]   ;;  %v8511_v57 = vld [vmem:[%s8973_s23 + $0x14] ss:$8 sps:$4 sm:$0xff]  }
 0x47d   : > { %v8506_v40 = vld [vmem:[%s8973_s23 + $0x120] ss:$8 sps:$4 sm:$0xff]  }
 0x47e   : > { %7536 = vst [vmem:[#allocation3 + $0x8] sm:$0xff] %v7534_v18   ;;  %v7529_v43 = vpack.c.bf16 %v4588_v63, %v4587_v54  ;;  %v8514_v54 = vld [vmem:[%s8973_s23 + $0x114] ss:$8 sps:$4 sm:$0xff]   ;;  %v8509_v18 = vld [vmem:[%s8973_s23 + $0x10] ss:$8 sps:$4 sm:$0xff]  }
 0x47f   : > { %v8517_v63 = vld [vmem:[%s8973_s23 + $0x4] ss:$8 sps:$4 sm:$0xff]  }
 0x480   : > { %7530 = vst [vmem:[#allocation3] sm:$0xff] %v7529_v43   ;;  %v8512_v43 = vld [vmem:[%s8973_s23 + $0x110] ss:$8 sps:$4 sm:$0xff]  }
 0x485   : > { %v4887_v23 = vld [vmem:[#allocation3 + $0x8] sm:$0xf]  ;;  %v5027_v32 = vld [vmem:[#allocation3 + $0xc] sm:$0xf] }
 0x487   : > { %v4628_v38 = vld [vmem:[#allocation3 + $0x4] sm:$0xf]  ;;  %v4611_v29 = vld [vmem:[#allocation3] sm:$0xf] }
 0x488   : > { %4758 = vmatmul.mubr.bf16.vlgmr.msra.gmra.mxu0 %v4628_v38  ;;  %4879 = vmatmul.mubr.bf16.vlgmr.msra.gmra.mxu1 %v4611_v29  ;;  %v8526_v38 = vld [vmem:[%s8973_s23 + $0x1f4] ss:$8 sps:$4 sm:$0xff]   ;;  %v8521_v29 = vld [vmem:[%s8973_s23 + $0xf0] ss:$8 sps:$4 sm:$0xff]  }
 0x489   : > { %4985 = vmatpush1.bf16.msra.mxu0 %v8425_v28  ;;  %5125 = vmatpush1.bf16.msra.mxu1 %v8428_v50  ;;  %v8520_v28 = vld [vmem:[%s8973_s23 + $0x104] ss:$8 sps:$4 sm:$0xff]   ;;  %v8515_v50 = vld [vmem:[%s8973_s23] ss:$8 sps:$4 sm:$0xff]  }
 0x48a   : > { %4986 = vmatprep.subr.bf16.mxu0 %v8433_v61  ;;  %5126 = vmatprep.subr.bf16.mxu1 %v8436_v1  ;;  %v8523_v61 = vld [vmem:[%s8973_s23 + $0xf4] ss:$8 sps:$4 sm:$0xff]   ;;  %v8518_v1 = vld [vmem:[%s8973_s23 + $0x100] ss:$8 sps:$4 sm:$0xff]  }
 0x48b   : > { %5016 = vmatprep.mubr.bf16.mxu0 %v8768_v49  ;;  %5156 = vmatprep.mubr.bf16.mxu1 %v8768_v49 }
 0x48d   : > { %4987 = vmatpush1.bf16.msra.mxu0 %v8431_v6  ;;  %5127 = vmatpush1.bf16.msra.mxu1 %v8434_v37  ;;  %v8529_v6 = vld [vmem:[%s8973_s23 + $0xe4] ss:$8 sps:$4 sm:$0xff]   ;;  %v8524_v37 = vld [vmem:[%s8973_s23 + $0x1f0] ss:$8 sps:$4 sm:$0xff]  }
 0x48e   : > { %4988 = vmatprep.subr.bf16.mxu0 %v8439_v45  ;;  %5128 = vmatprep.subr.bf16.mxu1 %v8442_v5  ;;  %v8532_v45 = vld [vmem:[%s8973_s23 + $0x1e4] ss:$8 sps:$4 sm:$0xff]   ;;  %v8527_v5 = vld [vmem:[%s8973_s23 + $0xe0] ss:$8 sps:$4 sm:$0xff]  }
 0x491   : > { %4989 = vmatpush1.bf16.msra.mxu0 %v8437_v13  ;;  %5129 = vmatpush1.bf16.msra.mxu1 %v8440_v20  ;;  %v8535_v13 = vld [vmem:[%s8973_s23 + $0xd4] ss:$8 sps:$4 sm:$0xff]   ;;  %v8530_v20 = vld [vmem:[%s8973_s23 + $0x1e0] ss:$8 sps:$4 sm:$0xff]  }
 0x492   : > { %4990 = vmatprep.subr.bf16.mxu0 %v8445_v8  ;;  %5130 = vmatprep.subr.bf16.mxu1 %v8448_v39  ;;  %v8533_v8 = vld [vmem:[%s8973_s23 + $0xd0] ss:$8 sps:$4 sm:$0xff]   ;;  %v8538_v39 = vld [vmem:[%s8973_s23 + $0x1d4] ss:$8 sps:$4 sm:$0xff]  }
 0x495   : > { %4991 = vmatpush1.bf16.msra.mxu0 %v8443_v14  ;;  %5131 = vmatpush1.bf16.msra.mxu1 %v8446_v52  ;;  %v8536_v14 = vld [vmem:[%s8973_s23 + $0x1d0] ss:$8 sps:$4 sm:$0xff]   ;;  %v8541_v52 = vld [vmem:[%s8973_s23 + $0xc4] ss:$8 sps:$4 sm:$0xff]  }
 0x496   : > { %4992 = vmatprep.subr.bf16.mxu0 %v8451_v10  ;;  %5132 = vmatprep.subr.bf16.mxu1 %v8454_v44  ;;  %v8539_v10 = vld [vmem:[%s8973_s23 + $0xc0] ss:$8 sps:$4 sm:$0xff]   ;;  %v8544_v44 = vld [vmem:[%s8973_s23 + $0x1c4] ss:$8 sps:$4 sm:$0xff]  }
 0x499   : > { %4993 = vmatpush1.bf16.msra.mxu0 %v8449_v11  ;;  %5133 = vmatpush1.bf16.msra.mxu1 %v8452_v15  ;;  %v8542_v11 = vld [vmem:[%s8973_s23 + $0x1c0] ss:$8 sps:$4 sm:$0xff]   ;;  %v8547_v15 = vld [vmem:[%s8973_s23 + $0xb4] ss:$8 sps:$4 sm:$0xff]  }
 0x49a   : > { %4994 = vmatprep.subr.bf16.mxu0 %v8457_v22  ;;  %5134 = vmatprep.subr.bf16.mxu1 %v8460_v46  ;;  %v8545_v22 = vld [vmem:[%s8973_s23 + $0xb0] ss:$8 sps:$4 sm:$0xff]   ;;  %v8550_v46 = vld [vmem:[%s8973_s23 + $0x1b4] ss:$8 sps:$4 sm:$0xff]  }
 0x49d   : > { %4995 = vmatpush1.bf16.msra.mxu0 %v8455_v9  ;;  %5135 = vmatpush1.bf16.msra.mxu1 %v8458_v2  ;;  %v8548_v9 = vld [vmem:[%s8973_s23 + $0x1b0] ss:$8 sps:$4 sm:$0xff]   ;;  %v8553_v2 = vld [vmem:[%s8973_s23 + $0xa4] ss:$8 sps:$4 sm:$0xff]  }
 0x49e   : > { %4996 = vmatprep.subr.bf16.mxu0 %v8463_v16  ;;  %5136 = vmatprep.subr.bf16.mxu1 %v8466_v26  ;;  %v8551_v16 = vld [vmem:[%s8973_s23 + $0xa0] ss:$8 sps:$4 sm:$0xff]   ;;  %v8556_v26 = vld [vmem:[%s8973_s23 + $0x1a4] ss:$8 sps:$4 sm:$0xff]  }
 0x4a1   : > { %4997 = vmatpush1.bf16.msra.mxu0 %v8461_v30  ;;  %5137 = vmatpush1.bf16.msra.mxu1 %v8464_v17  ;;  %v8554_v30 = vld [vmem:[%s8973_s23 + $0x1a0] ss:$8 sps:$4 sm:$0xff]   ;;  %v8557_v17 = vld [vmem:[%s8973_s23 + $0x90] ss:$8 sps:$4 sm:$0xff]  }
 0x4a2   : > { %4998 = vmatprep.subr.bf16.mxu0 %v8469_v24  ;;  %5138 = vmatprep.subr.bf16.mxu1 %v8472_v47  ;;  %v8559_v24 = vld [vmem:[%s8973_s23 + $0x94] ss:$8 sps:$4 sm:$0xff]   ;;  %v8560_v47 = vld [vmem:[%s8973_s23 + $0x190] ss:$8 sps:$4 sm:$0xff]  }
 0x4a5   : > { %4999 = vmatpush1.bf16.msra.mxu0 %v8467_v0  ;;  %5139 = vmatpush1.bf16.msra.mxu1 %v8470_v62  ;;  %v8562_v0 = vld [vmem:[%s8973_s23 + $0x194] ss:$8 sps:$4 sm:$0xff]   ;;  %v8565_v62 = vld [vmem:[%s8973_s23 + $0x84] ss:$8 sps:$4 sm:$0xff]  }
 0x4a6   : > { %5635 = vmatprep.subr.bf16.mxu1 %v8475_v58  ;;  %5427 = vmatprep.subr.bf16.mxu0 %v8478_v36  ;;  %v8568_v58 = vld [vmem:[%s8973_s23 + $0x184] ss:$8 sps:$4 sm:$0xff]   ;;  %v8563_v36 = vld [vmem:[%s8973_s23 + $0x80] ss:$8 sps:$4 sm:$0xff]  }
 0x4a8   : > { %5017 = vmatmul.mubr.bf16.vlgmr.msra.gmra.mxu0 %v4887_v23  ;;  %5157 = vmatmul.mubr.bf16.vlgmr.msra.gmra.mxu1 %v5027_v32 }
 0x4a9   : > { %5636 = vmatpush1.bf16.msra.mxu1 %v8473_v56  ;;  %5428 = vmatpush1.bf16.msra.mxu0 %v8476_v53  ;;  %v8566_v56 = vld [vmem:[%s8973_s23 + $0x180] ss:$8 sps:$4 sm:$0xff]   ;;  %v8573_v53 = vld [vmem:[%s8973_s23 + $0x374] ss:$8 sps:$4 sm:$0xff]  }
 0x4aa   : > { %5637 = vmatprep.subr.bf16.mxu1 %v8481_v21  ;;  %5429 = vmatprep.subr.bf16.mxu0 %v8484_v3  ;;  %v8578_v21 = vld [vmem:[%s8973_s23 + $0x274] ss:$8 sps:$4 sm:$0xff]  }
 0x4ad   : > { %5638 = vmatpush1.bf16.msra.mxu1 %v8479_v51  ;;  %5430 = vmatpush1.bf16.msra.mxu0 %v8482_v33 }
 0x4ae   : > { %5639 = vmatprep.subr.bf16.mxu1 %v8487_v34  ;;  %5431 = vmatprep.subr.bf16.mxu0 %v8490_v7 }
 0x4b1   : > { %5640 = vmatpush1.bf16.msra.mxu1 %v8485_v27  ;;  %5432 = vmatpush1.bf16.msra.mxu0 %v8488_v48  ;;  %v5169_v48 = vlaneseq }
 0x4b2   : > { %5641 = vmatprep.subr.bf16.mxu1 %v8493_v19  ;;  %5433 = vmatprep.subr.bf16.mxu0 %v8496_v4  ;;  %v5167_v4 = vld [vmem:[%s809_s27] sm:$0x3] }
 0x4b3   : > { %v5170_v19 = vshrl.u32 %v5169_v48, 7  ;;  %v8618_v48 = vld [vmem:[%s8973_s23 + $0x214] ss:$8 sps:$4 sm:$0xff]  }
 0x4b5   : > { %5642 = vmatpush1.bf16.msra.mxu1 %v8491_v25  ;;  %5434 = vmatpush1.bf16.msra.mxu0 %v8494_v59  ;;  %v9970_v25 = vsub.s32 0, %v5170_v19 }
 0x4b6   : > { %5643 = vmatprep.subr.bf16.mxu1 %v8499_v60  ;;  %5435 = vmatprep.subr.bf16.mxu0 %v8502_v31  ;;  %v9972_v60 = vsub.s32 1, %v5170_v19  ;;  %v8613_v19 = vld [vmem:[%s8973_s23 + $0x310] ss:$8 sps:$4 sm:$0xff]  }
 0x4b9   : > { %5644 = vmatpush1.bf16.msra.mxu1 %v8497_v42  ;;  %5436 = vmatpush1.bf16.msra.mxu0 %v8500_v35 }
 0x4ba   : > { %5645 = vmatprep.subr.bf16.mxu1 %v8505_v12  ;;  %5437 = vmatprep.subr.bf16.mxu0 %v8508_v41 }
 0x4bd   : > { %5646 = vmatpush1.bf16.msra.mxu1 %v8503_v55  ;;  %5438 = vmatpush1.bf16.msra.mxu0 %v8506_v40  ;;  %v5172_v55 = vrot.slane %v5167_v4, %v9970_v25 }
 0x4be   : > { %5647 = vmatprep.subr.bf16.mxu1 %v8511_v57  ;;  %5439 = vmatprep.subr.bf16.mxu0 %v8514_v54 }
 0x4c1   : > { %5648 = vmatpush1.bf16.msra.mxu1 %v8509_v18  ;;  %5440 = vmatpush1.bf16.msra.mxu0 %v8512_v43  ;;  %v5176_v18 = vrot.slane %v5167_v4, %v9972_v60  ;;  %v8621_v4 = vld [vmem:[%s8973_s23 + $0x304] ss:$8 sps:$4 sm:$0xff]  }
 0x4c2   : > { %5649 = vmatprep.subr.bf16.mxu1 %v8517_v63  ;;  %5441 = vmatprep.subr.bf16.mxu0 %v8520_v28 }
 0x4c5   : > { %5650 = vmatpush1.bf16.msra.mxu1 %v8515_v50  ;;  %5442 = vmatpush1.bf16.msra.mxu0 %v8518_v1 }
 0x4c6   : > { %5651 = vmatprep.subr.bf16.mxu1 %v8523_v61  ;;  %5443 = vmatprep.subr.bf16.mxu0 %v8526_v38 }
 0x4c9   : > { %5652 = vmatpush2.bf16.msra.mxu1 %v8521_v29  ;;  %5444 = vmatpush2.bf16.msra.mxu0 %v8524_v37 }
 0x4ca   : > { %5653 = vmatprep.subr.bf16.mxu1 %v8529_v6  ;;  %5445 = vmatprep.subr.bf16.mxu0 %v8532_v45 }
 0x4cd   : > { %5654 = vmatpush2.bf16.msra.mxu1 %v8527_v5  ;;  %5446 = vmatpush2.bf16.msra.mxu0 %v8530_v20 }
 0x4ce   : > { %5655 = vmatprep.subr.bf16.mxu1 %v8535_v13  ;;  %5447 = vmatprep.subr.bf16.mxu0 %v8538_v39  ;;  %v8571_v39 = vld [vmem:[%s8973_s23 + $0x370] ss:$8 sps:$4 sm:$0xff]  }
 0x4d1   : > { %5656 = vmatpush2.bf16.msra.mxu1 %v8533_v8  ;;  %5448 = vmatpush2.bf16.msra.mxu0 %v8536_v14 }
 0x4d2   : > { %5657 = vmatprep.subr.bf16.mxu1 %v8541_v52  ;;  %5449 = vmatprep.subr.bf16.mxu0 %v8544_v44 }
 0x4d5   : > { %5658 = vmatpush2.bf16.msra.mxu1 %v8539_v10  ;;  %5450 = vmatpush2.bf16.msra.mxu0 %v8542_v11 }
 0x4d6   : > { %5659 = vmatprep.subr.bf16.mxu1 %v8547_v15  ;;  %5451 = vmatprep.subr.bf16.mxu0 %v8550_v46  ;;  %v8576_v46 = vld [vmem:[%s8973_s23 + $0x270] ss:$8 sps:$4 sm:$0xff]  }
 0x4d9   : > { %5660 = vmatpush2.bf16.msra.mxu1 %v8545_v22  ;;  %5452 = vmatpush2.bf16.msra.mxu0 %v8548_v9 }
 0x4da   : > { %5661 = vmatprep.subr.bf16.mxu1 %v8553_v2  ;;  %5453 = vmatprep.subr.bf16.mxu0 %v8556_v26  ;;  %v8585_v2 = vld [vmem:[%s8973_s23 + $0x364] ss:$8 sps:$4 sm:$0xff]  }
 0x4dd   : > { %5662 = vmatpush2.bf16.msra.mxu1 %v8551_v16  ;;  %5454 = vmatpush2.bf16.msra.mxu0 %v8554_v30  ;;  %v8588_v16 = vld [vmem:[%s8973_s23 + $0x264] ss:$8 sps:$4 sm:$0xff]   ;;  %v8583_v30 = vld [vmem:[%s8973_s23 + $0x360] ss:$8 sps:$4 sm:$0xff]  }
 0x4de   : > { %5663 = vmatprep.subr.bf16.mxu1 %v8559_v24  ;;  %5455 = vmatprep.subr.bf16.mxu0 %v8562_v0  ;;  %v8586_v24 = vld [vmem:[%s8973_s23 + $0x260] ss:$8 sps:$4 sm:$0xff]   ;;  %v8589_v0 = vld [vmem:[%s8973_s23 + $0x350] ss:$8 sps:$4 sm:$0xff]  }
 0x4e1   : > { %5664 = vmatpush2.bf16.msra.mxu1 %v8557_v17  ;;  %5456 = vmatpush2.bf16.msra.mxu0 %v8560_v47  ;;  %v8591_v17 = vld [vmem:[%s8973_s23 + $0x354] ss:$8 sps:$4 sm:$0xff]  }
 0x4e2   : > { %5665 = vmatprep.subr.bf16.mxu1 %v8565_v62  ;;  %5457 = vmatprep.subr.bf16.mxu0 %v8568_v58  ;;  %v8594_v47 = vld [vmem:[%s8973_s23 + $0x254] ss:$8 sps:$4 sm:$0xff]   ;;  %v8597_v62 = vld [vmem:[%s8973_s23 + $0x344] ss:$8 sps:$4 sm:$0xff]   ;;  %v8592_v58 = vld [vmem:[%s8973_s23 + $0x250] ss:$8 sps:$4 sm:$0xff]  }
 0x4e5   : > { %5666 = vmatpush2.bf16.msra.mxu1 %v8563_v36  ;;  %5458 = vmatpush2.bf16.msra.mxu0 %v8566_v56  ;;  %v8600_v36 = vld [vmem:[%s8973_s23 + $0x244] ss:$8 sps:$4 sm:$0xff]   ;;  %v8595_v56 = vld [vmem:[%s8973_s23 + $0x340] ss:$8 sps:$4 sm:$0xff]  }
 0x4e6   : > { %6123 = vmatprep.subr.bf16.mxu1 %v8573_v53  ;;  %5878 = vmatprep.subr.bf16.mxu0 %v8578_v21  ;;  %v8603_v53 = vld [vmem:[%s8973_s23 + $0x334] ss:$8 sps:$4 sm:$0xff]   ;;  %v8598_v21 = vld [vmem:[%s8973_s23 + $0x240] ss:$8 sps:$4 sm:$0xff]  }
 0x548   : > { %v4759_v3 = vpop.f32.mrf.mxu0  ;;  %v4880_v23 = vpop.f32.mrf.mxu1 }
 0x549   : > { %v4881_v59 = vadd.f32 %v4880_v23, %v4759_v3  ;;  %v8606_v3 = vld [vmem:[%s8973_s23 + $0x234] ss:$8 sps:$4 sm:$0xff]   ;;  %v8601_v23 = vld [vmem:[%s8973_s23 + $0x330] ss:$8 sps:$4 sm:$0xff]  }
 0x54a   : > { %v4761_v32 = vpop.f32.mrf.mxu0  ;;  %v4882_v51 = vpop.f32.mrf.mxu1 }
 0x54b   : > { %v4883_v31 = vadd.f32 %v4882_v51, %v4761_v32  ;;  %v8609_v32 = vld [vmem:[%s8973_s23 + $0x324] ss:$8 sps:$4 sm:$0xff]   ;;  %v8604_v51 = vld [vmem:[%s8973_s23 + $0x230] ss:$8 sps:$4 sm:$0xff]  }
 0x54c   : > { %v4763_v33 = vpop.f32.mrf.mxu0  ;;  %v4884_v34 = vpop.f32.mrf.mxu1 }
 0x54d   : > { %v8612_v33 = vld [vmem:[%s8973_s23 + $0x224] ss:$8 sps:$4 sm:$0xff]   ;;  %v8607_v34 = vld [vmem:[%s8973_s23 + $0x320] ss:$8 sps:$4 sm:$0xff]  }
 0x54e   : > { %v4764_v27 = vpop.f32.mrf.mxu0  ;;  %v4885_v7 = vpop.f32.mrf.mxu1 }
 0x54f   : > { %v8615_v27 = vld [vmem:[%s8973_s23 + $0x314] ss:$8 sps:$4 sm:$0xff]   ;;  %v8610_v7 = vld [vmem:[%s8973_s23 + $0x220] ss:$8 sps:$4 sm:$0xff]  }
 0x568   : > { %v5018_v42 = vpop.f32.mrf.mxu0  ;;  %v5158_v35 = vpop.f32.mrf.mxu1 }
 0x569   : > { %v5025_v12 = vadd.f32 %v5018_v42, %v4881_v59  ;;  %v8616_v59 = vld [vmem:[%s8973_s23 + $0x210] ss:$8 sps:$4 sm:$0xff]   ;;  %v8624_v42 = vld [vmem:[%s8973_s23 + $0x204] ss:$8 sps:$4 sm:$0xff]  }
 0x56a   : > { %v5020_v41 = vpop.f32.mrf.mxu0  ;;  %v5160_v57 = vpop.f32.mrf.mxu1 }
 0x56b   : > { %v5165_v40 = vadd.f32 %v5158_v35, %v5025_v12  ;;  %v5026_v54 = vadd.f32 %v5020_v41, %v4883_v31  ;;  %v8619_v35 = vld [vmem:[%s8973_s23 + $0x300] ss:$8 sps:$4 sm:$0xff]   ;;  %v8627_v31 = vld [vmem:[%s8973_s23 + $0x3f4] ss:$8 sps:$4 sm:$0xff]   ;;  %v8625_v41 = vld [vmem:[%s8973_s23 + $0x3f0] ss:$8 sps:$4 sm:$0xff]  }
 0x56c   : > { %v5022_v63 = vpop.f32.mrf.mxu0  ;;  %v5162_v43 = vpop.f32.mrf.mxu1  ;;  %v8622_v12 = vld [vmem:[%s8973_s23 + $0x200] ss:$8 sps:$4 sm:$0xff]  }
 0x56d   : > { %v5179_v28 = vadd.f32 %v5172_v55, %v5165_v40  ;;  %v5166_v50 = vadd.f32 %v5160_v57, %v5026_v54  ;;  %v8630_v55 = vld [vmem:[%s8973_s23 + $0x2f4] ss:$8 sps:$4 sm:$0xff]   ;;  %v8633_v57 = vld [vmem:[%s8973_s23 + $0x3e4] ss:$8 sps:$4 sm:$0xff]   ;;  %v8628_v40 = vld [vmem:[%s8973_s23 + $0x2f0] ss:$8 sps:$4 sm:$0xff]  }
 0x56e   : > { %v5023_v61 = vpop.f32.mrf.mxu0  ;;  %v5163_v1 = vpop.f32.mrf.mxu1  ;;  %v8636_v54 = vld [vmem:[%s8973_s23 + $0x2e4] ss:$8 sps:$4 sm:$0xff]   ;;  %v8639_v63 = vld [vmem:[%s8973_s23 + $0x3d4] ss:$8 sps:$4 sm:$0xff]   ;;  %v8634_v43 = vld [vmem:[%s8973_s23 + $0x2e0] ss:$8 sps:$4 sm:$0xff]  }
 0x56f   : > { %v5180_v38 = vadd.f32 %v5176_v18, %v5166_v50  ;;  %v5181_v29 = vmax.f32 %v5179_v28, 0.0  ;;  %v8631_v18 = vld [vmem:[%s8973_s23 + $0x3e0] ss:$8 sps:$4 sm:$0xff]   ;;  %v8642_v28 = vld [vmem:[%s8973_s23 + $0x2d4] ss:$8 sps:$4 sm:$0xff]  }
 0x570   : > { %v8637_v50 = vld [vmem:[%s8973_s23 + $0x3d0] ss:$8 sps:$4 sm:$0xff]   ;;  %v8645_v61 = vld [vmem:[%s8973_s23 + $0x3c4] ss:$8 sps:$4 sm:$0xff]  }
 0x571   : > { %v5182_v6 = vmax.f32 %v5180_v38, 0.0  ;;  %v8640_v1 = vld [vmem:[%s8973_s23 + $0x2d0] ss:$8 sps:$4 sm:$0xff]   ;;  %v8648_v38 = vld [vmem:[%s8973_s23 + $0x2c4] ss:$8 sps:$4 sm:$0xff]  }
 0x573   : > { %v7525_v37 = vpack.c.bf16 %v5182_v6, %v5181_v29  ;;  %v8643_v29 = vld [vmem:[%s8973_s23 + $0x3c0] ss:$8 sps:$4 sm:$0xff]   ;;  %v8651_v6 = vld [vmem:[%s8973_s23 + $0x3b4] ss:$8 sps:$4 sm:$0xff]  }
 0x575   : > { %5191 = vst [vmem:[#allocation4] sm:$0xff] %v7525_v37  ;;  %v8646_v37 = vld [vmem:[%s8973_s23 + $0x2c0] ss:$8 sps:$4 sm:$0xff]  }
 0x57c   : > { %v5192_v45 = vld [vmem:[#allocation4] sm:$0x11]  ;;  %v5225_v5 = vld [vmem:[#allocation4] sm:$0x22]  ;;  %v9976_v13 = vld [vmem:[#allocation4] sm:$0x88] }
 0x57d   : > { %v7341_v20 = vcombine.low %v5192_v45, %v5192_v45  ;;  %v7342_v8 = vcombine.high %v5192_v45, %v5192_v45  ;;  %v7307_v14 = vcombine.low %v5225_v5, %v5225_v5  ;;  %v7308_v52 = vcombine.high %v5225_v5, %v5225_v5  ;;  %v9979_v10 = vld [vmem:[#allocation4] sm:$0x44] }
 0x57e   : > { %v7410_v44 = vcombine.high %v9976_v13, %v9976_v13  ;;  %v7376_v11 = vcombine.high %v9979_v10, %v9979_v10  ;;  %v8654_v45 = vld [vmem:[%s8973_s23 + $0x2b4] ss:$8 sps:$4 sm:$0xff]   ;;  %v8649_v5 = vld [vmem:[%s8973_s23 + $0x3b0] ss:$8 sps:$4 sm:$0xff]  }
 0x57f   : > { %5667 = vmatprep.mubr.bf16.mxu1 %v7342_v8  ;;  %v5263_v15 = vrot.slane %v7307_v14, 1  ;;  %v5264_v22 = vrot.slane %v7308_v52, 1  ;;  %v8652_v8 = vld [vmem:[%s8973_s23 + $0x2b0] ss:$8 sps:$4 sm:$0xff]   ;;  %v8655_v14 = vld [vmem:[%s8973_s23 + $0x3a0] ss:$8 sps:$4 sm:$0xff]  }
 0x580   : > { %5668 = vmatmul.mubr.bf16.vlgmr.msra.gmra.mxu1 %v7341_v20  ;;  %v5960_v9 = vrot.slane %v7410_v44, 3  ;;  %v5715_v26 = vrot.slane %v7376_v11, 2  ;;  %v8657_v20 = vld [vmem:[%s8973_s23 + $0x3a4] ss:$8 sps:$4 sm:$0xff]   ;;  %v8663_v52 = vld [vmem:[%s8973_s23 + $0x394] ss:$8 sps:$4 sm:$0xff]  }
 0x581   : > { %6124 = vmatpush1.bf16.msra.mxu1 %v8571_v39  ;;  %5459 = vmatprep.mubr.bf16.mxu0 %v5264_v22  ;;  %v8660_v39 = vld [vmem:[%s8973_s23 + $0x2a4] ss:$8 sps:$4 sm:$0xff]   ;;  %v8658_v44 = vld [vmem:[%s8973_s23 + $0x2a0] ss:$8 sps:$4 sm:$0xff]   ;;  %v8666_v11 = vld [vmem:[%s8973_s23 + $0x294] ss:$8 sps:$4 sm:$0xff]  }
 0x582   : > { %6155 = vmatprep.mubr.bf16.mxu1 %v5960_v9  ;;  %5460 = vmatmul.mubr.bf16.vlgmr.msra.gmra.mxu0 %v5263_v15  ;;  %v8661_v15 = vld [vmem:[%s8973_s23 + $0x390] ss:$8 sps:$4 sm:$0xff]   ;;  %v8669_v22 = vld [vmem:[%s8973_s23 + $0x384] ss:$8 sps:$4 sm:$0xff]  }
 0x583   : > { %5879 = vmatpush1.bf16.msra.mxu0 %v8576_v46  ;;  %5910 = vmatprep.mubr.bf16.mxu0 %v5715_v26  ;;  %v8664_v46 = vld [vmem:[%s8973_s23 + $0x290] ss:$8 sps:$4 sm:$0xff]   ;;  %v8672_v9 = vld [vmem:[%s8973_s23 + $0x284] ss:$8 sps:$4 sm:$0xff]   ;;  %v8670_v26 = vld [vmem:[%s8973_s23 + $0x280] ss:$8 sps:$4 sm:$0xff]  }
 0x584   : > { %6125 = vmatprep.subr.bf16.mxu1 %v8585_v2  ;;  %5880 = vmatprep.subr.bf16.mxu0 %v8588_v16  ;;  %v8667_v2 = vld [vmem:[%s8973_s23 + $0x380] ss:$8 sps:$4 sm:$0xff]   ;;  %v7409_v16 = vcombine.low %v9976_v13, %v9976_v13  ;;  %v8673_v13 = vld [vmem:[%s10055_s20 + $0x70] ss:$8 sps:$4 sm:$0xff]   ;;  %s7503_s23 = sshll.u32 %s10184_s24, 3 }
 0x585   : > { %6126 = vmatpush1.bf16.msra.mxu1 %v8583_v30  ;;  %v7375_v30 = vcombine.low %v9979_v10, %v9979_v10  ;;  %v8675_v10 = vld [vmem:[%s10055_s20 + $0x74] ss:$8 sps:$4 sm:$0xff]   ;;  %s828_s25 = scalar_lea.vmem %s10161_s13, %s7503_s23 }
 0x586   : > { %6127 = vmatprep.subr.bf16.mxu1 %v8591_v17  ;;  %v5959_v17 = vrot.slane %v7409_v16, 3 }
 0x587   : > { %5881 = vmatpush1.bf16.msra.mxu0 %v8586_v24  ;;  %v5714_v24 = vrot.slane %v7375_v30, 2 }
 0x588   : > { %5882 = vmatprep.subr.bf16.mxu0 %v8594_v47  ;;  %v8678_v47 = vld [vmem:[%s10055_s20 + $0x64] ss:$8 sps:$4 sm:$0xff]  }
 0x589   : > { %6128 = vmatpush1.bf16.msra.mxu1 %v8589_v0  ;;  %v8681_v0 = vld [vmem:[%s10055_s20 + $0x54] ss:$8 sps:$4 sm:$0xff]  }
 0x58a   : > { %6129 = vmatprep.subr.bf16.mxu1 %v8597_v62  ;;  %v8679_v62 = vld [vmem:[%s10055_s20 + $0x50] ss:$8 sps:$4 sm:$0xff]  }
 0x58b   : > { %5883 = vmatpush1.bf16.msra.mxu0 %v8592_v58  ;;  %v8684_v58 = vld [vmem:[%s10055_s20 + $0x44] ss:$8 sps:$4 sm:$0xff]  }
 0x58c   : > { %5884 = vmatprep.subr.bf16.mxu0 %v8600_v36  ;;  %v8682_v36 = vld [vmem:[%s10055_s20 + $0x40] ss:$8 sps:$4 sm:$0xff]  }
 0x58d   : > { %6130 = vmatpush1.bf16.msra.mxu1 %v8595_v56  ;;  %v8687_v56 = vld [vmem:[%s10055_s20 + $0x34] ss:$8 sps:$4 sm:$0xff]  }
 0x58e   : > { %6131 = vmatprep.subr.bf16.mxu1 %v8603_v53  ;;  %v8685_v53 = vld [vmem:[%s10055_s20 + $0x30] ss:$8 sps:$4 sm:$0xff]  }
 0x58f   : > { %5885 = vmatpush1.bf16.msra.mxu0 %v8598_v21  ;;  %v8690_v21 = vld [vmem:[%s10055_s20 + $0x24] ss:$8 sps:$4 sm:$0xff]  }
 0x590   : > { %5886 = vmatprep.subr.bf16.mxu0 %v8606_v3  ;;  %v8688_v3 = vld [vmem:[%s10055_s20 + $0x20] ss:$8 sps:$4 sm:$0xff]  }
 0x591   : > { %6132 = vmatpush1.bf16.msra.mxu1 %v8601_v23  ;;  %v8693_v23 = vld [vmem:[%s10055_s20 + $0x14] ss:$8 sps:$4 sm:$0xff]  }
 0x592   : > { %6133 = vmatprep.subr.bf16.mxu1 %v8609_v32  ;;  %v8691_v32 = vld [vmem:[%s10055_s20 + $0x10] ss:$8 sps:$4 sm:$0xff]  }
 0x593   : > { %5887 = vmatpush1.bf16.msra.mxu0 %v8604_v51  ;;  %v8696_v51 = vld [vmem:[%s10055_s20 + $0x4] ss:$8 sps:$4 sm:$0xff]  }
 0x594   : > { %5888 = vmatprep.subr.bf16.mxu0 %v8612_v33  ;;  %v8694_v33 = vld [vmem:[%s10055_s20] ss:$8 sps:$4 sm:$0xff]  }
 0x595   : > { %6134 = vmatpush1.bf16.msra.mxu1 %v8607_v34  ;;  %v8699_v34 = vld [vmem:[%s10055_s20 + $0xf4] ss:$8 sps:$4 sm:$0xff]  }
 0x596   : > { %6135 = vmatprep.subr.bf16.mxu1 %v8615_v27  ;;  %v8697_v27 = vld [vmem:[%s10055_s20 + $0xf0] ss:$8 sps:$4 sm:$0xff]  }
 0x597   : > { %5889 = vmatpush1.bf16.msra.mxu0 %v8610_v7  ;;  %v8702_v7 = vld [vmem:[%s10055_s20 + $0xe4] ss:$8 sps:$4 sm:$0xff]  }
 0x598   : > { %5890 = vmatprep.subr.bf16.mxu0 %v8618_v48  ;;  %v8700_v48 = vld [vmem:[%s10055_s20 + $0xe0] ss:$8 sps:$4 sm:$0xff]  }
 0x599   : > { %6136 = vmatpush1.bf16.msra.mxu1 %v8613_v19  ;;  %v8705_v19 = vld [vmem:[%s10055_s20 + $0xd4] ss:$8 sps:$4 sm:$0xff]  }
 0x59a   : > { %6137 = vmatprep.subr.bf16.mxu1 %v8621_v4  ;;  %v8703_v4 = vld [vmem:[%s10055_s20 + $0xd0] ss:$8 sps:$4 sm:$0xff]  }
 0x59b   : > { %5891 = vmatpush1.bf16.msra.mxu0 %v8616_v59  ;;  %v8708_v59 = vld [vmem:[%s10055_s20 + $0xc4] ss:$8 sps:$4 sm:$0xff]  }
 0x59c   : > { %5892 = vmatprep.subr.bf16.mxu0 %v8624_v42  ;;  %v8706_v42 = vld [vmem:[%s10055_s20 + $0xc0] ss:$8 sps:$4 sm:$0xff]  }
 0x59d   : > { %6138 = vmatpush1.bf16.msra.mxu1 %v8619_v35  ;;  %v8711_v35 = vld [vmem:[%s10055_s20 + $0xb4] ss:$8 sps:$4 sm:$0xff]  }
 0x59e   : > { %6139 = vmatprep.subr.bf16.mxu1 %v8627_v31  ;;  %v8709_v31 = vld [vmem:[%s10055_s20 + $0xb0] ss:$8 sps:$4 sm:$0xff]  }
 0x59f   : > { %5893 = vmatpush1.bf16.msra.mxu0 %v8622_v12  ;;  %v8714_v12 = vld [vmem:[%s10055_s20 + $0xa4] ss:$8 sps:$4 sm:$0xff]  }
 0x5a0   : > { %5894 = vmatprep.subr.bf16.mxu0 %v8630_v55  ;;  %v8712_v55 = vld [vmem:[%s10055_s20 + $0xa0] ss:$8 sps:$4 sm:$0xff]  }
 0x5a1   : > { %6140 = vmatpush2.bf16.msra.mxu1 %v8625_v41  ;;  %v6215_v41 = vld [vmem:[%s828_s25] sm:$0xff] }
 0x5a2   : > { %6141 = vmatprep.subr.bf16.mxu1 %v8633_v57  ;;  %v7444_v57 = vcombine.high %v6215_v41, %v6215_v41 }
 0x5a3   : > { %5895 = vmatpush2.bf16.msra.mxu0 %v8628_v40  ;;  %v7443_v40 = vcombine.low %v6215_v41, %v6215_v41 }
 0x5a4   : > { %5896 = vmatprep.subr.bf16.mxu0 %v8636_v54 }
 0x5a5   : > { %6142 = vmatpush2.bf16.msra.mxu1 %v8631_v18  ;;  %v6227_v54 = vsel %vm6225_vm3, %v7443_v40, 0  ;;  %v8719_v18 = vld [vmem:[%s10055_s20 + $0x94] ss:$8 sps:$4 sm:$0xff]  }
 0x5a6   : > { %6143 = vmatprep.subr.bf16.mxu1 %v8639_v63  ;;  %v8717_v63 = vld [vmem:[%s10055_s20 + $0x90] ss:$8 sps:$4 sm:$0xff]  }
 0x5a7   : > { %5897 = vmatpush2.bf16.msra.mxu0 %v8634_v43  ;;  %v6214_v43 = vld [vmem:[%s10177_s19] sm:$0x1] }
 0x5a8   : > { %5898 = vmatprep.subr.bf16.mxu0 %v8642_v28  ;;  %v8722_v28 = vld [vmem:[%s10055_s20 + $0x84] ss:$8 sps:$4 sm:$0xff]  }
 0x5a9   : > { %6144 = vmatpush2.bf16.msra.mxu1 %v8637_v50  ;;  %v8720_v50 = vld [vmem:[%s10055_s20 + $0x80] ss:$8 sps:$4 sm:$0xff]  }
 0x5aa   : > { %6145 = vmatprep.subr.bf16.mxu1 %v8645_v61  ;;  %v8723_v61 = vld [vmem:[%s10101_s30 + $0x78] sm:$0xff]  }
 0x5ab   : > { %5899 = vmatpush2.bf16.msra.mxu0 %v8640_v1  ;;  %v8724_v1 = vld [vmem:[%s10101_s30 + $0x38] sm:$0xff]  }
 0x5ac   : > { %5900 = vmatprep.subr.bf16.mxu0 %v8648_v38  ;;  %v8725_v38 = vld [vmem:[%s10101_s30 + $0x70] sm:$0xff]  }
 0x5ad   : > { %6146 = vmatpush2.bf16.msra.mxu1 %v8643_v29  ;;  %v8726_v29 = vld [vmem:[%s10101_s30 + $0x30] sm:$0xff]  }
 0x5ae   : > { %6147 = vmatprep.subr.bf16.mxu1 %v8651_v6  ;;  %v8727_v6 = vld [vmem:[%s10101_s30 + $0x68] sm:$0xff]  }
 0x5af   : > { %5901 = vmatpush2.bf16.msra.mxu0 %v8646_v37  ;;  %v8728_v37 = vld [vmem:[%s10101_s30 + $0x28] sm:$0xff]  }
 0x5b0   : > { %5902 = vmatprep.subr.bf16.mxu0 %v8654_v45  ;;  %v8729_v45 = vld [vmem:[%s10101_s30 + $0x60] sm:$0xff]  }
 0x5b1   : > { %6148 = vmatpush2.bf16.msra.mxu1 %v8649_v5  ;;  %v8730_v5 = vld [vmem:[%s10101_s30 + $0x20] sm:$0xff]  }
 0x5b2   : > { %6149 = vmatprep.subr.bf16.mxu1 %v8657_v20 }
 0x5b3   : > { %5903 = vmatpush2.bf16.msra.mxu0 %v8652_v8 }
 0x5b4   : > { %5904 = vmatprep.subr.bf16.mxu0 %v8660_v39 }
 0x5b5   : > { %6150 = vmatpush2.bf16.msra.mxu1 %v8655_v14 }
 0x5b6   : > { %6151 = vmatprep.subr.bf16.mxu1 %v8663_v52 }
 0x5b7   : > { %5905 = vmatpush2.bf16.msra.mxu0 %v8658_v44 }
 0x5b8   : > { %5906 = vmatprep.subr.bf16.mxu0 %v8666_v11 }
 0x5b9   : > { %6152 = vmatpush2.bf16.msra.mxu1 %v8661_v15 }
 0x5ba   : > { %6153 = vmatprep.subr.bf16.mxu1 %v8669_v22 }
 0x5bb   : > { %5907 = vmatpush2.bf16.msra.mxu0 %v8664_v46  ;;  %v8731_v46 = vld [vmem:[%s10101_s30 + $0x58] sm:$0xff]  }
 0x5bc   : > { %5908 = vmatprep.subr.bf16.mxu0 %v8672_v9  ;;  %v8732_v9 = vld [vmem:[%s10101_s30 + $0x18] sm:$0xff]  }
 0x5bd   : > { %6154 = vmatpush2.bf16.msra.mxu1 %v8667_v2 }
 0x5be   : > { %6433 = vmatprep.subr.bf16.mxu1 %v8675_v10 }
 0x5bf   : > { %5909 = vmatpush2.bf16.msra.mxu0 %v8670_v26 }
 0x5c0   : > { %6156 = vmatmul.mubr.bf16.vlgmr.msra.gmra.mxu1 %v5959_v17  ;;  %7445 = vmatprep.subr.msk.bf16.mxu0 %vm6225_vm3, %v7444_v57 }
 0x5c1   : > { %6434 = vmatpush1.bf16.msra.mxu1 %v8673_v13 }
 0x5c2   : > { %5911 = vmatmul.mubr.bf16.vlgmr.msra.gmra.mxu0 %v5714_v24  ;;  %6435 = vmatprep.subr.bf16.mxu1 %v8678_v47 }
 0x5c3   : > { %6264 = vmatprep.mubr.bf16.mxu0 %v8768_v49  ;;  %v8676_v49 = vld [vmem:[%s10055_s20 + $0x60] ss:$8 sps:$4 sm:$0xff]   ;;  %6247 = vmatpush1.bf16.msra.mxu0 %v6227_v54  ;;  %s818_s20 = scalar_lea.vmem %s10159_s11, %s9964_s2 }
 0x5c4   : > { %7759 = vmatprep.subr.bf16.mxu0 %v8723_v61  ;;  %v6166_v16 = vld [vmem:[%s818_s20] sm:$0x3] }
 0x5c5   : > { %6436 = vmatpush1.bf16.msra.mxu1 %v8676_v49  ;;  %v6171_v13 = vrot.slane %v6166_v16, %v9970_v25 }
 0x5c6   : > { %6437 = vmatprep.subr.bf16.mxu1 %v8681_v0 }
 0x5c9   : > { %6438 = vmatpush1.bf16.msra.mxu1 %v8679_v62  ;;  %v6175_v62 = vrot.slane %v6166_v16, %v9972_v60 }
 0x5ca   : > { %6439 = vmatprep.subr.bf16.mxu1 %v8684_v58  ;;  %7446 = vmatmul.mubr.msk.bf16.vlgmr.msra.gmra.mxu0 %vm6221_vm4, %v6214_v43 }
 0x5cb   : > { %7760 = vmatpush3.bf16.msra.mxu0 %v8724_v1 }
 0x5cc   : > { %7761 = vmatprep.subr.bf16.mxu0 %v8725_v38  ;;  %v7479_v38 = vld [vmem:[%s840_s1] ss:$0 sm:$0xff] }
 0x5cd   : > { %6440 = vmatpush1.bf16.msra.mxu1 %v8682_v36 }
 0x5ce   : > { %6441 = vmatprep.subr.bf16.mxu1 %v8687_v56 }
 0x5cf   : > { %7762 = vmatpush3.bf16.msra.mxu0 %v8726_v29 }
 0x5d0   : > { %7763 = vmatprep.subr.bf16.mxu0 %v8727_v6 }
 0x5d1   : > { %6442 = vmatpush1.bf16.msra.mxu1 %v8685_v53 }
 0x5d2   : > { %6443 = vmatprep.subr.bf16.mxu1 %v8690_v21 }
 0x5d3   : > { %7764 = vmatpush3.bf16.msra.mxu0 %v8728_v37 }
 0x5d4   : > { %7765 = vmatprep.subr.bf16.mxu0 %v8729_v45 }
 0x5d5   : > { %6444 = vmatpush1.bf16.msra.mxu1 %v8688_v3 }
 0x5d6   : > { %6445 = vmatprep.subr.bf16.mxu1 %v8693_v23 }
 0x5d7   : > { %7766 = vmatpush3.bf16.msra.mxu0 %v8730_v5 }
 0x5d8   : > { %7767 = vmatprep.subr.bf16.mxu0 %v8731_v46 }
 0x5d9   : > { %6446 = vmatpush1.bf16.msra.mxu1 %v8691_v32 }
 0x5da   : > { %6447 = vmatprep.subr.bf16.mxu1 %v8696_v51 }
 0x5db   : > { %7768 = vmatpush3.bf16.msra.mxu0 %v8732_v9 }
 0x5dd   : > { %6448 = vmatpush1.bf16.msra.mxu1 %v8694_v33 }
 0x5de   : > { %6449 = vmatprep.subr.bf16.mxu1 %v8699_v34 }
 0x5e1   : > { %6450 = vmatpush2.bf16.msra.mxu1 %v8697_v27  ;;  %v8733_v27 = vld [vmem:[%s10101_s30 + $0x50] sm:$0xff]  }
 0x5e2   : > { %6451 = vmatprep.subr.bf16.mxu1 %v8702_v7  ;;  %v8734_v7 = vld [vmem:[%s10101_s30 + $0x10] sm:$0xff]   ;;  %7769 = vmatprep.subr.bf16.mxu0 %v8733_v27 }
 0x5e3   : > { %7770 = vmatpush3.bf16.msra.mxu0 %v8734_v7 }
 0x5e5   : > { %6452 = vmatpush2.bf16.msra.mxu1 %v8700_v48 }
 0x5e6   : > { %6453 = vmatprep.subr.bf16.mxu1 %v8705_v19  ;;  %v8735_v19 = vld [vmem:[%s10101_s30 + $0x48] sm:$0xff]  }
 0x5e7   : > { %7771 = vmatprep.subr.bf16.mxu0 %v8735_v19 }
 0x5e9   : > { %6454 = vmatpush2.bf16.msra.mxu1 %v8703_v4  ;;  %v8736_v4 = vld [vmem:[%s10101_s30 + $0x8] sm:$0xff]  }
 0x5ea   : > { %6455 = vmatprep.subr.bf16.mxu1 %v8708_v59  ;;  %7772 = vmatpush3.bf16.msra.mxu0 %v8736_v4  ;;  %v8737_v59 = vld [vmem:[%s10101_s30 + $0x40] sm:$0xff]  }
 0x5eb   : > { %7773 = vmatprep.subr.bf16.mxu0 %v8737_v59 }
 0x5ed   : > { %6456 = vmatpush2.bf16.msra.mxu1 %v8706_v42  ;;  %v8738_v42 = vld [vmem:[%s10101_s30] sm:$0xff]  }
 0x5ee   : > { %6457 = vmatprep.subr.bf16.mxu1 %v8711_v35  ;;  %7774 = vmatpush3.bf16.msra.mxu0 %v8738_v42  ;;  %v6474_v35 = vld [vmem:[%s832_s22] sm:$0x3] }
 0x5ef   : > { %v6483_v41 = vrot.slane %v6474_v35, %v9972_v60 }
 0x5f1   : > { %6458 = vmatpush2.bf16.msra.mxu1 %v8709_v31  ;;  %v6479_v31 = vrot.slane %v6474_v35, %v9970_v25 }
 0x5f2   : > { %6459 = vmatprep.subr.bf16.mxu1 %v8714_v12 }
 0x5f5   : > { %6460 = vmatpush2.bf16.msra.mxu1 %v8712_v55 }
 0x5f6   : > { %6461 = vmatprep.subr.bf16.mxu1 %v8719_v18 }
 0x5f9   : > { %6462 = vmatpush2.bf16.msra.mxu1 %v8717_v63 }
 0x5fa   : > { %6463 = vmatprep.subr.bf16.mxu1 %v8722_v28 }
 0x5fd   : > { %6464 = vmatpush2.bf16.msra.mxu1 %v8720_v50 }
 0x640   : > { %v5669_v20 = vpop.f32.mrf.mxu1 }
 0x642   : > { %v5461_v8 = vpop.f32.mrf.mxu0  ;;  %v5671_v39 = vpop.f32.mrf.mxu1 }
 0x643   : > { %v5670_v14 = vadd.f32 %v5669_v20, %v5461_v8 }
 0x644   : > { %v5463_v52 = vpop.f32.mrf.mxu0  ;;  %v5673_v44 = vpop.f32.mrf.mxu1 }
 0x645   : > { %v5672_v17 = vadd.f32 %v5671_v39, %v5463_v52 }
 0x646   : > { %v5465_v11 = vpop.f32.mrf.mxu0  ;;  %v5674_v15 = vpop.f32.mrf.mxu1 }
 0x648   : > { %v5466_v22 = vpop.f32.mrf.mxu0 }
 0x680   : > { %v6157_v2 = vpop.f32.mrf.mxu1 }
 0x682   : > { %v5912_v26 = vpop.f32.mrf.mxu0  ;;  %v6159_v30 = vpop.f32.mrf.mxu1 }
 0x683   : > { %v5919_v24 = vadd.f32 %v5912_v26, %v5670_v14 }
 0x684   : > { %v5914_v10 = vpop.f32.mrf.mxu0  ;;  %v6161_v47 = vpop.f32.mrf.mxu1 }
 0x685   : > { %v6164_v49 = vadd.f32 %v6157_v2, %v5919_v24  ;;  %v5920_v0 = vadd.f32 %v5914_v10, %v5672_v17 }
 0x686   : > { %v5916_v58 = vpop.f32.mrf.mxu0  ;;  %v6162_v36 = vpop.f32.mrf.mxu1 }
 0x687   : > { %v6165_v56 = vadd.f32 %v6159_v30, %v5920_v0  ;;  %v6178_v53 = vadd.f32 %v6171_v13, %v6164_v49 }
 0x688   : > { %v5917_v21 = vpop.f32.mrf.mxu0 }
 0x689   : > { %v6179_v3 = vadd.f32 %v6175_v62, %v6165_v56  ;;  %v6180_v32 = vpack.c.bf16 %v6178_v53, %v6178_v53 }
 0x68a   : > { %v6266_v51 = vpop.f32.mrf.mxu0 }
 0x68b   : > { %v6181_v23 = vpack.c.bf16 %v6179_v3, %v6179_v3 }
 0x68c   : > { %v6268_v33 = vpop.f32.mrf.mxu0 }
 0x68d   : > { %6465 = vmatprep.mubr.bf16.mxu1 %v6181_v23 }
 0x68e   : > { %6466 = vmatmul.mubr.bf16.vlgmr.msra.gmra.mxu1 %v6180_v32  ;;  %v6270_v34 = vpop.f32.mrf.mxu0 }
 0x690   : > { %v6271_v48 = vpop.f32.mrf.mxu0 }
 0x74e   : > { %v6467_v12 = vpop.f32.mrf.mxu1 }
 0x74f   : > { %v6468_v55 = vadd.f32 %v6467_v12, %v6266_v51 }
 0x750   : > { %v6469_v57 = vpop.f32.mrf.mxu1 }
 0x751   : > { %v6486_v40 = vadd.f32 %v6479_v31, %v6468_v55  ;;  %v6470_v54 = vadd.f32 %v6469_v57, %v6268_v33 }
 0x752   : > { %v6471_v18 = vpop.f32.mrf.mxu1 }
 0x753   : > { %v6487_v63 = vadd.f32 %v6483_v41, %v6470_v54  ;;  %v6488_v43 = vmax.f32 %v6486_v40, 0.0 }
 0x754   : > { %v6472_v28 = vpop.f32.mrf.mxu1 }
 0x755   : > { %v6489_v50 = vmax.f32 %v6487_v63, 0.0  ;;  %v6490_v1 = vpack.c.bf16 %v6488_v43, %v6488_v43 }
 0x757   : > { %v6491_v61 = vpack.c.bf16 %v6489_v50, %v6489_v50 }
 0x759   : > { %6659 = vmatprep.mubr.bf16.mxu0 %v6491_v61 }
 0x75a   : > { %6660 = vmatmul.mubr.bf16.vlgmr.msra.gmra.mxu0 %v6490_v1 }
 0x81a   : > { %v7775_v25 = vpop.f32.mrf.mxu0 }
 0x81c   : > { %v7776_v60 = vpop.f32.mrf.mxu0 }
 0x81d   : > { %v7777_v29 = vadd.f32 %v7776_v60, %v7775_v25 }
 0x81e   : > { %v7778_v6 = vpop.f32.mrf.mxu0 }
 0x81f   : > { %v6662_v37 = vadd.f32 %v7777_v29, %v7479_v38 }
 0x820   : > { %v7779_v45 = vpop.f32.mrf.mxu0 }
 0x821   : > { %6667 = vst [vmem:[%s847_s29] sm:$0x3] %v6662_v37 }
 0x822 PF: > { %s10178_s30 = sld [smem:[#allocation6_spill]] }
 0x823   : > { %s10179_s24 = sld [smem:[#allocation5_spill]] }
 0x824   : > { %s10180_s25 = sld [smem:[#allocation7_spill]] }
 0x828   : > { %s27_s26 = sadd.s32 1, %s10178_s30  }
 0x829   : > { %p24_p5 = scmp.ge.s32.totalorder %s27_s26, 4  }
 0x82b   :  { %26 = sbr.rel (!%p24_p5) target bundleno = 4 (0x4), region = 166 }

</bundles_post_ra>
